<compile_context>
chip_gen: v7x
topology: tpu7x:2x2x1
jax: 0.10.0
libtpu: 0.0.40
codegen_flags: <defaults>
</compile_context>

<pallas_src>
import functools
import math

import jax
import jax.numpy as jnp
from jax.experimental import pallas as pl
from jax.experimental.pallas import tpu as pltpu

# ----------------------------- configuration --------------------------------
PATCH = 4                      # patch_size
IMG = 32                       # CIFAR image side (hard-coded in the module)
P_GRID = IMG // PATCH          # 8
N_PATCHES = P_GRID * P_GRID    # 64  (sequence length)
PATCH_DIM = PATCH * PATCH * 3  # 48
EMBED_DIM = 128                # (768 in the original; scaled down)
N_HEADS = 4                    # (16 in the original)
HEAD_DIM = EMBED_DIM // N_HEADS
N_LAYERS = 2                   # (12 in the original)
FF_DIM = 256                   # (2048 default in nn.TransformerEncoderLayer)
N_CLASSES = 10
LN_EPS = 1e-5
OUT_PAD = 128                  # lane-dense padded width for the final proj


# --------------------------- in-kernel helpers --------------------------------
def _ln_f32(x, g, b):
    """LayerNorm over the last dim, all statistics in f32. g/b: [1, D]."""
    mean = jnp.mean(x, axis=-1, keepdims=True)
    var = jnp.mean((x - mean) ** 2, axis=-1, keepdims=True)
    return (x - mean) * jax.lax.rsqrt(var + LN_EPS) * g + b


def _bf16(x):
    return x.astype(jnp.bfloat16)


# ------------------------------ Pallas kernels -------------------------------
def _embed_kernel(patches_ref, pw_ref, pb_ref, c_ref, temb_ref,
                  t1w_ref, t1b_ref, t2w_ref, t2b_ref, pos_ref, o_ref):
    """Fused: time-MLP + patch embed + (class + time + pos) additive embeds.

    patches: [B, N, 48]  pw: [48, D]bf16  c/temb: [B, D]  t*w: [D, D]bf16
    pos: [N, D]  ->  o: [B, N, D] f32
    """
    # time MLP on [B, D] (tiny)
    tm = jnp.dot(_bf16(temb_ref[...]), t1w_ref[...],
                 preferred_element_type=jnp.float32) + t1b_ref[...]
    tm = tm * jax.nn.sigmoid(tm)                       # SiLU, f32 on VPU/EUP
    tm = jnp.dot(_bf16(tm), t2w_ref[...],
                 preferred_element_type=jnp.float32) + t2b_ref[...]
    add = c_ref[...] + tm                              # [B, D] f32
    pos = pos_ref[...]                                 # [N, D] f32

    B = patches_ref.shape[0]
    for b in range(B):                                 # B is tiny & static
        x = _bf16(patches_ref[b])                      # [N, 48]
        hb = jnp.dot(x, pw_ref[...],
                     preferred_element_type=jnp.float32) + pb_ref[...]
        hb = hb + add[b:b + 1, :] + pos                # fused broadcast adds
        o_ref[b] = hb.astype(o_ref.dtype)


def _encoder_layer_kernel(h_ref, wqkv_ref, bqkv_ref, wo_ref, bo_ref,
                          ln1g_ref, ln1b_ref, ln2g_ref, ln2b_ref,
                          wff1_ref, bff1_ref, wff2_ref, bff2_ref, o_ref):
    """One pre-norm TransformerEncoderLayer for one batch element.

    h: [1, S, D] f32; weights bf16, biases/LN params f32.
    1/sqrt(head_dim) is pre-folded into the q columns of wqkv/bqkv.
    """
    S = h_ref.shape[1]
    D = EMBED_DIM

    x = h_ref[0].astype(jnp.float32)                   # [S, D] residual stream

    # ---- self-attention block (fused LN1 prologue) ----
    xn = _ln_f32(x, ln1g_ref[...], ln1b_ref[...])
    qkv = jnp.dot(_bf16(xn), wqkv_ref[...],
                  preferred_element_type=jnp.float32) + bqkv_ref[...]  # [S,3D]

    wo = wo_ref[...]                                   # [D, D] bf16
    o = jnp.zeros((S, D), jnp.float32)
    for hd in range(N_HEADS):
        lo = hd * HEAD_DIM
        hi = lo + HEAD_DIM
        q = qkv[:, lo:hi]                              # scale already folded
        k = qkv[:, D + lo:D + hi]
        v = qkv[:, 2 * D + lo:2 * D + hi]
        # scores = q @ k^T via dot_general (no explicit transpose)
        s = jax.lax.dot_general(_bf16(q), _bf16(k), (((1,), (1,)), ((), ())),
                                preferred_element_type=jnp.float32)  # [S, S]
        s = s - jnp.max(s, axis=-1, keepdims=True)
        p = jnp.exp(s)
        p = p * pl.reciprocal(jnp.sum(p, axis=-1, keepdims=True), approx=True)
        head = jnp.dot(_bf16(p), _bf16(v),
                       preferred_element_type=jnp.float32)           # [S, Dh]
        # merge heads by summing head @ Wo[rows of this head]  (== concat @ Wo)
        o = o + jnp.dot(_bf16(head), wo[lo:hi, :],
                        preferred_element_type=jnp.float32)
    o = o + bo_ref[...]
    h1 = x + o                                         # fused residual add

    # ---- feed-forward block (fused LN2 prologue + residual epilogue) ----
    h1n = _ln_f32(h1, ln2g_ref[...], ln2b_ref[...])
    y = jnp.dot(_bf16(h1n), wff1_ref[...],
                preferred_element_type=jnp.float32) + bff1_ref[...]
    y = jnp.maximum(y, 0.0)                            # ReLU (torch default)
    y = jnp.dot(_bf16(y), wff2_ref[...],
                preferred_element_type=jnp.float32) + bff2_ref[...]
    o_ref[0] = (h1 + y).astype(o_ref.dtype)


def _out_proj_kernel(x_ref, w_ref, b_ref, o_ref):
    """Lane-dense padded output projection: [TM, D] @ [D, 128] + b."""
    acc = jnp.dot(_bf16(x_ref[...]), w_ref[...],
                  preferred_element_type=jnp.float32) + b_ref[...]
    o_ref[...] = acc.astype(o_ref.dtype)


# ------------------------------ kernel wrappers -------------------------------
def embed_fused(patches, c_rows, t_emb, params):
    B = patches.shape[0]
    c2 = lambda i: (0, 0)
    c3 = lambda i: (0, 0, 0)
    return pl.pallas_call(
        _embed_kernel,
        out_shape=jax.ShapeDtypeStruct((B, N_PATCHES, EMBED_DIM), jnp.float32),
        grid=(1,),
        in_specs=[
            pl.BlockSpec((B, N_PATCHES, PATCH_DIM), c3),   # patches
            pl.BlockSpec((PATCH_DIM, EMBED_DIM), c2),      # patch_w (bf16)
            pl.BlockSpec((1, EMBED_DIM), c2),              # patch_b
            pl.BlockSpec((B, EMBED_DIM), c2),              # class rows
            pl.BlockSpec((B, EMBED_DIM), c2),              # sinusoidal t_emb
            pl.BlockSpec((EMBED_DIM, EMBED_DIM), c2),      # t1_w (bf16)
            pl.BlockSpec((1, EMBED_DIM), c2),              # t1_b
            pl.BlockSpec((EMBED_DIM, EMBED_DIM), c2),      # t2_w (bf16)
            pl.BlockSpec((1, EMBED_DIM), c2),              # t2_b
            pl.BlockSpec((N_PATCHES, EMBED_DIM), c2),      # pos_emb
        ],
        out_specs=pl.BlockSpec((B, N_PATCHES, EMBED_DIM), c3),
    )(patches, params["patch_w"], params["patch_b"], c_rows, t_emb,
      params["t1_w"], params["t1_b"], params["t2_w"], params["t2_b"],
      params["pos_emb"])


def encoder_layer_fused(h, p):
    B, S, D = h.shape
    const = lambda b: (0, 0)
    return pl.pallas_call(
        _encoder_layer_kernel,
        out_shape=jax.ShapeDtypeStruct((B, S, D), h.dtype),
        grid=(B,),
        in_specs=[
            pl.BlockSpec((1, S, D), lambda b: (b, 0, 0)),  # h
            pl.BlockSpec((D, 3 * D), const),               # in_proj_w (bf16)
            pl.BlockSpec((1, 3 * D), const),               # in_proj_b
            pl.BlockSpec((D, D), const),                   # out_proj_w (bf16)
            pl.BlockSpec((1, D), const),                   # out_proj_b
            pl.BlockSpec((1, D), const),                   # ln1_g
            pl.BlockSpec((1, D), const),                   # ln1_b
            pl.BlockSpec((1, D), const),                   # ln2_g
            pl.BlockSpec((1, D), const),                   # ln2_b
            pl.BlockSpec((D, FF_DIM), const),              # ff1_w (bf16)
            pl.BlockSpec((1, FF_DIM), const),              # ff1_b
            pl.BlockSpec((FF_DIM, D), const),              # ff2_w (bf16)
            pl.BlockSpec((1, D), const),                   # ff2_b
        ],
        out_specs=pl.BlockSpec((1, S, D), lambda b: (b, 0, 0)),
        compiler_params=pltpu.CompilerParams(
            dimension_semantics=("parallel",)),            # 2 TCs on v7x
    )(h, p["in_proj_w"], p["in_proj_b"], p["out_proj_w"], p["out_proj_b"],
      p["ln1_g"], p["ln1_b"], p["ln2_g"], p["ln2_b"],
      p["ff1_w"], p["ff1_b"], p["ff2_w"], p["ff2_b"])


def out_proj_padded(x, w_pad, b_pad, tm=64):
    M, D = x.shape
    Np = w_pad.shape[1]
    return pl.pallas_call(
        _out_proj_kernel,
        out_shape=jax.ShapeDtypeStruct((M, Np), jnp.float32),
        grid=(M // tm,),
        in_specs=[
            pl.BlockSpec((tm, D), lambda i: (i, 0)),
            pl.BlockSpec((D, Np), lambda i: (0, 0)),
            pl.BlockSpec((1, Np), lambda i: (0, 0)),
        ],
        out_specs=pl.BlockSpec((tm, Np), lambda i: (i, 0)),
        compiler_params=pltpu.CompilerParams(
            dimension_semantics=("parallel",)),
    )(x, w_pad, b_pad)


# ------------------------------ model pieces ---------------------------------
def sinusoidal_embedding(t, dim):
    half = dim // 2
    freq = jnp.exp(-math.log(10000.0) *
                   jnp.arange(half, dtype=jnp.float32) / (half - 1))
    args = t[:, None] * freq[None, :]
    return jnp.concatenate([jnp.sin(args), jnp.cos(args)], axis=-1)


def flow_transformer_forward(params, x, t, y):
    """x: [B, 3, 32, 32] (NCHW), t: [B] float, y: [B] int -> [B, 3, 32, 32]."""
    B = x.shape[0]

    # torch: x.unfold(2,P,P).unfold(3,P,P).contiguous().view(B, n_patches, -1)
    # Equivalent (including the channel-mixing flat view) to:
    patches = x.reshape(B, 3, P_GRID, PATCH, P_GRID, PATCH)
    patches = patches.transpose(0, 1, 2, 4, 3, 5)        # [B,3,8,8,4,4]
    patches = patches.reshape(B, N_PATCHES, PATCH_DIM)   # row-major reinterpret

    # tiny XLA glue: embedding gather + sinusoidal features (both [B, D])
    c_rows = params["class_emb"][y]                      # [B, D]
    t_emb = sinusoidal_embedding(t, EMBED_DIM)           # [B, D]

    # fused: patch embed + time-MLP + class/time/pos additive embeds
    h = embed_fused(patches, c_rows, t_emb, params)      # [B, N, D]

    # fused encoder layers (one pallas_call each)
    for layer_params in params["layers"]:
        h = encoder_layer_fused(h, layer_params)

    # lane-dense padded out_proj, then slice the 48 real columns
    out = out_proj_padded(h.reshape(B * N_PATCHES, EMBED_DIM),
                          params["out_w_pad"], params["out_b_pad"])
    out = out[:, :PATCH_DIM].reshape(B, N_PATCHES, PATCH_DIM)

    # torch: view(B,3,p,p,P,P).permute(0,1,2,4,3,5).view(B,3,32,32)
    out = out.reshape(B, 3, P_GRID, P_GRID, PATCH, PATCH)
    out = out.transpose(0, 1, 2, 4, 3, 5).reshape(B, 3, IMG, IMG)
    return out


# ------------------------------ parameters -----------------------------------
def init_params(key):
    ks = iter(jax.random.split(key, 16 + 16 * N_LAYERS))

    def rnd(shape, scale=0.02, dtype=jnp.float32):
        return (scale * jax.random.normal(next(ks), shape, jnp.float32)
                ).astype(dtype)

    params = {
        "patch_w": rnd((PATCH_DIM, EMBED_DIM), dtype=jnp.bfloat16),
        "patch_b": rnd((1, EMBED_DIM)),
        "class_emb": rnd((N_CLASSES, EMBED_DIM), scale=1.0),
        "t1_w": rnd((EMBED_DIM, EMBED_DIM), dtype=jnp.bfloat16),
        "t1_b": rnd((1, EMBED_DIM)),
        "t2_w": rnd((EMBED_DIM, EMBED_DIM), dtype=jnp.bfloat16),
        "t2_b": rnd((1, EMBED_DIM)),
        "pos_emb": rnd((N_PATCHES, EMBED_DIM), scale=1.0),
        "layers": [],
    }

    # final projection, zero-padded to 128 output lanes for dense stores
    out_w = rnd((EMBED_DIM, PATCH_DIM))
    out_b = rnd((1, PATCH_DIM))
    params["out_w_pad"] = (jnp.zeros((EMBED_DIM, OUT_PAD), jnp.float32)
                           .at[:, :PATCH_DIM].set(out_w)
                           .astype(jnp.bfloat16))
    params["out_b_pad"] = (jnp.zeros((1, OUT_PAD), jnp.float32)
                           .at[:, :PATCH_DIM].set(out_b))

    attn_scale = 1.0 / math.sqrt(HEAD_DIM)
    for _ in range(N_LAYERS):
        in_w = rnd((EMBED_DIM, 3 * EMBED_DIM))
        in_b = rnd((1, 3 * EMBED_DIM))
        # fold 1/sqrt(head_dim) into the q block (torch scales q = proj+bias)
        in_w = in_w.at[:, :EMBED_DIM].multiply(attn_scale)
        in_b = in_b.at[:, :EMBED_DIM].multiply(attn_scale)
        params["layers"].append({
            "ln1_g": jnp.ones((1, EMBED_DIM), jnp.float32),
            "ln1_b": jnp.zeros((1, EMBED_DIM), jnp.float32),
            "in_proj_w": in_w.astype(jnp.bfloat16),
            "in_proj_b": in_b,
            "out_proj_w": rnd((EMBED_DIM, EMBED_DIM), dtype=jnp.bfloat16),
            "out_proj_b": rnd((1, EMBED_DIM)),
            "ln2_g": jnp.ones((1, EMBED_DIM), jnp.float32),
            "ln2_b": jnp.zeros((1, EMBED_DIM), jnp.float32),
            "ff1_w": rnd((EMBED_DIM, FF_DIM), dtype=jnp.bfloat16),
            "ff1_b": rnd((1, FF_DIM)),
            "ff2_w": rnd((FF_DIM, EMBED_DIM), dtype=jnp.bfloat16),
            "ff2_b": rnd((1, EMBED_DIM)),
        })
    return params


# --------------------------------- main ---------------------------------------
if __name__ == "__main__":
    key = jax.random.PRNGKey(0)
    k_param, k_x, k_t, k_y = jax.random.split(key, 4)

    params = init_params(k_param)

    B = 2
    x = jax.random.normal(k_x, (B, 3, IMG, IMG), jnp.float32)
    t = jax.random.uniform(k_t, (B,), jnp.float32)
    y = jax.random.randint(k_y, (B,), 0, N_CLASSES)

    fwd = jax.jit(flow_transformer_forward)
    out = jax.block_until_ready(fwd(params, x, t, y))

    assert out.shape == (B, 3, IMG, IMG), out.shape
    assert jnp.all(jnp.isfinite(out))
    print("KERNEL_OK")
</pallas_src>

<mosaic_0001>
module attributes {stable_mosaic.version = 11 : i64} {
  func.func @_embed_kernel(%arg0: i32, %arg1: memref<2x64x48xf32, #tpu.memory_space<vmem>>, %arg2: memref<48x128xbf16, #tpu.memory_space<vmem>>, %arg3: memref<1x128xf32, #tpu.memory_space<vmem>>, %arg4: memref<2x128xf32, #tpu.memory_space<vmem>>, %arg5: memref<2x128xf32, #tpu.memory_space<vmem>>, %arg6: memref<128x128xbf16, #tpu.memory_space<vmem>>, %arg7: memref<1x128xf32, #tpu.memory_space<vmem>>, %arg8: memref<128x128xbf16, #tpu.memory_space<vmem>>, %arg9: memref<1x128xf32, #tpu.memory_space<vmem>>, %arg10: memref<64x128xf32, #tpu.memory_space<vmem>>, %arg11: memref<2x64x128xf32, #tpu.memory_space<vmem>>) attributes {dimension_semantics = [#tpu.dimension_semantics<arbitrary>], iteration_bounds = array<i64: 1>, scalar_prefetch = 0 : i64, scratch_operands = 0 : i64, tpu.core_type = #tpu.core_type<tc>, window_params = [{pipeline_mode = #tpu.pipeline_mode<synchronous>, transform_indices = @transform_0, window_bounds = array<i64: 2, 64, 48>}, {pipeline_mode = #tpu.pipeline_mode<synchronous>, transform_indices = @transform_1, window_bounds = array<i64: 48, 128>}, {pipeline_mode = #tpu.pipeline_mode<synchronous>, transform_indices = @transform_2, window_bounds = array<i64: 1, 128>}, {pipeline_mode = #tpu.pipeline_mode<synchronous>, transform_indices = @transform_3, window_bounds = array<i64: 2, 128>}, {pipeline_mode = #tpu.pipeline_mode<synchronous>, transform_indices = @transform_4, window_bounds = array<i64: 2, 128>}, {pipeline_mode = #tpu.pipeline_mode<synchronous>, transform_indices = @transform_5, window_bounds = array<i64: 128, 128>}, {pipeline_mode = #tpu.pipeline_mode<synchronous>, transform_indices = @transform_6, window_bounds = array<i64: 1, 128>}, {pipeline_mode = #tpu.pipeline_mode<synchronous>, transform_indices = @transform_7, window_bounds = array<i64: 128, 128>}, {pipeline_mode = #tpu.pipeline_mode<synchronous>, transform_indices = @transform_8, window_bounds = array<i64: 1, 128>}, {pipeline_mode = #tpu.pipeline_mode<synchronous>, transform_indices = @transform_9, window_bounds = array<i64: 64, 128>}, {pipeline_mode = #tpu.pipeline_mode<synchronous>, transform_indices = @transform_10, window_bounds = array<i64: 2, 64, 128>}]} {
    %c0 = arith.constant 0 : index
    %c0_0 = arith.constant 0 : index
    %0 = vector.load %arg5[%c0, %c0_0] : memref<2x128xf32, #tpu.memory_space<vmem>>, vector<2x128xf32>
    %1 = arith.truncf %0 : vector<2x128xf32> to vector<2x128xbf16>
    %c0_1 = arith.constant 0 : index
    %c0_2 = arith.constant 0 : index
    %2 = vector.load %arg6[%c0_1, %c0_2] : memref<128x128xbf16, #tpu.memory_space<vmem>>, vector<128x128xbf16>
    %cst = arith.constant dense<0.000000e+00> : vector<2x128xf32>
    %3 = tpu.matmul %1, %2, %cst {dimension_numbers = #tpu.dot_dimension_numbers<[1], [0], [0], [1], [0, 0, 1, 1], [], []>} : vector<2x128xbf16>, vector<128x128xbf16>, vector<2x128xf32> -> vector<2x128xf32>
    %c0_3 = arith.constant 0 : index
    %c0_4 = arith.constant 0 : index
    %4 = vector.load %arg7[%c0_3, %c0_4] : memref<1x128xf32, #tpu.memory_space<vmem>>, vector<1x128xf32>
    %5 = vector.broadcast %4 : vector<1x128xf32> to vector<2x128xf32>
    %6 = arith.addf %3, %5 : vector<2x128xf32>
    %7 = arith.negf %6 : vector<2x128xf32>
    %8 = math.exp %7 : vector<2x128xf32>
    %cst_5 = arith.constant 1.000000e+00 : f32
    %9 = vector.broadcast %cst_5 : f32 to vector<2x128xf32>
    %10 = arith.addf %9, %8 : vector<2x128xf32>
    %11 = arith.divf %9, %10 : vector<2x128xf32>
    %12 = arith.mulf %6, %11 : vector<2x128xf32>
    %13 = arith.truncf %12 : vector<2x128xf32> to vector<2x128xbf16>
    %c0_6 = arith.constant 0 : index
    %c0_7 = arith.constant 0 : index
    %14 = vector.load %arg8[%c0_6, %c0_7] : memref<128x128xbf16, #tpu.memory_space<vmem>>, vector<128x128xbf16>
    %cst_8 = arith.constant dense<0.000000e+00> : vector<2x128xf32>
    %15 = tpu.matmul %13, %14, %cst_8 {dimension_numbers = #tpu.dot_dimension_numbers<[1], [0], [0], [1], [0, 0, 1, 1], [], []>} : vector<2x128xbf16>, vector<128x128xbf16>, vector<2x128xf32> -> vector<2x128xf32>
    %c0_9 = arith.constant 0 : index
    %c0_10 = arith.constant 0 : index
    %16 = vector.load %arg9[%c0_9, %c0_10] : memref<1x128xf32, #tpu.memory_space<vmem>>, vector<1x128xf32>
    %17 = vector.broadcast %16 : vector<1x128xf32> to vector<2x128xf32>
    %18 = arith.addf %15, %17 : vector<2x128xf32>
    %c0_11 = arith.constant 0 : index
    %c0_12 = arith.constant 0 : index
    %19 = vector.load %arg4[%c0_11, %c0_12] : memref<2x128xf32, #tpu.memory_space<vmem>>, vector<2x128xf32>
    %20 = arith.addf %19, %18 : vector<2x128xf32>
    %c0_13 = arith.constant 0 : index
    %c0_14 = arith.constant 0 : index
    %21 = vector.load %arg10[%c0_13, %c0_14] : memref<64x128xf32, #tpu.memory_space<vmem>>, vector<64x128xf32>
    %c0_15 = arith.constant 0 : index
    %c0_16 = arith.constant 0 : index
    %c0_17 = arith.constant 0 : index
    %22 = vector.load %arg1[%c0_15, %c0_16, %c0_17] : memref<2x64x48xf32, #tpu.memory_space<vmem>>, vector<1x64x48xf32>
    %23 = vector.shape_cast %22 : vector<1x64x48xf32> to vector<64x48xf32>
    %24 = arith.truncf %23 : vector<64x48xf32> to vector<64x48xbf16>
    %c0_18 = arith.constant 0 : index
    %c0_19 = arith.constant 0 : index
    %25 = vector.load %arg2[%c0_18, %c0_19] : memref<48x128xbf16, #tpu.memory_space<vmem>>, vector<48x128xbf16>
    %cst_20 = arith.constant dense<0.000000e+00> : vector<64x128xf32>
    %26 = tpu.matmul %24, %25, %cst_20 {dimension_numbers = #tpu.dot_dimension_numbers<[1], [0], [0], [1], [0, 0, 1, 1], [], []>} : vector<64x48xbf16>, vector<48x128xbf16>, vector<64x128xf32> -> vector<64x128xf32>
    %c0_21 = arith.constant 0 : index
    %c0_22 = arith.constant 0 : index
    %27 = vector.load %arg3[%c0_21, %c0_22] : memref<1x128xf32, #tpu.memory_space<vmem>>, vector<1x128xf32>
    %28 = vector.broadcast %27 : vector<1x128xf32> to vector<64x128xf32>
    %29 = arith.addf %26, %28 : vector<64x128xf32>
    %30 = vector.extract_strided_slice %20 {offsets = [0, 0], sizes = [1, 128], strides = [1, 1]} : vector<2x128xf32> to vector<1x128xf32>
    %31 = vector.broadcast %30 : vector<1x128xf32> to vector<64x128xf32>
    %32 = arith.addf %29, %31 : vector<64x128xf32>
    %33 = arith.addf %32, %21 : vector<64x128xf32>
    %c0_23 = arith.constant 0 : index
    %c0_24 = arith.constant 0 : index
    %c0_25 = arith.constant 0 : index
    %34 = vector.load %arg11[%c0_23, %c0_24, %c0_25] : memref<2x64x128xf32, #tpu.memory_space<vmem>>, vector<1x64x128xf32>
    %35 = vector.shape_cast %34 : vector<1x64x128xf32> to vector<64x128xf32>
    %36 = vector.shape_cast %33 : vector<64x128xf32> to vector<1x64x128xf32>
    tpu.vector_store %arg11[%c0_23, %c0_24, %c0_25], %36 {strides = array<i32>} : memref<2x64x128xf32, #tpu.memory_space<vmem>>, vector<1x64x128xf32>,
    %c1 = arith.constant 1 : index
    %c0_26 = arith.constant 0 : index
    %c0_27 = arith.constant 0 : index
    %37 = vector.load %arg1[%c1, %c0_26, %c0_27] : memref<2x64x48xf32, #tpu.memory_space<vmem>>, vector<1x64x48xf32>
    %38 = vector.shape_cast %37 : vector<1x64x48xf32> to vector<64x48xf32>
    %39 = arith.truncf %38 : vector<64x48xf32> to vector<64x48xbf16>
    %c0_28 = arith.constant 0 : index
    %c0_29 = arith.constant 0 : index
    %40 = vector.load %arg2[%c0_28, %c0_29] : memref<48x128xbf16, #tpu.memory_space<vmem>>, vector<48x128xbf16>
    %cst_30 = arith.constant dense<0.000000e+00> : vector<64x128xf32>
    %41 = tpu.matmul %39, %40, %cst_30 {dimension_numbers = #tpu.dot_dimension_numbers<[1], [0], [0], [1], [0, 0, 1, 1], [], []>} : vector<64x48xbf16>, vector<48x128xbf16>, vector<64x128xf32> -> vector<64x128xf32>
    %c0_31 = arith.constant 0 : index
    %c0_32 = arith.constant 0 : index
    %42 = vector.load %arg3[%c0_31, %c0_32] : memref<1x128xf32, #tpu.memory_space<vmem>>, vector<1x128xf32>
    %43 = vector.broadcast %42 : vector<1x128xf32> to vector<64x128xf32>
    %44 = arith.addf %41, %43 : vector<64x128xf32>
    %45 = vector.extract_strided_slice %20 {offsets = [1, 0], sizes = [1, 128], strides = [1, 1]} : vector<2x128xf32> to vector<1x128xf32>
    %46 = vector.broadcast %45 : vector<1x128xf32> to vector<64x128xf32>
    %47 = arith.addf %44, %46 : vector<64x128xf32>
    %48 = arith.addf %47, %21 : vector<64x128xf32>
    %c1_33 = arith.constant 1 : index
    %c0_34 = arith.constant 0 : index
    %c0_35 = arith.constant 0 : index
    %49 = vector.load %arg11[%c1_33, %c0_34, %c0_35] : memref<2x64x128xf32, #tpu.memory_space<vmem>>, vector<1x64x128xf32>
    %50 = vector.shape_cast %49 : vector<1x64x128xf32> to vector<64x128xf32>
    %51 = vector.shape_cast %48 : vector<64x128xf32> to vector<1x64x128xf32>
    tpu.vector_store %arg11[%c1_33, %c0_34, %c0_35], %51 {strides = array<i32>} : memref<2x64x128xf32, #tpu.memory_space<vmem>>, vector<1x64x128xf32>,
    return
  }
  func.func @transform_0(%arg0: i32) -> (i32, i32, i32) {
    %c0_i32 = arith.constant 0 : i32
    %c0_i32_0 = arith.constant 0 : i32
    %c0_i32_1 = arith.constant 0 : i32
    %c0_i32_2 = arith.constant 0 : i32
    return %c0_i32, %c0_i32_0, %c0_i32_1 : i32, i32, i32
  }
  func.func @transform_1(%arg0: i32) -> (i32, i32) {
    %c0_i32 = arith.constant 0 : i32
    %c0_i32_0 = arith.constant 0 : i32
    %c0_i32_1 = arith.constant 0 : i32
    return %c0_i32, %c0_i32_0 : i32, i32
  }
  func.func @transform_2(%arg0: i32) -> (i32, i32) {
    %c0_i32 = arith.constant 0 : i32
    %c0_i32_0 = arith.constant 0 : i32
    %c0_i32_1 = arith.constant 0 : i32
    return %c0_i32, %c0_i32_0 : i32, i32
  }
  func.func @transform_3(%arg0: i32) -> (i32, i32) {
    %c0_i32 = arith.constant 0 : i32
    %c0_i32_0 = arith.constant 0 : i32
    %c0_i32_1 = arith.constant 0 : i32
    return %c0_i32, %c0_i32_0 : i32, i32
  }
  func.func @transform_4(%arg0: i32) -> (i32, i32) {
    %c0_i32 = arith.constant 0 : i32
    %c0_i32_0 = arith.constant 0 : i32
    %c0_i32_1 = arith.constant 0 : i32
    return %c0_i32, %c0_i32_0 : i32, i32
  }
  func.func @transform_5(%arg0: i32) -> (i32, i32) {
    %c0_i32 = arith.constant 0 : i32
    %c0_i32_0 = arith.constant 0 : i32
    %c0_i32_1 = arith.constant 0 : i32
    return %c0_i32, %c0_i32_0 : i32, i32
  }
  func.func @transform_6(%arg0: i32) -> (i32, i32) {
    %c0_i32 = arith.constant 0 : i32
    %c0_i32_0 = arith.constant 0 : i32
    %c0_i32_1 = arith.constant 0 : i32
    return %c0_i32, %c0_i32_0 : i32, i32
  }
  func.func @transform_7(%arg0: i32) -> (i32, i32) {
    %c0_i32 = arith.constant 0 : i32
    %c0_i32_0 = arith.constant 0 : i32
    %c0_i32_1 = arith.constant 0 : i32
    return %c0_i32, %c0_i32_0 : i32, i32
  }
  func.func @transform_8(%arg0: i32) -> (i32, i32) {
    %c0_i32 = arith.constant 0 : i32
    %c0_i32_0 = arith.constant 0 : i32
    %c0_i32_1 = arith.constant 0 : i32
    return %c0_i32, %c0_i32_0 : i32, i32
  }
  func.func @transform_9(%arg0: i32) -> (i32, i32) {
    %c0_i32 = arith.constant 0 : i32
    %c0_i32_0 = arith.constant 0 : i32
    %c0_i32_1 = arith.constant 0 : i32
    return %c0_i32, %c0_i32_0 : i32, i32
  }
  func.func @transform_10(%arg0: i32) -> (i32, i32, i32) {
    %c0_i32 = arith.constant 0 : i32
    %c0_i32_0 = arith.constant 0 : i32
    %c0_i32_1 = arith.constant 0 : i32
    %c0_i32_2 = arith.constant 0 : i32
    return %c0_i32, %c0_i32_0, %c0_i32_1 : i32, i32, i32
  }
}

module attributes {stable_mosaic.version = 11 : i64} {
  func.func @_encoder_layer_kernel(%arg0: i32, %arg1: memref<1x64x128xf32, #tpu.memory_space<vmem>>, %arg2: memref<128x384xbf16, #tpu.memory_space<vmem>>, %arg3: memref<1x384xf32, #tpu.memory_space<vmem>>, %arg4: memref<128x128xbf16, #tpu.memory_space<vmem>>, %arg5: memref<1x128xf32, #tpu.memory_space<vmem>>, %arg6: memref<1x128xf32, #tpu.memory_space<vmem>>, %arg7: memref<1x128xf32, #tpu.memory_space<vmem>>, %arg8: memref<1x128xf32, #tpu.memory_space<vmem>>, %arg9: memref<1x128xf32, #tpu.memory_space<vmem>>, %arg10: memref<128x256xbf16, #tpu.memory_space<vmem>>, %arg11: memref<1x256xf32, #tpu.memory_space<vmem>>, %arg12: memref<256x128xbf16, #tpu.memory_space<vmem>>, %arg13: memref<1x128xf32, #tpu.memory_space<vmem>>, %arg14: memref<1x64x128xf32, #tpu.memory_space<vmem>>) attributes {dimension_semantics = [#tpu.dimension_semantics<parallel>], iteration_bounds = array<i64: 2>, scalar_prefetch = 0 : i64, scratch_operands = 0 : i64, tpu.core_type = #tpu.core_type<tc>, window_params = [{transform_indices = @transform_0, window_bounds = array<i64: 1, 64, 128>}, {pipeline_mode = #tpu.pipeline_mode<synchronous>, transform_indices = @transform_1, window_bounds = array<i64: 128, 384>}, {pipeline_mode = #tpu.pipeline_mode<synchronous>, transform_indices = @transform_2, window_bounds = array<i64: 1, 384>}, {pipeline_mode = #tpu.pipeline_mode<synchronous>, transform_indices = @transform_3, window_bounds = array<i64: 128, 128>}, {pipeline_mode = #tpu.pipeline_mode<synchronous>, transform_indices = @transform_4, window_bounds = array<i64: 1, 128>}, {pipeline_mode = #tpu.pipeline_mode<synchronous>, transform_indices = @transform_5, window_bounds = array<i64: 1, 128>}, {pipeline_mode = #tpu.pipeline_mode<synchronous>, transform_indices = @transform_6, window_bounds = array<i64: 1, 128>}, {pipeline_mode = #tpu.pipeline_mode<synchronous>, transform_indices = @transform_7, window_bounds = array<i64: 1, 128>}, {pipeline_mode = #tpu.pipeline_mode<synchronous>, transform_indices = @transform_8, window_bounds = array<i64: 1, 128>}, {pipeline_mode = #tpu.pipeline_mode<synchronous>, transform_indices = @transform_9, window_bounds = array<i64: 128, 256>}, {pipeline_mode = #tpu.pipeline_mode<synchronous>, transform_indices = @transform_10, window_bounds = array<i64: 1, 256>}, {pipeline_mode = #tpu.pipeline_mode<synchronous>, transform_indices = @transform_11, window_bounds = array<i64: 256, 128>}, {pipeline_mode = #tpu.pipeline_mode<synchronous>, transform_indices = @transform_12, window_bounds = array<i64: 1, 128>}, {transform_indices = @transform_13, window_bounds = array<i64: 1, 64, 128>}]} {
    %c0 = arith.constant 0 : index
    %c0_0 = arith.constant 0 : index
    %c0_1 = arith.constant 0 : index
    %0 = vector.load %arg1[%c0, %c0_0, %c0_1] : memref<1x64x128xf32, #tpu.memory_space<vmem>>, vector<1x64x128xf32>
    %1 = vector.shape_cast %0 : vector<1x64x128xf32> to vector<64x128xf32>
    %c0_2 = arith.constant 0 : index
    %c0_3 = arith.constant 0 : index
    %2 = vector.load %arg6[%c0_2, %c0_3] : memref<1x128xf32, #tpu.memory_space<vmem>>, vector<1x128xf32>
    %c0_4 = arith.constant 0 : index
    %c0_5 = arith.constant 0 : index
    %3 = vector.load %arg7[%c0_4, %c0_5] : memref<1x128xf32, #tpu.memory_space<vmem>>, vector<1x128xf32>
    %cst = arith.constant dense<0.000000e+00> : vector<64xf32>
    %4 = vector.multi_reduction <add>, %1, %cst [1] : vector<64x128xf32> to vector<64xf32>
    %5 = vector.shape_cast %4 : vector<64xf32> to vector<64x1xf32>
    %cst_6 = arith.constant 1.280000e+02 : f32
    %6 = vector.broadcast %cst_6 : f32 to vector<64x1xf32>
    %7 = arith.divf %5, %6 : vector<64x1xf32>
    %8 = vector.broadcast %7 : vector<64x1xf32> to vector<64x128xf32>
    %9 = arith.subf %1, %8 : vector<64x128xf32>
    %10 = arith.mulf %9, %9 : vector<64x128xf32>
    %cst_7 = arith.constant dense<0.000000e+00> : vector<64xf32>
    %11 = vector.multi_reduction <add>, %10, %cst_7 [1] : vector<64x128xf32> to vector<64xf32>
    %12 = vector.shape_cast %11 : vector<64xf32> to vector<64x1xf32>
    %cst_8 = arith.constant 1.280000e+02 : f32
    %13 = vector.broadcast %cst_8 : f32 to vector<64x1xf32>
    %14 = arith.divf %12, %13 : vector<64x1xf32>
    %15 = vector.broadcast %7 : vector<64x1xf32> to vector<64x128xf32>
    %16 = arith.subf %1, %15 : vector<64x128xf32>
    %cst_9 = arith.constant 9.99999974E-6 : f32
    %17 = vector.broadcast %cst_9 : f32 to vector<64x1xf32>
    %18 = arith.addf %14, %17 : vector<64x1xf32>
    %19 = math.rsqrt %18 : vector<64x1xf32>
    %20 = vector.broadcast %19 : vector<64x1xf32> to vector<64x128xf32>
    %21 = arith.mulf %16, %20 : vector<64x128xf32>
    %22 = vector.broadcast %2 : vector<1x128xf32> to vector<64x128xf32>
    %23 = arith.mulf %21, %22 : vector<64x128xf32>
    %24 = vector.broadcast %3 : vector<1x128xf32> to vector<64x128xf32>
    %25 = arith.addf %23, %24 : vector<64x128xf32>
    %26 = arith.truncf %25 : vector<64x128xf32> to vector<64x128xbf16>
    %c0_10 = arith.constant 0 : index
    %c0_11 = arith.constant 0 : index
    %27 = vector.load %arg2[%c0_10, %c0_11] : memref<128x384xbf16, #tpu.memory_space<vmem>>, vector<128x384xbf16>
    %cst_12 = arith.constant dense<0.000000e+00> : vector<64x384xf32>
    %28 = tpu.matmul %26, %27, %cst_12 {dimension_numbers = #tpu.dot_dimension_numbers<[1], [0], [0], [1], [0, 0, 1, 1], [], []>} : vector<64x128xbf16>, vector<128x384xbf16>, vector<64x384xf32> -> vector<64x384xf32>
    %c0_13 = arith.constant 0 : index
    %c0_14 = arith.constant 0 : index
    %29 = vector.load %arg3[%c0_13, %c0_14] : memref<1x384xf32, #tpu.memory_space<vmem>>, vector<1x384xf32>
    %30 = vector.broadcast %29 : vector<1x384xf32> to vector<64x384xf32>
    %31 = arith.addf %28, %30 : vector<64x384xf32>
    %c0_15 = arith.constant 0 : index
    %c0_16 = arith.constant 0 : index
    %32 = vector.load %arg4[%c0_15, %c0_16] : memref<128x128xbf16, #tpu.memory_space<vmem>>, vector<128x128xbf16>
    %cst_17 = arith.constant 0.000000e+00 : f32
    %33 = vector.broadcast %cst_17 : f32 to vector<64x128xf32>
    %34 = vector.extract_strided_slice %31 {offsets = [0, 0], sizes = [64, 32], strides = [1, 1]} : vector<64x384xf32> to vector<64x32xf32>
    %35 = vector.extract_strided_slice %31 {offsets = [0, 128], sizes = [64, 32], strides = [1, 1]} : vector<64x384xf32> to vector<64x32xf32>
    %36 = vector.extract_strided_slice %31 {offsets = [0, 256], sizes = [64, 32], strides = [1, 1]} : vector<64x384xf32> to vector<64x32xf32>
    %37 = arith.truncf %34 : vector<64x32xf32> to vector<64x32xbf16>
    %38 = arith.truncf %35 : vector<64x32xf32> to vector<64x32xbf16>
    %cst_18 = arith.constant dense<0.000000e+00> : vector<64x64xf32>
    %39 = tpu.matmul %37, %38, %cst_18 {dimension_numbers = #tpu.dot_dimension_numbers<[1], [1], [0], [0], [0, 0, 1, 0], [], []>} : vector<64x32xbf16>, vector<64x32xbf16>, vector<64x64xf32> -> vector<64x64xf32>
    %cst_19 = arith.constant dense<0xFF800000> : vector<64xf32>
    %40 = vector.multi_reduction <maximumf>, %39, %cst_19 [1] : vector<64x64xf32> to vector<64xf32>
    %41 = vector.shape_cast %40 : vector<64xf32> to vector<64x1xf32>
    %42 = vector.broadcast %41 : vector<64x1xf32> to vector<64x64xf32>
    %43 = arith.subf %39, %42 : vector<64x64xf32>
    %44 = math.exp %43 : vector<64x64xf32>
    %cst_20 = arith.constant dense<0.000000e+00> : vector<64xf32>
    %45 = vector.multi_reduction <add>, %44, %cst_20 [1] : vector<64x64xf32> to vector<64xf32>
    %46 = vector.shape_cast %45 : vector<64xf32> to vector<64x1xf32>
    %47 = tpu.reciprocal %46 {approx = true} : vector<64x1xf32> -> vector<64x1xf32>
    %48 = vector.broadcast %47 : vector<64x1xf32> to vector<64x64xf32>
    %49 = arith.mulf %44, %48 : vector<64x64xf32>
    %50 = arith.truncf %49 : vector<64x64xf32> to vector<64x64xbf16>
    %51 = arith.truncf %36 : vector<64x32xf32> to vector<64x32xbf16>
    %cst_21 = arith.constant dense<0.000000e+00> : vector<64x32xf32>
    %52 = tpu.matmul %50, %51, %cst_21 {dimension_numbers = #tpu.dot_dimension_numbers<[1], [0], [0], [1], [0, 0, 1, 1], [], []>} : vector<64x64xbf16>, vector<64x32xbf16>, vector<64x32xf32> -> vector<64x32xf32>
    %53 = arith.truncf %52 : vector<64x32xf32> to vector<64x32xbf16>
    %54 = vector.extract_strided_slice %32 {offsets = [0, 0], sizes = [32, 128], strides = [1, 1]} : vector<128x128xbf16> to vector<32x128xbf16>
    %cst_22 = arith.constant dense<0.000000e+00> : vector<64x128xf32>
    %55 = tpu.matmul %53, %54, %cst_22 {dimension_numbers = #tpu.dot_dimension_numbers<[1], [0], [0], [1], [0, 0, 1, 1], [], []>} : vector<64x32xbf16>, vector<32x128xbf16>, vector<64x128xf32> -> vector<64x128xf32>
    %56 = arith.addf %33, %55 : vector<64x128xf32>
    %57 = vector.extract_strided_slice %31 {offsets = [0, 32], sizes = [64, 32], strides = [1, 1]} : vector<64x384xf32> to vector<64x32xf32>
    %58 = vector.extract_strided_slice %31 {offsets = [0, 160], sizes = [64, 32], strides = [1, 1]} : vector<64x384xf32> to vector<64x32xf32>
    %59 = vector.extract_strided_slice %31 {offsets = [0, 288], sizes = [64, 32], strides = [1, 1]} : vector<64x384xf32> to vector<64x32xf32>
    %60 = arith.truncf %57 : vector<64x32xf32> to vector<64x32xbf16>
    %61 = arith.truncf %58 : vector<64x32xf32> to vector<64x32xbf16>
    %cst_23 = arith.constant dense<0.000000e+00> : vector<64x64xf32>
    %62 = tpu.matmul %60, %61, %cst_23 {dimension_numbers = #tpu.dot_dimension_numbers<[1], [1], [0], [0], [0, 0, 1, 0], [], []>} : vector<64x32xbf16>, vector<64x32xbf16>, vector<64x64xf32> -> vector<64x64xf32>
    %cst_24 = arith.constant dense<0xFF800000> : vector<64xf32>
    %63 = vector.multi_reduction <maximumf>, %62, %cst_24 [1] : vector<64x64xf32> to vector<64xf32>
    %64 = vector.shape_cast %63 : vector<64xf32> to vector<64x1xf32>
    %65 = vector.broadcast %64 : vector<64x1xf32> to vector<64x64xf32>
    %66 = arith.subf %62, %65 : vector<64x64xf32>
    %67 = math.exp %66 : vector<64x64xf32>
    %cst_25 = arith.constant dense<0.000000e+00> : vector<64xf32>
    %68 = vector.multi_reduction <add>, %67, %cst_25 [1] : vector<64x64xf32> to vector<64xf32>
    %69 = vector.shape_cast %68 : vector<64xf32> to vector<64x1xf32>
    %70 = tpu.reciprocal %69 {approx = true} : vector<64x1xf32> -> vector<64x1xf32>
    %71 = vector.broadcast %70 : vector<64x1xf32> to vector<64x64xf32>
    %72 = arith.mulf %67, %71 : vector<64x64xf32>
    %73 = arith.truncf %72 : vector<64x64xf32> to vector<64x64xbf16>
    %74 = arith.truncf %59 : vector<64x32xf32> to vector<64x32xbf16>
    %cst_26 = arith.constant dense<0.000000e+00> : vector<64x32xf32>
    %75 = tpu.matmul %73, %74, %cst_26 {dimension_numbers = #tpu.dot_dimension_numbers<[1], [0], [0], [1], [0, 0, 1, 1], [], []>} : vector<64x64xbf16>, vector<64x32xbf16>, vector<64x32xf32> -> vector<64x32xf32>
    %76 = arith.truncf %75 : vector<64x32xf32> to vector<64x32xbf16>
    %77 = vector.extract_strided_slice %32 {offsets = [32, 0], sizes = [32, 128], strides = [1, 1]} : vector<128x128xbf16> to vector<32x128xbf16>
    %cst_27 = arith.constant dense<0.000000e+00> : vector<64x128xf32>
    %78 = tpu.matmul %76, %77, %cst_27 {dimension_numbers = #tpu.dot_dimension_numbers<[1], [0], [0], [1], [0, 0, 1, 1], [], []>} : vector<64x32xbf16>, vector<32x128xbf16>, vector<64x128xf32> -> vector<64x128xf32>
    %79 = arith.addf %56, %78 : vector<64x128xf32>
    %80 = vector.extract_strided_slice %31 {offsets = [0, 64], sizes = [64, 32], strides = [1, 1]} : vector<64x384xf32> to vector<64x32xf32>
    %81 = vector.extract_strided_slice %31 {offsets = [0, 192], sizes = [64, 32], strides = [1, 1]} : vector<64x384xf32> to vector<64x32xf32>
    %82 = vector.extract_strided_slice %31 {offsets = [0, 320], sizes = [64, 32], strides = [1, 1]} : vector<64x384xf32> to vector<64x32xf32>
    %83 = arith.truncf %80 : vector<64x32xf32> to vector<64x32xbf16>
    %84 = arith.truncf %81 : vector<64x32xf32> to vector<64x32xbf16>
    %cst_28 = arith.constant dense<0.000000e+00> : vector<64x64xf32>
    %85 = tpu.matmul %83, %84, %cst_28 {dimension_numbers = #tpu.dot_dimension_numbers<[1], [1], [0], [0], [0, 0, 1, 0], [], []>} : vector<64x32xbf16>, vector<64x32xbf16>, vector<64x64xf32> -> vector<64x64xf32>
    %cst_29 = arith.constant dense<0xFF800000> : vector<64xf32>
    %86 = vector.multi_reduction <maximumf>, %85, %cst_29 [1] : vector<64x64xf32> to vector<64xf32>
    %87 = vector.shape_cast %86 : vector<64xf32> to vector<64x1xf32>
    %88 = vector.broadcast %87 : vector<64x1xf32> to vector<64x64xf32>
    %89 = arith.subf %85, %88 : vector<64x64xf32>
    %90 = math.exp %89 : vector<64x64xf32>
    %cst_30 = arith.constant dense<0.000000e+00> : vector<64xf32>
    %91 = vector.multi_reduction <add>, %90, %cst_30 [1] : vector<64x64xf32> to vector<64xf32>
    %92 = vector.shape_cast %91 : vector<64xf32> to vector<64x1xf32>
    %93 = tpu.reciprocal %92 {approx = true} : vector<64x1xf32> -> vector<64x1xf32>
    %94 = vector.broadcast %93 : vector<64x1xf32> to vector<64x64xf32>
    %95 = arith.mulf %90, %94 : vector<64x64xf32>
    %96 = arith.truncf %95 : vector<64x64xf32> to vector<64x64xbf16>
    %97 = arith.truncf %82 : vector<64x32xf32> to vector<64x32xbf16>
    %cst_31 = arith.constant dense<0.000000e+00> : vector<64x32xf32>
    %98 = tpu.matmul %96, %97, %cst_31 {dimension_numbers = #tpu.dot_dimension_numbers<[1], [0], [0], [1], [0, 0, 1, 1], [], []>} : vector<64x64xbf16>, vector<64x32xbf16>, vector<64x32xf32> -> vector<64x32xf32>
    %99 = arith.truncf %98 : vector<64x32xf32> to vector<64x32xbf16>
    %100 = vector.extract_strided_slice %32 {offsets = [64, 0], sizes = [32, 128], strides = [1, 1]} : vector<128x128xbf16> to vector<32x128xbf16>
    %cst_32 = arith.constant dense<0.000000e+00> : vector<64x128xf32>
    %101 = tpu.matmul %99, %100, %cst_32 {dimension_numbers = #tpu.dot_dimension_numbers<[1], [0], [0], [1], [0, 0, 1, 1], [], []>} : vector<64x32xbf16>, vector<32x128xbf16>, vector<64x128xf32> -> vector<64x128xf32>
    %102 = arith.addf %79, %101 : vector<64x128xf32>
    %103 = vector.extract_strided_slice %31 {offsets = [0, 96], sizes = [64, 32], strides = [1, 1]} : vector<64x384xf32> to vector<64x32xf32>
    %104 = vector.extract_strided_slice %31 {offsets = [0, 224], sizes = [64, 32], strides = [1, 1]} : vector<64x384xf32> to vector<64x32xf32>
    %105 = vector.extract_strided_slice %31 {offsets = [0, 352], sizes = [64, 32], strides = [1, 1]} : vector<64x384xf32> to vector<64x32xf32>
    %106 = arith.truncf %103 : vector<64x32xf32> to vector<64x32xbf16>
    %107 = arith.truncf %104 : vector<64x32xf32> to vector<64x32xbf16>
    %cst_33 = arith.constant dense<0.000000e+00> : vector<64x64xf32>
    %108 = tpu.matmul %106, %107, %cst_33 {dimension_numbers = #tpu.dot_dimension_numbers<[1], [1], [0], [0], [0, 0, 1, 0], [], []>} : vector<64x32xbf16>, vector<64x32xbf16>, vector<64x64xf32> -> vector<64x64xf32>
    %cst_34 = arith.constant dense<0xFF800000> : vector<64xf32>
    %109 = vector.multi_reduction <maximumf>, %108, %cst_34 [1] : vector<64x64xf32> to vector<64xf32>
    %110 = vector.shape_cast %109 : vector<64xf32> to vector<64x1xf32>
    %111 = vector.broadcast %110 : vector<64x1xf32> to vector<64x64xf32>
    %112 = arith.subf %108, %111 : vector<64x64xf32>
    %113 = math.exp %112 : vector<64x64xf32>
    %cst_35 = arith.constant dense<0.000000e+00> : vector<64xf32>
    %114 = vector.multi_reduction <add>, %113, %cst_35 [1] : vector<64x64xf32> to vector<64xf32>
    %115 = vector.shape_cast %114 : vector<64xf32> to vector<64x1xf32>
    %116 = tpu.reciprocal %115 {approx = true} : vector<64x1xf32> -> vector<64x1xf32>
    %117 = vector.broadcast %116 : vector<64x1xf32> to vector<64x64xf32>
    %118 = arith.mulf %113, %117 : vector<64x64xf32>
    %119 = arith.truncf %118 : vector<64x64xf32> to vector<64x64xbf16>
    %120 = arith.truncf %105 : vector<64x32xf32> to vector<64x32xbf16>
    %cst_36 = arith.constant dense<0.000000e+00> : vector<64x32xf32>
    %121 = tpu.matmul %119, %120, %cst_36 {dimension_numbers = #tpu.dot_dimension_numbers<[1], [0], [0], [1], [0, 0, 1, 1], [], []>} : vector<64x64xbf16>, vector<64x32xbf16>, vector<64x32xf32> -> vector<64x32xf32>
    %122 = arith.truncf %121 : vector<64x32xf32> to vector<64x32xbf16>
    %123 = vector.extract_strided_slice %32 {offsets = [96, 0], sizes = [32, 128], strides = [1, 1]} : vector<128x128xbf16> to vector<32x128xbf16>
    %cst_37 = arith.constant dense<0.000000e+00> : vector<64x128xf32>
    %124 = tpu.matmul %122, %123, %cst_37 {dimension_numbers = #tpu.dot_dimension_numbers<[1], [0], [0], [1], [0, 0, 1, 1], [], []>} : vector<64x32xbf16>, vector<32x128xbf16>, vector<64x128xf32> -> vector<64x128xf32>
    %125 = arith.addf %102, %124 : vector<64x128xf32>
    %c0_38 = arith.constant 0 : index
    %c0_39 = arith.constant 0 : index
    %126 = vector.load %arg5[%c0_38, %c0_39] : memref<1x128xf32, #tpu.memory_space<vmem>>, vector<1x128xf32>
    %127 = vector.broadcast %126 : vector<1x128xf32> to vector<64x128xf32>
    %128 = arith.addf %125, %127 : vector<64x128xf32>
    %129 = arith.addf %1, %128 : vector<64x128xf32>
    %c0_40 = arith.constant 0 : index
    %c0_41 = arith.constant 0 : index
    %130 = vector.load %arg8[%c0_40, %c0_41] : memref<1x128xf32, #tpu.memory_space<vmem>>, vector<1x128xf32>
    %c0_42 = arith.constant 0 : index
    %c0_43 = arith.constant 0 : index
    %131 = vector.load %arg9[%c0_42, %c0_43] : memref<1x128xf32, #tpu.memory_space<vmem>>, vector<1x128xf32>
    %cst_44 = arith.constant dense<0.000000e+00> : vector<64xf32>
    %132 = vector.multi_reduction <add>, %129, %cst_44 [1] : vector<64x128xf32> to vector<64xf32>
    %133 = vector.shape_cast %132 : vector<64xf32> to vector<64x1xf32>
    %cst_45 = arith.constant 1.280000e+02 : f32
    %134 = vector.broadcast %cst_45 : f32 to vector<64x1xf32>
    %135 = arith.divf %133, %134 : vector<64x1xf32>
    %136 = vector.broadcast %135 : vector<64x1xf32> to vector<64x128xf32>
    %137 = arith.subf %129, %136 : vector<64x128xf32>
    %138 = arith.mulf %137, %137 : vector<64x128xf32>
    %cst_46 = arith.constant dense<0.000000e+00> : vector<64xf32>
    %139 = vector.multi_reduction <add>, %138, %cst_46 [1] : vector<64x128xf32> to vector<64xf32>
    %140 = vector.shape_cast %139 : vector<64xf32> to vector<64x1xf32>
    %cst_47 = arith.constant 1.280000e+02 : f32
    %141 = vector.broadcast %cst_47 : f32 to vector<64x1xf32>
    %142 = arith.divf %140, %141 : vector<64x1xf32>
    %143 = vector.broadcast %135 : vector<64x1xf32> to vector<64x128xf32>
    %144 = arith.subf %129, %143 : vector<64x128xf32>
    %cst_48 = arith.constant 9.99999974E-6 : f32
    %145 = vector.broadcast %cst_48 : f32 to vector<64x1xf32>
    %146 = arith.addf %142, %145 : vector<64x1xf32>
    %147 = math.rsqrt %146 : vector<64x1xf32>
    %148 = vector.broadcast %147 : vector<64x1xf32> to vector<64x128xf32>
    %149 = arith.mulf %144, %148 : vector<64x128xf32>
    %150 = vector.broadcast %130 : vector<1x128xf32> to vector<64x128xf32>
    %151 = arith.mulf %149, %150 : vector<64x128xf32>
    %152 = vector.broadcast %131 : vector<1x128xf32> to vector<64x128xf32>
    %153 = arith.addf %151, %152 : vector<64x128xf32>
    %154 = arith.truncf %153 : vector<64x128xf32> to vector<64x128xbf16>
    %c0_49 = arith.constant 0 : index
    %c0_50 = arith.constant 0 : index
    %155 = vector.load %arg10[%c0_49, %c0_50] : memref<128x256xbf16, #tpu.memory_space<vmem>>, vector<128x256xbf16>
    %cst_51 = arith.constant dense<0.000000e+00> : vector<64x256xf32>
    %156 = tpu.matmul %154, %155, %cst_51 {dimension_numbers = #tpu.dot_dimension_numbers<[1], [0], [0], [1], [0, 0, 1, 1], [], []>} : vector<64x128xbf16>, vector<128x256xbf16>, vector<64x256xf32> -> vector<64x256xf32>
    %c0_52 = arith.constant 0 : index
    %c0_53 = arith.constant 0 : index
    %157 = vector.load %arg11[%c0_52, %c0_53] : memref<1x256xf32, #tpu.memory_space<vmem>>, vector<1x256xf32>
    %158 = vector.broadcast %157 : vector<1x256xf32> to vector<64x256xf32>
    %159 = arith.addf %156, %158 : vector<64x256xf32>
    %cst_54 = arith.constant 0.000000e+00 : f32
    %160 = vector.broadcast %cst_54 : f32 to vector<64x256xf32>
    %161 = arith.maximumf %159, %160 : vector<64x256xf32>
    %162 = arith.truncf %161 : vector<64x256xf32> to vector<64x256xbf16>
    %c0_55 = arith.constant 0 : index
    %c0_56 = arith.constant 0 : index
    %163 = vector.load %arg12[%c0_55, %c0_56] : memref<256x128xbf16, #tpu.memory_space<vmem>>, vector<256x128xbf16>
    %cst_57 = arith.constant dense<0.000000e+00> : vector<64x128xf32>
    %164 = tpu.matmul %162, %163, %cst_57 {dimension_numbers = #tpu.dot_dimension_numbers<[1], [0], [0], [1], [0, 0, 1, 1], [], []>} : vector<64x256xbf16>, vector<256x128xbf16>, vector<64x128xf32> -> vector<64x128xf32>
    %c0_58 = arith.constant 0 : index
    %c0_59 = arith.constant 0 : index
    %165 = vector.load %arg13[%c0_58, %c0_59] : memref<1x128xf32, #tpu.memory_space<vmem>>, vector<1x128xf32>
    %166 = vector.broadcast %165 : vector<1x128xf32> to vector<64x128xf32>
    %167 = arith.addf %164, %166 : vector<64x128xf32>
    %168 = arith.addf %129, %167 : vector<64x128xf32>
    %c0_60 = arith.constant 0 : index
    %c0_61 = arith.constant 0 : index
    %c0_62 = arith.constant 0 : index
    %169 = vector.load %arg14[%c0_60, %c0_61, %c0_62] : memref<1x64x128xf32, #tpu.memory_space<vmem>>, vector<1x64x128xf32>
    %170 = vector.shape_cast %169 : vector<1x64x128xf32> to vector<64x128xf32>
    %171 = vector.shape_cast %168 : vector<64x128xf32> to vector<1x64x128xf32>
    tpu.vector_store %arg14[%c0_60, %c0_61, %c0_62], %171 {strides = array<i32>} : memref<1x64x128xf32, #tpu.memory_space<vmem>>, vector<1x64x128xf32>,
    return
  }
  func.func @transform_0(%arg0: i32) -> (i32, i32, i32) {
    %c0_i32 = arith.constant 0 : i32
    %c0_i32_0 = arith.constant 0 : i32
    %c0_i32_1 = arith.constant 0 : i32
    return %arg0, %c0_i32, %c0_i32_0 : i32, i32, i32
  }
  func.func @transform_1(%arg0: i32) -> (i32, i32) {
    %c0_i32 = arith.constant 0 : i32
    %c0_i32_0 = arith.constant 0 : i32
    %c0_i32_1 = arith.constant 0 : i32
    return %c0_i32, %c0_i32_0 : i32, i32
  }
  func.func @transform_2(%arg0: i32) -> (i32, i32) {
    %c0_i32 = arith.constant 0 : i32
    %c0_i32_0 = arith.constant 0 : i32
    %c0_i32_1 = arith.constant 0 : i32
    return %c0_i32, %c0_i32_0 : i32, i32
  }
  func.func @transform_3(%arg0: i32) -> (i32, i32) {
    %c0_i32 = arith.constant 0 : i32
    %c0_i32_0 = arith.constant 0 : i32
    %c0_i32_1 = arith.constant 0 : i32
    return %c0_i32, %c0_i32_0 : i32, i32
  }
  func.func @transform_4(%arg0: i32) -> (i32, i32) {
    %c0_i32 = arith.constant 0 : i32
    %c0_i32_0 = arith.constant 0 : i32
    %c0_i32_1 = arith.constant 0 : i32
    return %c0_i32, %c0_i32_0 : i32, i32
  }
  func.func @transform_5(%arg0: i32) -> (i32, i32) {
    %c0_i32 = arith.constant 0 : i32
    %c0_i32_0 = arith.constant 0 : i32
    %c0_i32_1 = arith.constant 0 : i32
    return %c0_i32, %c0_i32_0 : i32, i32
  }
  func.func @transform_6(%arg0: i32) -> (i32, i32) {
    %c0_i32 = arith.constant 0 : i32
    %c0_i32_0 = arith.constant 0 : i32
    %c0_i32_1 = arith.constant 0 : i32
    return %c0_i32, %c0_i32_0 : i32, i32
  }
  func.func @transform_7(%arg0: i32) -> (i32, i32) {
    %c0_i32 = arith.constant 0 : i32
    %c0_i32_0 = arith.constant 0 : i32
    %c0_i32_1 = arith.constant 0 : i32
    return %c0_i32, %c0_i32_0 : i32, i32
  }
  func.func @transform_8(%arg0: i32) -> (i32, i32) {
    %c0_i32 = arith.constant 0 : i32
    %c0_i32_0 = arith.constant 0 : i32
    %c0_i32_1 = arith.constant 0 : i32
    return %c0_i32, %c0_i32_0 : i32, i32
  }
  func.func @transform_9(%arg0: i32) -> (i32, i32) {
    %c0_i32 = arith.constant 0 : i32
    %c0_i32_0 = arith.constant 0 : i32
    %c0_i32_1 = arith.constant 0 : i32
    return %c0_i32, %c0_i32_0 : i32, i32
  }
  func.func @transform_10(%arg0: i32) -> (i32, i32) {
    %c0_i32 = arith.constant 0 : i32
    %c0_i32_0 = arith.constant 0 : i32
    %c0_i32_1 = arith.constant 0 : i32
    return %c0_i32, %c0_i32_0 : i32, i32
  }
  func.func @transform_11(%arg0: i32) -> (i32, i32) {
    %c0_i32 = arith.constant 0 : i32
    %c0_i32_0 = arith.constant 0 : i32
    %c0_i32_1 = arith.constant 0 : i32
    return %c0_i32, %c0_i32_0 : i32, i32
  }
  func.func @transform_12(%arg0: i32) -> (i32, i32) {
    %c0_i32 = arith.constant 0 : i32
    %c0_i32_0 = arith.constant 0 : i32
    %c0_i32_1 = arith.constant 0 : i32
    return %c0_i32, %c0_i32_0 : i32, i32
  }
  func.func @transform_13(%arg0: i32) -> (i32, i32, i32) {
    %c0_i32 = arith.constant 0 : i32
    %c0_i32_0 = arith.constant 0 : i32
    %c0_i32_1 = arith.constant 0 : i32
    return %arg0, %c0_i32, %c0_i32_0 : i32, i32, i32
  }
}

module attributes {stable_mosaic.version = 11 : i64} {
  func.func @_out_proj_kernel(%arg0: i32, %arg1: memref<64x128xf32, #tpu.memory_space<vmem>>, %arg2: memref<128x128xbf16, #tpu.memory_space<vmem>>, %arg3: memref<1x128xf32, #tpu.memory_space<vmem>>, %arg4: memref<64x128xf32, #tpu.memory_space<vmem>>) attributes {dimension_semantics = [#tpu.dimension_semantics<parallel>], iteration_bounds = array<i64: 2>, scalar_prefetch = 0 : i64, scratch_operands = 0 : i64, tpu.core_type = #tpu.core_type<tc>, window_params = [{transform_indices = @transform_0, window_bounds = array<i64: 64, 128>}, {pipeline_mode = #tpu.pipeline_mode<synchronous>, transform_indices = @transform_1, window_bounds = array<i64: 128, 128>}, {pipeline_mode = #tpu.pipeline_mode<synchronous>, transform_indices = @transform_2, window_bounds = array<i64: 1, 128>}, {transform_indices = @transform_3, window_bounds = array<i64: 64, 128>}]} {
    %c0 = arith.constant 0 : index
    %c0_0 = arith.constant 0 : index
    %0 = vector.load %arg1[%c0, %c0_0] : memref<64x128xf32, #tpu.memory_space<vmem>>, vector<64x128xf32>
    %1 = arith.truncf %0 : vector<64x128xf32> to vector<64x128xbf16>
    %c0_1 = arith.constant 0 : index
    %c0_2 = arith.constant 0 : index
    %2 = vector.load %arg2[%c0_1, %c0_2] : memref<128x128xbf16, #tpu.memory_space<vmem>>, vector<128x128xbf16>
    %cst = arith.constant dense<0.000000e+00> : vector<64x128xf32>
    %3 = tpu.matmul %1, %2, %cst {dimension_numbers = #tpu.dot_dimension_numbers<[1], [0], [0], [1], [0, 0, 1, 1], [], []>} : vector<64x128xbf16>, vector<128x128xbf16>, vector<64x128xf32> -> vector<64x128xf32>
    %c0_3 = arith.constant 0 : index
    %c0_4 = arith.constant 0 : index
    %4 = vector.load %arg3[%c0_3, %c0_4] : memref<1x128xf32, #tpu.memory_space<vmem>>, vector<1x128xf32>
    %5 = vector.broadcast %4 : vector<1x128xf32> to vector<64x128xf32>
    %6 = arith.addf %3, %5 : vector<64x128xf32>
    %c0_5 = arith.constant 0 : index
    %c0_6 = arith.constant 0 : index
    %7 = vector.load %arg4[%c0_5, %c0_6] : memref<64x128xf32, #tpu.memory_space<vmem>>, vector<64x128xf32>
    tpu.vector_store %arg4[%c0_5, %c0_6], %6 {strides = array<i32>} : memref<64x128xf32, #tpu.memory_space<vmem>>, vector<64x128xf32>,
    return
  }
  func.func @transform_0(%arg0: i32) -> (i32, i32) {
    %c0_i32 = arith.constant 0 : i32
    %c0_i32_0 = arith.constant 0 : i32
    return %arg0, %c0_i32 : i32, i32
  }
  func.func @transform_1(%arg0: i32) -> (i32, i32) {
    %c0_i32 = arith.constant 0 : i32
    %c0_i32_0 = arith.constant 0 : i32
    %c0_i32_1 = arith.constant 0 : i32
    return %c0_i32, %c0_i32_0 : i32, i32
  }
  func.func @transform_2(%arg0: i32) -> (i32, i32) {
    %c0_i32 = arith.constant 0 : i32
    %c0_i32_0 = arith.constant 0 : i32
    %c0_i32_1 = arith.constant 0 : i32
    return %c0_i32, %c0_i32_0 : i32, i32
  }
  func.func @transform_3(%arg0: i32) -> (i32, i32) {
    %c0_i32 = arith.constant 0 : i32
    %c0_i32_0 = arith.constant 0 : i32
    return %arg0, %c0_i32 : i32, i32
  }
}

</mosaic_0001>

<bundles_post_ra>
// kernel: flow_transformer_forward.7
= control target key start
LH: loop header
LB: loop body
LE: loop exit
PB: predicated region body
PF: predicated region fallthrough
CT: control target
= control target key end

     0   :  { %s503_s12 = smov 0   ;;  %s564_s0 = inlined_call_operand.vmem [shape: f32[128,128], index: 0, kind: input, shape index: {}]   ;;  %s565_s1 = inlined_call_operand.vmem [shape: bf16[128,128], index: 1, kind: input, shape index: {}]   ;;  %s566_s2 = inlined_call_operand.vmem [shape: f32[1,128], index: 2, kind: input, shape index: {}]   ;;  %s567_s3 = inlined_call_operand.vmem [shape: f32[128,128], index: 3, kind: output, shape index: {}]  }
   0x1 LB: > { %s387_s13 = sadd.s32 4294967295, %s481_s12   ;;  %p391_p0 = scmp.ge.s32.totalorder %s481_s12, 1  ;;  %s481_s12 = sphi %s503_s12, %s13_s12  }
   0x2   : > { %p138_p1 = scmp.lt.s32.totalorder %s481_s12, 3 }
   0x4   : > { %p139_p2 = pnand %p391_p0, %p138_p1 }
   0x5   : > { %v467_v0 = vld [vmem:[%s565_s1] sm:$0xff] (!%p139_p2)   ;;  %s392_s16 = sshll.u32 (!%p139_p2), %s387_s13, 3  ;;  %v468_v1 = vld [vmem:[%s565_s1 + $0x8] sm:$0xff] (!%p139_p2)   ;;  %v469_v2 = vld [vmem:[%s565_s1 + $0x10] sm:$0xff] (!%p139_p2)  }
   0x6   : > { %142 = sbr.rel (%p139_p2) target bundleno = 257 (0x101), region = 32  ;;  %p163_p3 = scmp.lt.s32.totalorder (!%p139_p2), %s392_s16, 15  ;;  %419 = vmatprep.subr.bf16.mxu0 (!%p139_p2), %v467_v0  ;;  %443 = vmatprep.subr.bf16.mxu1 (!%p139_p2), %v467_v0  ;;  %v470_v3 = vld [vmem:[%s565_s1 + $0x18] sm:$0xff] (!%p139_p2)   ;;  %v471_v10 = vld [vmem:[%s565_s1 + $0x20] sm:$0xff] (!%p139_p2)   ;;  %v472_v11 = vld [vmem:[%s565_s1 + $0x28] sm:$0xff] (!%p139_p2)  }
   0x7   : > { %420 = vmatpush3.bf16.msra.mxu0 (!%p139_p2), %v467_v0  ;;  %451 = vmatpush3.bf16.msra.mxu1 (!%p139_p2), %v467_v0  ;;  %v473_v12 = vld [vmem:[%s565_s1 + $0x30] sm:$0xff] (!%p139_p2)   ;;  %v474_v13 = vld [vmem:[%s565_s1 + $0x38] sm:$0xff] (!%p139_p2)   ;;  %v396_v20 = vld [vmem:[%s566_s2] ss:$0 sm:$0xff] (!%p139_p2) }
   0x8   : > { %421 = vmatprep.subr.bf16.mxu0 (!%p139_p2), %v468_v1  ;;  %444 = vmatprep.subr.bf16.mxu1 (!%p139_p2), %v468_v1 }
   0xb   : > { %422 = vmatpush3.bf16.msra.mxu0 (!%p139_p2), %v468_v1  ;;  %452 = vmatpush3.bf16.msra.mxu1 (!%p139_p2), %v468_v1 }
   0xc   : > { %423 = vmatprep.subr.bf16.mxu0 (!%p139_p2), %v469_v2  ;;  %445 = vmatprep.subr.bf16.mxu1 (!%p139_p2), %v469_v2 }
   0xd   : > { %s569_s16 = smov (!%p163_p3, %s392_s16), 15 }
   0xe   : > { %s393_s21 = sshll.u32 %s569_s16, 3 }
   0xf   : > { %s528_s24 = scalar_lea.vmem %s564_s0, %s393_s21  ;;  %424 = vmatpush3.bf16.msra.mxu0 %v469_v2  ;;  %453 = vmatpush3.bf16.msra.mxu1 %v469_v2  ;;  %s172_s13 = scalar_lea.vmem %s567_s3, %s393_s21 }
  0x10   : > { %v175_v4 = vld [vmem:[%s528_s24] sm:$0xff]  ;;  %v176_v5 = vld [vmem:[%s528_s24 + $0x8] sm:$0xff]  ;;  %425 = vmatprep.subr.bf16.mxu0 %v470_v3  ;;  %446 = vmatprep.subr.bf16.mxu1 %v470_v3  ;;  %v177_v14 = vld [vmem:[%s528_s24 + $0x10] sm:$0xff] }
  0x11   : > { %v179_v6 = vld [vmem:[%s528_s24 + $0x20] sm:$0xff]  ;;  %v183_v7 = vpack.c.bf16 %v176_v5, %v175_v4  ;;  %v180_v8 = vld [vmem:[%s528_s24 + $0x28] sm:$0xff]  ;;  %v178_v15 = vld [vmem:[%s528_s24 + $0x18] sm:$0xff] }
  0x12   : > { %v185_v9 = vpack.c.bf16 %v180_v8, %v179_v6  ;;  %v181_v16 = vld [vmem:[%s528_s24 + $0x30] sm:$0xff]  ;;  %v182_v17 = vld [vmem:[%s528_s24 + $0x38] sm:$0xff]  ;;  %v184_v18 = vpack.c.bf16 %v178_v15, %v177_v14 }
  0x13   : > { %435 = vmatprep.mubr.bf16.mxu0 %v183_v7  ;;  %426 = vmatpush3.bf16.msra.mxu0 %v470_v3  ;;  %v186_v19 = vpack.c.bf16 %v182_v17, %v181_v16 }
  0x14   : > { %439 = vmatprep.mubr.bf16.mxu1 %v185_v9  ;;  %454 = vmatpush3.bf16.msra.mxu1 %v470_v3 }
  0x15   : > { %427 = vmatprep.subr.bf16.mxu0 %v471_v10  ;;  %447 = vmatprep.subr.bf16.mxu1 %v471_v10 }
  0x17   : > { %428 = vmatpush3.bf16.msra.mxu0 %v471_v10 }
  0x18   : > { %455 = vmatpush3.bf16.msra.mxu1 %v471_v10  ;;  %429 = vmatprep.subr.bf16.mxu0 %v472_v11 }
  0x19   : > { %448 = vmatprep.subr.bf16.mxu1 %v472_v11 }
  0x1b   : > { %430 = vmatpush3.bf16.msra.mxu0 %v472_v11 }
  0x1c   : > { %456 = vmatpush3.bf16.msra.mxu1 %v472_v11  ;;  %431 = vmatprep.subr.bf16.mxu0 %v473_v12 }
  0x1d   : > { %449 = vmatprep.subr.bf16.mxu1 %v473_v12 }
  0x1f   : > { %432 = vmatpush3.bf16.msra.mxu0 %v473_v12 }
  0x20   : > { %457 = vmatpush3.bf16.msra.mxu1 %v473_v12  ;;  %433 = vmatprep.subr.bf16.mxu0 %v474_v13 }
  0x21   : > { %450 = vmatprep.subr.bf16.mxu1 %v474_v13 }
  0x23   : > { %434 = vmatpush3.bf16.msra.mxu0 %v474_v13 }
  0x24   : > { %458 = vmatpush3.bf16.msra.mxu1 %v474_v13 }
  0x26   : > { %436 = vmatmul.mubr.bf16.vlgmr.msra.gmra.mrb[0].mxu0 %v184_v18 }
  0x27   : > { %440 = vmatmul.mubr.bf16.vlgmr.msra.gmra.mrb[0].mxu1 %v186_v19 }
  0xf9   : > { %v437_v21 = vpop.f32.mrb[0].mxu0 }
  0xfa   : > { %v441_v22 = vpop.f32.mrb[0].mxu1  ;;  %v301_v23 = vadd.f32 %v437_v21, %v396_v20  ;;  %v292_v25 = vpop.f32.mrb[1].mxu0 }
  0xfb   : > { %v317_v24 = vadd.f32 %v441_v22, %v396_v20  ;;  %v308_v26 = vpop.f32.mrb[1].mxu1  ;;  %v293_v27 = vadd.f32 %v396_v20, %v292_v25  ;;  %v438_v29 = vpop.f32.mrb[2].mxu0 }
  0xfc   : > { %v309_v28 = vadd.f32 %v396_v20, %v308_v26  ;;  %v442_v30 = vpop.f32.mrb[2].mxu1  ;;  %325 = vst [vmem:[%s172_s13 + $0x10] sm:$0xff] %v301_v23  ;;  %v304_v31 = vadd.f32 %v438_v29, %v396_v20  ;;  %v295_v33 = vpop.f32.mrb[3].mxu0 }
  0xfd   : > { %329 = vst [vmem:[%s172_s13 + $0x30] sm:$0xff] %v317_v24  ;;  %v320_v32 = vadd.f32 %v442_v30, %v396_v20  ;;  %v311_v34 = vpop.f32.mrb[3].mxu1  ;;  %323 = vst [vmem:[%s172_s13] sm:$0xff] %v293_v27  ;;  %v296_v35 = vadd.f32 %v396_v20, %v295_v33 }
  0xfe   : > { %327 = vst [vmem:[%s172_s13 + $0x20] sm:$0xff] %v309_v28  ;;  %v312_v36 = vadd.f32 %v396_v20, %v311_v34  ;;  %326 = vst [vmem:[%s172_s13 + $0x18] sm:$0xff] %v304_v31 }
  0xff   : > { %330 = vst [vmem:[%s172_s13 + $0x38] sm:$0xff] %v320_v32  ;;  %324 = vst [vmem:[%s172_s13 + $0x8] sm:$0xff] %v296_v35 }
 0x100   : > { %328 = vst [vmem:[%s172_s13 + $0x28] sm:$0xff] %v312_v36 }
 0x101 PF: > { %s13_s12 = sadd.s32 1, %s481_s12  }
 0x102   : > { %p10_p4 = scmp.ge.s32.totalorder %s13_s12, 4  }
 0x104   :  { %12 = sbr.rel (!%p10_p4) target bundleno = 1 (0x1), region = 62 }

// kernel: flow_transformer_forward.4
= control target key start
LH: loop header
LB: loop body
LE: loop exit
PB: predicated region body
PF: predicated region fallthrough
CT: control target
= control target key end

     0   :  { %v760_v0 = vmov 0.0   ;;  %vm761_vm0 = vmmov 0   ;;  %vm321_vm1 = vcmask 392192   ;;  %s1078_s5 = inlined_call_operand.vmem [shape: bf16[128,128], index: 5, kind: input, shape index: {}]   ;;  %s1079_s4 = inlined_call_operand.vmem [shape: f32[2,128], index: 4, kind: input, shape index: {}]   ;;  %s1080_s7 = inlined_call_operand.vmem [shape: bf16[128,128], index: 7, kind: input, shape index: {}]   ;;  %s1081_s1 = inlined_call_operand.vmem [shape: bf16[48,128], index: 1, kind: input, shape index: {}]   ;;  %s1082_s0 = inlined_call_operand.vmem [shape: f32[2,64,48], index: 0, kind: input, shape index: {}]   ;;  %s1083_s6 = inlined_call_operand.vmem [shape: f32[1,128], index: 6, kind: input, shape index: {}]   ;;  %s1084_s8 = inlined_call_operand.vmem [shape: f32[1,128], index: 8, kind: input, shape index: {}]   ;;  %s1085_s2 = inlined_call_operand.vmem [shape: f32[1,128], index: 2, kind: input, shape index: {}]   ;;  %s1086_s3 = inlined_call_operand.vmem [shape: f32[2,128], index: 3, kind: input, shape index: {}]   ;;  %s1087_s9 = inlined_call_operand.vmem [shape: f32[64,128], index: 9, kind: input, shape index: {}]   ;;  %s1088_s10 = inlined_call_operand.vmem [shape: f32[2,64,128], index: 10, kind: output, shape index: {}]  }
   0x1   :  { %664 = vmatprep.subr.bf16.mxu0 %v760_v0  ;;  %v734_v1 = vld [vmem:[%s1078_s5] sm:$0xff]   ;;  %680 = vmatprep.mubr.msk.bf16.mxu0 %vm761_vm0, %v760_v0  ;;  %v735_v2 = vld [vmem:[%s1078_s5 + $0x8] sm:$0xff]   ;;  %v736_v3 = vld [vmem:[%s1078_s5 + $0x10] sm:$0xff]  }
   0x2   :  { %684 = vmatprep.subr.bf16.mxu1 %v760_v0  ;;  %700 = vmatprep.mubr.msk.bf16.mxu1 %vm761_vm0, %v760_v0  ;;  %v737_v4 = vld [vmem:[%s1078_s5 + $0x18] sm:$0xff]   ;;  %v738_v5 = vld [vmem:[%s1078_s5 + $0x20] sm:$0xff]   ;;  %v739_v6 = vld [vmem:[%s1078_s5 + $0x28] sm:$0xff]  }
   0x3   :  { %665 = vmatpush3.bf16.msra.mxu0 %v734_v1  ;;  %v740_v7 = vld [vmem:[%s1078_s5 + $0x30] sm:$0xff]   ;;  %v741_v8 = vld [vmem:[%s1078_s5 + $0x38] sm:$0xff]   ;;  %v36_v9 = vld [vmem:[%s1079_s4] sm:$0x3] }
   0x4   :  { %666 = vmatprep.subr.bf16.mxu0 %v760_v0  ;;  %v37_v10 = vpack.c.bf16 %v36_v9, %v36_v9  ;;  %v742_v11 = vld [vmem:[%s1080_s7] sm:$0xff]   ;;  %v743_v12 = vld [vmem:[%s1080_s7 + $0x8] sm:$0xff]   ;;  %v744_v13 = vld [vmem:[%s1080_s7 + $0x10] sm:$0xff]  }
   0x5   :  { %685 = vmatpush3.bf16.msra.mxu1 %v742_v11  ;;  %v745_v14 = vld [vmem:[%s1080_s7 + $0x18] sm:$0xff]   ;;  %v746_v15 = vld [vmem:[%s1081_s1] sm:$0xff]   ;;  %v748_v17 = vld [vmem:[%s1081_s1 + $0x8] sm:$0xff]  }
   0x6   :  { %686 = vmatprep.subr.bf16.mxu1 %v760_v0  ;;  %v747_v16 = vld [vmem:[%s1080_s7 + $0x20] sm:$0xff]   ;;  %v749_v18 = vld [vmem:[%s1080_s7 + $0x28] sm:$0xff]   ;;  %v750_v19 = vld [vmem:[%s1081_s1 + $0x10] sm:$0xff]  }
   0x7   :  { %667 = vmatpush3.bf16.msra.mxu0 %v735_v2  ;;  %v278_v20 = vld [vmem:[%s1082_s0] sm:$0xff]  ;;  %v279_v21 = vld [vmem:[%s1082_s0 + $0x8] sm:$0xff]  ;;  %v751_v22 = vld [vmem:[%s1080_s7 + $0x30] sm:$0xff]  }
   0x8   :  { %668 = vmatprep.subr.bf16.mxu0 %v760_v0  ;;  %v286_v23 = vpack.c.bf16 %v279_v21, %v278_v20  ;;  %v280_v24 = vld [vmem:[%s1082_s0 + $0x10] sm:$0xff]  ;;  %v281_v25 = vld [vmem:[%s1082_s0 + $0x18] sm:$0xff]  ;;  %v753_v28 = vld [vmem:[%s1081_s1] sm:$0xff]  }
   0x9   :  { %687 = vmatpush3.bf16.msra.mxu1 %v743_v12  ;;  %v287_v26 = vpack.c.bf16 %v281_v25, %v280_v24  ;;  %v752_v27 = vld [vmem:[%s1080_s7 + $0x38] sm:$0xff]   ;;  %v282_v29 = vld [vmem:[%s1082_s0 + $0x20] sm:$0xff]  ;;  %v283_v30 = vld [vmem:[%s1082_s0 + $0x28] sm:$0xff] }
   0xa   :  { %688 = vmatprep.subr.bf16.mxu1 %v760_v0  ;;  %v288_v31 = vpack.c.bf16 %v283_v30, %v282_v29  ;;  %v284_v32 = vld [vmem:[%s1082_s0 + $0x30] sm:$0xff]  ;;  %v285_v33 = vld [vmem:[%s1082_s0 + $0x38] sm:$0xff]  ;;  %v581_v35 = vld [vmem:[%s1083_s6] ss:$0 sm:$0xff] }
   0xb   :  { %669 = vmatpush3.bf16.msra.mxu0 %v736_v3  ;;  %v289_v34 = vpack.c.bf16 %v285_v33, %v284_v32  ;;  %v608_v44 = vld [vmem:[%s1082_s0 + $0x40] sm:$0xff]  ;;  %v609_v45 = vld [vmem:[%s1082_s0 + $0x48] sm:$0xff]  ;;  %v755_v51 = vld [vmem:[%s1081_s1 + $0x10] sm:$0xff]  }
   0xc   :  { %670 = vmatprep.subr.bf16.mxu0 %v760_v0  ;;  %v436_v48 = vpack.c.bf16 %v609_v45, %v608_v44  ;;  %v754_v50 = vld [vmem:[%s1081_s1 + $0x8] sm:$0xff]   ;;  %v610_v52 = vld [vmem:[%s1082_s0 + $0x50] sm:$0xff]  ;;  %v611_v53 = vld [vmem:[%s1082_s0 + $0x58] sm:$0xff] }
   0xd   :  { %689 = vmatpush3.bf16.msra.mxu1 %v744_v13  ;;  %v612_v54 = vld [vmem:[%s1082_s0 + $0x60] sm:$0xff]  ;;  %v613_v55 = vld [vmem:[%s1082_s0 + $0x68] sm:$0xff]  ;;  %v437_v56 = vpack.c.bf16 %v611_v53, %v610_v52  ;;  %v614_v58 = vld [vmem:[%s1082_s0 + $0x70] sm:$0xff] }
   0xe   :  { %690 = vmatprep.subr.bf16.mxu1 %v760_v0  ;;  %v438_v57 = vpack.c.bf16 %v613_v55, %v612_v54  ;;  %v615_v59 = vld [vmem:[%s1082_s0 + $0x78] sm:$0xff]  ;;  %v993_v29 = vld [vmem:[%s1087_s9 + $0x20] sm:$0xff] }
   0xf   :  { %671 = vmatpush3.bf16.msra.mxu0 %v737_v4  ;;  %v439_v60 = vpack.c.bf16 %v615_v59, %v614_v58  ;;  %v998_v30 = vld [vmem:[%s1087_s9 + $0x38] sm:$0xff] }
  0x10   :  { %672 = vmatprep.subr.bf16.mxu0 %v760_v0 }
  0x11   :  { %691 = vmatpush3.bf16.msra.mxu1 %v745_v14 }
  0x12   :  { %692 = vmatprep.subr.bf16.mxu1 %v760_v0 }
  0x13   :  { %673 = vmatpush3.bf16.msra.mxu0 %v738_v5  ;;  %v399_v5 = vlaneseq }
  0x14   :  { %674 = vmatprep.subr.bf16.mxu0 %v760_v0 }
  0x15   :  { %693 = vmatpush3.bf16.msra.mxu1 %v747_v16 }
  0x16   :  { %694 = vmatprep.subr.bf16.mxu1 %v760_v0 }
  0x17   :  { %675 = vmatpush3.bf16.msra.mxu0 %v739_v6  ;;  %v400_v6 = vshrl.u32 %v399_v5, 7 }
  0x18   :  { %676 = vmatprep.subr.bf16.mxu0 %v760_v0 }
  0x19   :  { %695 = vmatpush3.bf16.msra.mxu1 %v749_v18  ;;  %v401_v12 = vsub.s32 0, %v400_v6 }
  0x1a   :  { %696 = vmatprep.subr.bf16.mxu1 %v760_v0 }
  0x1b   :  { %677 = vmatpush3.bf16.msra.mxu0 %v740_v7  ;;  %v591_v7 = vld [vmem:[%s1084_s8] ss:$0 sm:$0xff] }
  0x1c   :  { %678 = vmatprep.subr.bf16.mxu0 %v760_v0 }
  0x1d   :  { %697 = vmatpush3.bf16.msra.mxu1 %v751_v22 }
  0x1e   :  { %698 = vmatprep.subr.bf16.mxu1 %v760_v0 }
  0x1f   :  { %679 = vmatpush3.bf16.msra.mxu0 %v741_v8  ;;  %v969_v8 = vld [vmem:[%s1085_s2] ss:$0 sm:$0xff] }
  0x20   :  { %704 = vmatprep.subr.bf16.mxu0 %v746_v15 }
  0x21   :  { %699 = vmatpush3.bf16.msra.mxu1 %v752_v27  ;;  %v988_v27 = vld [vmem:[%s1087_s9 + $0x30] sm:$0xff] }
  0x22   :  { %681 = vmatmul.mubr.bf16.vlgmr.msra.gmra.mrb[0].mxu0 %v37_v10  ;;  %718 = vmatprep.subr.bf16.mxu1 %v753_v28  ;;  %v268_v10 = vld [vmem:[%s1086_s3] sm:$0x3] }
  0x23   :  { %705 = vmatpush3.bf16.msra.mxu0 %v746_v15  ;;  %710 = vmatprep.mubr.msk.bf16.mxu0 %vm321_vm1, %v286_v23 }
  0x24   :  { %706 = vmatprep.subr.bf16.mxu0 %v748_v17 }
  0x27   :  { %707 = vmatpush3.bf16.msra.mxu0 %v748_v17 }
  0x28   :  { %708 = vmatprep.subr.bf16.mxu0 %v750_v19 }
  0x2b   :  { %709 = vmatpush3.bf16.msra.mxu0 %v750_v19 }
  0x2e   :  { %711 = vmatmul.mubr.msk.bf16.vlgmr.msra.gmra.mrb[4].mxu0 %vm321_vm1, %v287_v26  ;;  %v271_v26 = vld [vmem:[%s1087_s9 + $0x8] sm:$0xff] }
  0x2f   :  { %714 = vmatprep.mubr.msk.bf16.mxu0 %vm321_vm1, %v288_v31  ;;  %v1003_v31 = vld [vmem:[%s1087_s9 + $0x28] sm:$0xff] }
  0x36   :  { %715 = vmatmul.mubr.msk.bf16.gmra.mrb[8].mxu0 %vm321_vm1, %v289_v34 }
  0xf5   :  { %v143_v36 = vpop.f32.mrb[0].mxu0 }
  0xf6   :  { %v144_v37 = vadd.f32 %v581_v35, %v143_v36  ;;  %v682_v38 = vpop.f32.mrb[1].mxu0  ;;  %v272_v36 = vld [vmem:[%s1087_s9 + $0x10] sm:$0xff] }
  0xf7   :  { %v146_v39 = vpop.f32.mrb[2].mxu0  ;;  %v273_v38 = vld [vmem:[%s1087_s9 + $0x18] sm:$0xff] }
  0xf8   :  { %v590_v40 = vmul.f32 -1.442695, %v144_v37  ;;  %v683_v41 = vpop.f32.mrb[3].mxu0 }
  0xfa   :  { %756 = vpow2.f32 %v590_v40 }
 0x101   :  { %v712_v61 = vpop.f32.mrb[4].mxu0 }
 0x102   :  { %v368_v62 = vpop.f32.mrb[5].mxu0  ;;  %v377_v21 = vadd.f32 %v712_v61, %v969_v8 }
 0x103   :  { %v713_v63 = vpop.f32.mrb[6].mxu0  ;;  %v369_v22 = vadd.f32 %v969_v8, %v368_v62 }
 0x104   :  { %v757_v42 = vpop.eup %756  ;;  %v371_v0 = vpop.f32.mrb[7].mxu0  ;;  %v380_v23 = vadd.f32 %v713_v63, %v969_v8 }
 0x105   :  { %v152_v43 = vadd.f32 1.0, %v757_v42  ;;  %v372_v14 = vadd.f32 %v969_v8, %v371_v0 }
 0x107   :  { %758 = vrcp.f32 %v152_v43 }
 0x109   :  { %v716_v1 = vpop.f32.mrb[8].mxu0 }
 0x10a   :  { %v384_v2 = vpop.f32.mrb[9].mxu0  ;;  %v393_v17 = vadd.f32 %v716_v1, %v969_v8 }
 0x10b   :  { %v717_v3 = vpop.f32.mrb[10].mxu0  ;;  %v385_v18 = vadd.f32 %v969_v8, %v384_v2 }
 0x10c   :  { %v387_v4 = vpop.f32.mrb[11].mxu0  ;;  %v396_v20 = vadd.f32 %v717_v3, %v969_v8 }
 0x10d   :  { %v388_v24 = vadd.f32 %v969_v8, %v387_v4 }
 0x111   :  { %v759_v46 = vpop.eup %758 }
 0x112   :  { %v155_v47 = vmul.f32 %v759_v46, %v144_v37  ;;  %v270_v37 = vld [vmem:[%s1087_s9] sm:$0xff] }
 0x114   :  { %v156_v49 = vpack.c.bf16 %v155_v47, %v155_v47 }
 0x116   :  { %701 = vmatmul.mubr.bf16.vlgmr.msra.gmra.mrb[0].mxu1 %v156_v49 }
 0x117   :  { %719 = vmatpush3.bf16.msra.mxu1 %v753_v28  ;;  %724 = vmatprep.mubr.msk.bf16.mxu1 %vm321_vm1, %v436_v48  ;;  %v550_v28 = vsub.s32 1, %v400_v6 }
 0x118   :  { %720 = vmatprep.subr.bf16.mxu1 %v754_v50 }
 0x11b   :  { %721 = vmatpush3.bf16.msra.mxu1 %v754_v50 }
 0x11c   :  { %722 = vmatprep.subr.bf16.mxu1 %v755_v51 }
 0x11f   :  { %723 = vmatpush3.bf16.msra.mxu1 %v755_v51 }
 0x122   :  { %725 = vmatmul.mubr.msk.bf16.vlgmr.msra.gmra.mrb[4].mxu1 %vm321_vm1, %v437_v56 }
 0x123   :  { %728 = vmatprep.mubr.msk.bf16.mxu1 %vm321_vm1, %v438_v57 }
 0x12a   :  { %729 = vmatmul.mubr.msk.bf16.gmra.mrb[8].mxu1 %vm321_vm1, %v439_v60 }
 0x1e9   :  { %v262_v9 = vpop.f32.mrb[0].mxu1 }
 0x1ea   :  { %v263_v11 = vadd.f32 %v591_v7, %v262_v9  ;;  %v702_v13 = vpop.f32.mrb[1].mxu1 }
 0x1eb   :  { %v265_v15 = vpop.f32.mrb[2].mxu1 }
 0x1ec   :  { %v269_v16 = vadd.f32 %v268_v10, %v263_v11  ;;  %v703_v19 = vpop.f32.mrb[3].mxu1 }
 0x1ee   :  { %v402_v25 = vrot.slane %v269_v16, %v401_v12  ;;  %v551_v52 = vrot.slane %v269_v16, %v550_v28 }
 0x1f0   :  { %v404_v32 = vadd.f32 %v402_v25, %v372_v14  ;;  %v409_v33 = vadd.f32 %v402_v25, %v393_v17  ;;  %v407_v34 = vadd.f32 %v402_v25, %v385_v18  ;;  %v410_v35 = vadd.f32 %v402_v25, %v396_v20 }
 0x1f1   :  { %v408_v39 = vadd.f32 %v402_v25, %v388_v24  ;;  %v405_v40 = vadd.f32 %v402_v25, %v377_v21  ;;  %v403_v41 = vadd.f32 %v402_v25, %v369_v22  ;;  %v406_v42 = vadd.f32 %v402_v25, %v380_v23 }
 0x1f2   :  { %v412_v43 = vadd.f32 %v404_v32, %v271_v26  ;;  %v417_v44 = vadd.f32 %v409_v33, %v988_v27  ;;  %v415_v45 = vadd.f32 %v407_v34, %v993_v29  ;;  %v418_v46 = vadd.f32 %v410_v35, %v998_v30 }
 0x1f3   :  { %v416_v47 = vadd.f32 %v408_v39, %v1003_v31  ;;  %v413_v48 = vadd.f32 %v405_v40, %v272_v36  ;;  %v411_v49 = vadd.f32 %v403_v41, %v270_v37  ;;  %v414_v50 = vadd.f32 %v406_v42, %v273_v38 }
 0x1f4   :  { %420 = vst [vmem:[%s1088_s10 + $0x8] sm:$0xff] %v412_v43  ;;  %425 = vst [vmem:[%s1088_s10 + $0x30] sm:$0xff] %v417_v44 }
 0x1f5   :  { %423 = vst [vmem:[%s1088_s10 + $0x20] sm:$0xff] %v415_v45  ;;  %426 = vst [vmem:[%s1088_s10 + $0x38] sm:$0xff] %v418_v46  ;;  %v726_v51 = vpop.f32.mrb[4].mxu1 }
 0x1f6   :  { %424 = vst [vmem:[%s1088_s10 + $0x28] sm:$0xff] %v416_v47  ;;  %421 = vst [vmem:[%s1088_s10 + $0x10] sm:$0xff] %v413_v48  ;;  %v526_v53 = vadd.f32 %v726_v51, %v969_v8  ;;  %v517_v54 = vpop.f32.mrb[5].mxu1 }
 0x1f7   :  { %419 = vst [vmem:[%s1088_s10] sm:$0xff] %v411_v49  ;;  %422 = vst [vmem:[%s1088_s10 + $0x18] sm:$0xff] %v414_v50  ;;  %v518_v55 = vadd.f32 %v969_v8, %v517_v54  ;;  %v727_v56 = vpop.f32.mrb[6].mxu1 }
 0x1f8   :  { %v554_v57 = vadd.f32 %v551_v52, %v526_v53  ;;  %v529_v58 = vadd.f32 %v727_v56, %v969_v8  ;;  %v520_v59 = vpop.f32.mrb[7].mxu1 }
 0x1f9   :  { %v552_v60 = vadd.f32 %v551_v52, %v518_v55  ;;  %v521_v61 = vadd.f32 %v969_v8, %v520_v59 }
 0x1fa   :  { %v562_v62 = vadd.f32 %v554_v57, %v272_v36  ;;  %v555_v63 = vadd.f32 %v551_v52, %v529_v58 }
 0x1fb   :  { %v560_v0 = vadd.f32 %v552_v60, %v270_v37  ;;  %v553_v1 = vadd.f32 %v551_v52, %v521_v61 }
 0x1fc   :  { %626 = vst [vmem:[%s1088_s10 + $0x50] sm:$0xff] %v562_v62  ;;  %v563_v2 = vadd.f32 %v555_v63, %v273_v38 }
 0x1fd   :  { %624 = vst [vmem:[%s1088_s10 + $0x40] sm:$0xff] %v560_v0  ;;  %v561_v3 = vadd.f32 %v553_v1, %v271_v26  ;;  %v730_v4 = vpop.f32.mrb[8].mxu1 }
 0x1fe   :  { %627 = vst [vmem:[%s1088_s10 + $0x58] sm:$0xff] %v563_v2  ;;  %v542_v5 = vadd.f32 %v730_v4, %v969_v8  ;;  %v533_v6 = vpop.f32.mrb[9].mxu1 }
 0x1ff   :  { %625 = vst [vmem:[%s1088_s10 + $0x48] sm:$0xff] %v561_v3  ;;  %v534_v7 = vadd.f32 %v969_v8, %v533_v6  ;;  %v731_v9 = vpop.f32.mrb[10].mxu1 }
 0x200   :  { %v558_v10 = vadd.f32 %v551_v52, %v542_v5  ;;  %v545_v11 = vadd.f32 %v731_v9, %v969_v8  ;;  %v536_v12 = vpop.f32.mrb[11].mxu1 }
 0x201   :  { %v556_v13 = vadd.f32 %v551_v52, %v534_v7  ;;  %v537_v14 = vadd.f32 %v969_v8, %v536_v12 }
 0x202   :  { %v566_v15 = vadd.f32 %v558_v10, %v988_v27  ;;  %v559_v16 = vadd.f32 %v551_v52, %v545_v11 }
 0x203   :  { %v564_v17 = vadd.f32 %v556_v13, %v993_v29  ;;  %v557_v18 = vadd.f32 %v551_v52, %v537_v14 }
 0x204   :  { %630 = vst [vmem:[%s1088_s10 + $0x70] sm:$0xff] %v566_v15  ;;  %v567_v19 = vadd.f32 %v559_v16, %v998_v30 }
 0x205   :  { %628 = vst [vmem:[%s1088_s10 + $0x60] sm:$0xff] %v564_v17  ;;  %v565_v20 = vadd.f32 %v557_v18, %v1003_v31 }
 0x206   :  { %631 = vst [vmem:[%s1088_s10 + $0x78] sm:$0xff] %v567_v19 }
 0x207   :  { %629 = vst [vmem:[%s1088_s10 + $0x68] sm:$0xff] %v565_v20 }

// kernel: flow_transformer_forward.5
= control target key start
LH: loop header
LB: loop body
LE: loop exit
PB: predicated region body
PF: predicated region fallthrough
CT: control target
= control target key end

     0   :  { %s3908_s25 = smov 0   ;;  %s4777_s0 = inlined_call_operand.vmem [shape: f32[2,64,128], index: 0, kind: input, shape index: {}]   ;;  %s4778_s1 = inlined_call_operand.vmem [shape: bf16[128,384], index: 1, kind: input, shape index: {}]   ;;  %s4779_s2 = inlined_call_operand.vmem [shape: f32[1,384], index: 2, kind: input, shape index: {}]   ;;  %s4780_s3 = inlined_call_operand.vmem [shape: bf16[128,128], index: 3, kind: input, shape index: {}]   ;;  %s4781_s4 = inlined_call_operand.vmem [shape: f32[1,128], index: 4, kind: input, shape index: {}]   ;;  %s4782_s5 = inlined_call_operand.vmem [shape: f32[1,128], index: 5, kind: input, shape index: {}]   ;;  %s4783_s6 = inlined_call_operand.vmem [shape: f32[1,128], index: 6, kind: input, shape index: {}]   ;;  %s4784_s7 = inlined_call_operand.vmem [shape: f32[1,128], index: 7, kind: input, shape index: {}]   ;;  %s4785_s8 = inlined_call_operand.vmem [shape: f32[1,128], index: 8, kind: input, shape index: {}]   ;;  %s4786_s9 = inlined_call_operand.vmem [shape: bf16[128,256], index: 9, kind: input, shape index: {}]   ;;  %s4787_s10 = inlined_call_operand.vmem [shape: f32[1,256], index: 10, kind: input, shape index: {}]   ;;  %s4788_s11 = inlined_call_operand.vmem [shape: bf16[256,128], index: 11, kind: input, shape index: {}]   ;;  %s4789_s12 = inlined_call_operand.vmem [shape: f32[1,128], index: 12, kind: input, shape index: {}]   ;;  %s4790_s13 = inlined_call_operand.vmem [shape: f32[2,64,128], index: 13, kind: output, shape index: {}]  }
   0x1 LB: > { %s3055_s26 = sadd.s32 4294967295, %s3832_s25   ;;  %p3059_p0 = scmp.ge.s32.totalorder %s3832_s25, 1  ;;  %s3832_s25 = sphi %s3908_s25, %s23_s25  }
   0x2   : > { %p387_p1 = scmp.lt.s32.totalorder %s3832_s25, 3 }
   0x4   : > { %p388_p2 = pnand %p3059_p0, %p387_p1 }
   0x5   : > { %p431_p3 = scmp.lt.s32.totalorder (!%p388_p2), %s3055_s26, 1  ;;  %v3578_v8 = vld [vmem:[%s4778_s1 + $0x4] ss:$12 sps:$4 sm:$0xff] (!%p388_p2)   ;;  %v3580_v9 = vld [vmem:[%s4778_s1] ss:$12 sps:$4 sm:$0xff] (!%p388_p2)   ;;  %v3834_v63 = vmov (!%p388_p2), 0  }
   0x6   : > { %391 = sbr.rel (%p388_p2) target bundleno = 3851 (0xf0b), region = 72  ;;  %v3581_v10 = vld [vmem:[%s4778_s1 + $0x1c] ss:$12 sps:$4 sm:$0xff] (!%p388_p2)   ;;  %750 = vmatprep.subr.bf16.mxu0 (!%p388_p2), %v3578_v8  ;;  %v3584_v44 = vld [vmem:[%s4778_s1 + $0x18] ss:$12 sps:$4 sm:$0xff] (!%p388_p2)   ;;  %782 = vmatprep.mubr.bf16.mxu0 (!%p388_p2), %v3834_v63  ;;  %vm912_vm0 = vcmask (!%p388_p2), 261120  }
   0x7   : > { %v3583_v11 = vld [vmem:[%s4778_s1 + $0x8] ss:$12 sps:$4 sm:$0xff] (!%p388_p2)   ;;  %751 = vmatpush1.bf16.msra.mxu0 (!%p388_p2), %v3580_v9  ;;  %v3587_v46 = vld [vmem:[%s4778_s1 + $0x20] ss:$12 sps:$4 sm:$0xff] (!%p388_p2)   ;;  %v3588_v47 = vld [vmem:[%s4778_s1 + $0x30] ss:$12 sps:$4 sm:$0xff] (!%p388_p2)  }
   0x8   : > { %3326 = vmatprep.subr.bf16.mxu1 (!%p388_p2), %v3583_v11  ;;  %752 = vmatprep.subr.bf16.mxu0 (!%p388_p2), %v3581_v10  ;;  %v3585_v45 = vld [vmem:[%s4778_s1 + $0x34] ss:$12 sps:$4 sm:$0xff] (!%p388_p2)   ;;  %v3589_v48 = vld [vmem:[%s4778_s1 + $0x4c] ss:$12 sps:$4 sm:$0xff] (!%p388_p2)   ;;  %v3593_v51 = vld [vmem:[%s4778_s1 + $0x64] ss:$12 sps:$4 sm:$0xff] (!%p388_p2)  }
   0x9   : > { %3327 = vmatpush3.bf16.msra.mxu1 (!%p388_p2), %v3583_v11  ;;  %v3591_v49 = vld [vmem:[%s4778_s1 + $0x38] ss:$12 sps:$4 sm:$0xff] (!%p388_p2)   ;;  %v3592_v50 = vld [vmem:[%s4778_s1 + $0x48] ss:$12 sps:$4 sm:$0xff] (!%p388_p2)   ;;  %v3595_v52 = vld [vmem:[%s4778_s1 + $0x50] ss:$12 sps:$4 sm:$0xff] (!%p388_p2)  }
   0xa   : > { %3328 = vmatprep.subr.bf16.mxu1 (!%p388_p2), %v3587_v46  ;;  %v3596_v53 = vld [vmem:[%s4778_s1 + $0x60] ss:$12 sps:$4 sm:$0xff] (!%p388_p2)   ;;  %v3597_v54 = vld [vmem:[%s4778_s1 + $0x7c] ss:$12 sps:$4 sm:$0xff] (!%p388_p2)   ;;  %v3600_v56 = vld [vmem:[%s4778_s1 + $0x78] ss:$12 sps:$4 sm:$0xff] (!%p388_p2)  }
   0xb   : > { %753 = vmatpush1.bf16.msra.mxu0 (!%p388_p2), %v3584_v44  ;;  %v3599_v55 = vld [vmem:[%s4778_s1 + $0x68] ss:$12 sps:$4 sm:$0xff] (!%p388_p2)   ;;  %v3603_v58 = vld [vmem:[%s4778_s1 + $0x80] ss:$12 sps:$4 sm:$0xff] (!%p388_p2)   ;;  %v3604_v59 = vld [vmem:[%s4778_s1 + $0x90] ss:$12 sps:$4 sm:$0xff] (!%p388_p2)  }
   0xc   : > { %754 = vmatprep.subr.bf16.mxu0 (!%p388_p2), %v3585_v45  ;;  %v3601_v57 = vld [vmem:[%s4778_s1 + $0x94] ss:$12 sps:$4 sm:$0xff] (!%p388_p2)   ;;  %v3605_v60 = vld [vmem:[%s4778_s1 + $0xac] ss:$12 sps:$4 sm:$0xff] (!%p388_p2)   ;;  %vm1002_vm1 = vcmask (!%p388_p2), 523264   ;;  %s3835_s16 = smov (!%p388_p2), 96  }
   0xd   : > { %s4792_s26 = smov (!%p431_p3, %s3055_s26), 1  ;;  %3329 = vmatpush3.bf16.msra.mxu1 %v3587_v46  ;;  %v3607_v61 = vld [vmem:[%s4778_s1 + $0x98] ss:$12 sps:$4 sm:$0xff]   ;;  %v3608_v62 = vld [vmem:[%s4778_s1 + $0xa8] ss:$12 sps:$4 sm:$0xff]   ;;  %s3836_s17 = smov 64  }
   0xe   : > { %s3184_s27 = sshll.u32 %s4792_s26, 6  ;;  %3330 = vmatprep.subr.bf16.mxu1 %v3591_v49  ;;  %s3837_s18 = smov 32  }
   0xf   : > { %s3924_s30 = scalar_lea.vmem %s4777_s0, %s3184_s27  ;;  %755 = vmatpush1.bf16.msra.mxu0 %v3588_v47  ;;  %s4756_s15 = scalar_lea.vmem %s4790_s13, %s3184_s27 }
  0x10   : > { %v442_v0 = vld [vmem:[%s3924_s30] sm:$0xff]  ;;  %v444_v1 = vld [vmem:[%s3924_s30 + $0x10] sm:$0xff]  ;;  %v443_v2 = vld [vmem:[%s3924_s30 + $0x8] sm:$0xff]  ;;  %756 = vmatprep.subr.bf16.mxu0 %v3589_v48 }
  0x11   : > { %452 = vadd.xlane.f32.xlu0 %v442_v0  ;;  %456 = vadd.xlane.f32.xlu1 %v444_v1  ;;  %v445_v3 = vld [vmem:[%s3924_s30 + $0x18] sm:$0xff]  ;;  %v446_v4 = vld [vmem:[%s3924_s30 + $0x20] sm:$0xff]  ;;  %v447_v5 = vld [vmem:[%s3924_s30 + $0x28] sm:$0xff] }
  0x12   : > { %v448_v6 = vld [vmem:[%s3924_s30 + $0x30] sm:$0xff]  ;;  %v449_v7 = vld [vmem:[%s3924_s30 + $0x38] sm:$0xff]  ;;  %3331 = vmatpush3.bf16.msra.mxu1 %v3591_v49 }
  0x13   : > { %757 = vmatpush1.bf16.msra.mxu0 %v3592_v50  ;;  %3332 = vmatprep.subr.bf16.mxu1 %v3595_v52 }
  0x14   : > { %758 = vmatprep.subr.bf16.mxu0 %v3593_v51 }
  0x15   : > { %454 = vadd.xlane.f32.xlu0 %v443_v2  ;;  %458 = vadd.xlane.f32.xlu1 %v445_v3 }
  0x16   : > { %3333 = vmatpush3.bf16.msra.mxu1 %v3595_v52 }
  0x17   : > { %759 = vmatpush1.bf16.msra.mxu0 %v3596_v53  ;;  %3334 = vmatprep.subr.bf16.mxu1 %v3599_v55 }
  0x18   : > { %760 = vmatprep.subr.bf16.mxu0 %v3597_v54 }
  0x19   : > { %460 = vadd.xlane.f32.xlu0 %v446_v4  ;;  %462 = vadd.xlane.f32.xlu1 %v447_v5 }
  0x1a   : > { %3335 = vmatpush3.bf16.msra.mxu1 %v3599_v55 }
  0x1b   : > { %761 = vmatpush1.bf16.msra.mxu0 %v3600_v56  ;;  %3336 = vmatprep.subr.bf16.mxu1 %v3603_v58 }
  0x1c   : > { %762 = vmatprep.subr.bf16.mxu0 %v3601_v57 }
  0x1d   : > { %464 = vadd.xlane.f32.xlu0 %v448_v6  ;;  %466 = vadd.xlane.f32.xlu1 %v449_v7 }
  0x1e   : > { %3337 = vmatpush3.bf16.msra.mxu1 %v3603_v58 }
  0x1f   : > { %763 = vmatpush1.bf16.msra.mxu0 %v3604_v59  ;;  %3338 = vmatprep.subr.bf16.mxu1 %v3607_v61 }
  0x20   : > { %764 = vmatprep.subr.bf16.mxu0 %v3605_v60 }
  0x22   : > { %3339 = vmatpush3.bf16.msra.mxu1 %v3607_v61 }
  0x23   : > { %765 = vmatpush1.bf16.msra.mxu0 %v3608_v62 }
  0x9e   : > { %v453_v12 = vpop.xlane.xlu0 %452  ;;  %v457_v13 = vpop.xlane.xlu1 %456 }
  0x9f   : > { %v469_v14 = vmul.f32 0.0078125, %v453_v12  ;;  %v471_v15 = vmul.f32 0.0078125, %v457_v13 }
  0xa1   : > { %v3946_v16 = vsub.f32 %v442_v0, %v469_v14  ;;  %v3948_v17 = vsub.f32 %v444_v1, %v471_v15  ;;  %v3609_v0 = vld [vmem:[%s4778_s1 + $0xb0] ss:$12 sps:$4 sm:$0xff]  }
  0xa2   : > { %v455_v18 = vpop.xlane.xlu0 %454  ;;  %v459_v19 = vpop.xlane.xlu1 %458  ;;  %3340 = vmatprep.subr.bf16.mxu1 %v3609_v0 }
  0xa3   : > { %v470_v20 = vmul.f32 0.0078125, %v455_v18  ;;  %v485_v21 = vmul.f32 %v3946_v16, %v3946_v16  ;;  %v472_v22 = vmul.f32 0.0078125, %v459_v19  ;;  %v487_v23 = vmul.f32 %v3948_v17, %v3948_v17  ;;  %3341 = vmatpush3.bf16.msra.mxu1 %v3609_v0 }
  0xa5   : > { %493 = vadd.xlane.f32.xlu0 %v485_v21  ;;  %v3954_v24 = vsub.f32 %v443_v2, %v470_v20  ;;  %v3956_v25 = vsub.f32 %v445_v3, %v472_v22 }
  0xa6   : > { %v461_v26 = vpop.xlane.xlu0 %460  ;;  %v463_v27 = vpop.xlane.xlu1 %462 }
  0xa7   : > { %v473_v28 = vmul.f32 0.0078125, %v461_v26  ;;  %v486_v29 = vmul.f32 %v3954_v24, %v3954_v24  ;;  %v474_v30 = vmul.f32 0.0078125, %v463_v27  ;;  %v488_v31 = vmul.f32 %v3956_v25, %v3956_v25 }
  0xa9   : > { %497 = vadd.xlane.f32.xlu0 %v487_v23  ;;  %495 = vadd.xlane.f32.xlu1 %v486_v29  ;;  %v3962_v32 = vsub.f32 %v446_v4, %v473_v28  ;;  %v3964_v33 = vsub.f32 %v447_v5, %v474_v30  ;;  %v3064_v30 = vld [vmem:[%s4782_s5] ss:$0 sm:$0xff] }
  0xaa   : > { %v465_v34 = vpop.xlane.xlu0 %464  ;;  %v467_v35 = vpop.xlane.xlu1 %466 }
  0xab   : > { %v475_v36 = vmul.f32 0.0078125, %v465_v34  ;;  %v489_v37 = vmul.f32 %v3962_v32, %v3962_v32  ;;  %v476_v38 = vmul.f32 0.0078125, %v467_v35  ;;  %v490_v39 = vmul.f32 %v3964_v33, %v3964_v33 }
  0xad   : > { %499 = vadd.xlane.f32.xlu1 %v488_v31  ;;  %501 = vadd.xlane.f32.xlu0 %v489_v37  ;;  %v3970_v40 = vsub.f32 %v448_v6, %v475_v36  ;;  %v3972_v41 = vsub.f32 %v449_v7, %v476_v38  ;;  %v3065_v38 = vld [vmem:[%s4783_s6] ss:$0 sm:$0xff] }
  0xaf   : > { %v491_v42 = vmul.f32 %v3970_v40, %v3970_v40  ;;  %v492_v43 = vmul.f32 %v3972_v41, %v3972_v41 }
  0xb1   : > { %503 = vadd.xlane.f32.xlu1 %v490_v39  ;;  %505 = vadd.xlane.f32.xlu0 %v491_v42 }
  0xb5   : > { %507 = vadd.xlane.f32.xlu1 %v492_v43 }
 0x132   : > { %v494_v1 = vpop.xlane.xlu0 %493 }
 0x133   : > { %v509_v2 = vmul.f32 0.0078125, %v494_v1 }
 0x135   : > { %v517_v3 = vadd.f32 1e-05, %v509_v2 }
 0x136   : > { %v496_v4 = vpop.xlane.xlu1 %495  ;;  %v498_v5 = vpop.xlane.xlu0 %497 }
 0x137   : > { %3658 = vrsqrt.f32 %v517_v3  ;;  %v510_v6 = vmul.f32 0.0078125, %v496_v4  ;;  %v511_v7 = vmul.f32 0.0078125, %v498_v5  ;;  %v605_v3 = vld [vmem:[%s4779_s2] sm:$0x7] }
 0x139   : > { %v518_v8 = vadd.f32 1e-05, %v510_v6  ;;  %v519_v9 = vadd.f32 1e-05, %v511_v7 }
 0x13a   : > { %v500_v10 = vpop.xlane.xlu1 %499  ;;  %v502_v11 = vpop.xlane.xlu0 %501 }
 0x13b   : > { %3660 = vrsqrt.f32 %v518_v8  ;;  %v512_v12 = vmul.f32 0.0078125, %v500_v10  ;;  %v513_v13 = vmul.f32 0.0078125, %v502_v11 }
 0x13c   : > { %3662 = vrsqrt.f32 %v519_v9 }
 0x13d   : > { %v520_v14 = vadd.f32 1e-05, %v512_v12  ;;  %v521_v15 = vadd.f32 1e-05, %v513_v13 }
 0x13e   : > { %v504_v18 = vpop.xlane.xlu1 %503  ;;  %v506_v19 = vpop.xlane.xlu0 %505 }
 0x13f   : > { %3664 = vrsqrt.f32 %v520_v14  ;;  %v514_v20 = vmul.f32 0.0078125, %v504_v18  ;;  %v515_v21 = vmul.f32 0.0078125, %v506_v19 }
 0x140   : > { %3666 = vrsqrt.f32 %v521_v15 }
 0x141   : > { %v3659_v22 = vpop.eup %3658  ;;  %v522_v23 = vadd.f32 1e-05, %v514_v20  ;;  %v523_v26 = vadd.f32 1e-05, %v515_v21 }
 0x142   : > { %v508_v27 = vpop.xlane.xlu1 %507  ;;  %v533_v28 = vmul.f32 %v3659_v22, %v3946_v16 }
 0x143   : > { %3668 = vrsqrt.f32 %v522_v23  ;;  %v516_v29 = vmul.f32 0.0078125, %v508_v27 }
 0x144   : > { %3670 = vrsqrt.f32 %v523_v26  ;;  %v547_v37 = vmul.f32 %v3064_v30, %v533_v28 }
 0x145   : > { %v3661_v31 = vpop.eup %3660  ;;  %v524_v34 = vadd.f32 1e-05, %v516_v29 }
 0x146   : > { %v3663_v35 = vpop.eup %3662  ;;  %v534_v36 = vmul.f32 %v3661_v31, %v3954_v24  ;;  %v561_v45 = vadd.f32 %v3065_v38, %v547_v37 }
 0x147   : > { %3672 = vrsqrt.f32 %v524_v34  ;;  %v535_v16 = vmul.f32 %v3663_v35, %v3948_v17 }
 0x148   : > { %v548_v39 = vmul.f32 %v3064_v30, %v534_v36 }
 0x149   : > { %v3665_v42 = vpop.eup %3664  ;;  %v549_v43 = vmul.f32 %v3064_v30, %v535_v16 }
 0x14a   : > { %v3667_v44 = vpop.eup %3666  ;;  %v562_v46 = vadd.f32 %v3065_v38, %v548_v39  ;;  %v536_v47 = vmul.f32 %v3665_v42, %v3956_v25 }
 0x14b   : > { %v537_v48 = vmul.f32 %v3667_v44, %v3962_v32  ;;  %v563_v51 = vadd.f32 %v3065_v38, %v549_v43 }
 0x14c   : > { %v569_v49 = vpack.c.bf16 %v562_v46, %v561_v45  ;;  %v550_v24 = vmul.f32 %v3064_v30, %v536_v47 }
 0x14d   : > { %v3669_v50 = vpop.eup %3668  ;;  %v551_v54 = vmul.f32 %v3064_v30, %v537_v48 }
 0x14e   : > { %v3671_v52 = vpop.eup %3670  ;;  %783 = vmatmul.mubr.bf16.vlgmr.msra.gmra.mrb[0].mxu0 %v569_v49  ;;  %3342 = vmatprep.mubr.bf16.mxu1 %v569_v49  ;;  %v564_v53 = vadd.f32 %v3065_v38, %v550_v24  ;;  %v538_v17 = vmul.f32 %v3669_v50, %v3964_v33 }
 0x14f   : > { %792 = vmatprep.mubr.bf16.mxu0 %v3834_v63  ;;  %v539_v55 = vmul.f32 %v3671_v52, %v3970_v40  ;;  %v565_v32 = vadd.f32 %v3065_v38, %v551_v54  ;;  %v607_v40 = vlaneseq }
 0x150   : > { %v570_v56 = vpack.c.bf16 %v564_v53, %v563_v51  ;;  %v552_v57 = vmul.f32 %v3064_v30, %v538_v17 }
 0x151   : > { %v3673_v25 = vpop.eup %3672  ;;  %v553_v60 = vmul.f32 %v3064_v30, %v539_v55  ;;  %v4056_v2 = vshrl.u32 %v607_v40, 7 }
 0x152   : > { %3343 = vmatmul.mubr.bf16.vlgmr.msra.gmra.mrb[0].mxu1 %v570_v56  ;;  %v566_v58 = vadd.f32 %v3065_v38, %v552_v57  ;;  %v540_v59 = vmul.f32 %v3673_v25, %v3972_v41 }
 0x153   : > { %v567_v0 = vadd.f32 %v3065_v38, %v553_v60  ;;  %v609_v41 = vsub.s32 0, %v4056_v2  ;;  %v613_v4 = vsub.s32 1, %v4056_v2  ;;  %v617_v6 = vsub.s32 2, %v4056_v2 }
 0x154   : > { %v571_v61 = vpack.c.bf16 %v566_v58, %v565_v32  ;;  %v554_v62 = vmul.f32 %v3064_v30, %v540_v59 }
 0x155   : > { %v4065_v5 = vrot.slane %v605_v3, %v609_v41  ;;  %v4070_v8 = vrot.slane %v605_v3, %v613_v4  ;;  %v618_v14 = vrot.slane %v605_v3, %v617_v6 }
 0x156   : > { %793 = vmatmul.mubr.bf16.gmra.mrb[4].mxu0 %v570_v56  ;;  %3346 = vmatprep.mubr.bf16.mxu1 %v571_v61  ;;  %v568_v33 = vadd.f32 %v3065_v38, %v554_v62 }
 0x157   : > { %802 = vmatprep.mubr.bf16.mxu0 %v3834_v63 }
 0x158   : > { %v572_v1 = vpack.c.bf16 %v568_v33, %v567_v0 }
 0x15a   : > { %3347 = vmatmul.mubr.bf16.gmra.mrb[4].mxu1 %v572_v1 }
 0x15e   : > { %803 = vmatmul.mubr.bf16.gmra.mrb[8].mxu0 %v571_v61 }
 0x15f   : > { %812 = vmatprep.mubr.bf16.mxu0 %v3834_v63 }
 0x166   : > { %813 = vmatmul.mubr.bf16.gmra.mrb[12].mxu0 %v572_v1 }
 0x221   : > { %v784_v7 = vpop.f32.mrb[0].mxu0 }
 0x222   : > { %v786_v9 = vpop.f32.mrb[1].mxu0  ;;  %v785_v11 = vadd.f32 %v784_v7, %v4065_v5 }
 0x223   : > { %v788_v10 = vpop.f32.mrb[2].mxu0  ;;  %v787_v15 = vadd.f32 %v786_v9, %v4070_v8 }
 0x224   : > { %v789_v12 = vadd.f32 %v788_v10, %v4065_v5  ;;  %v790_v13 = vpop.f32.mrb[3].mxu0 }
 0x225   : > { %v791_v18 = vadd.f32 %v790_v13, %v4070_v8  ;;  %v3344_v19 = vpop.f32.mrb[0].mxu1 }
 0x226   : > { %v4076_v20 = vpack.c.bf16 %v789_v12, %v785_v11  ;;  %v857_v21 = vpop.f32.mrb[1].mxu1  ;;  %v866_v26 = vadd.f32 %v3344_v19, %v618_v14 }
 0x227   : > { %v4078_v22 = vpack.c.bf16 %v791_v18, %v787_v15  ;;  %v3345_v23 = vpop.f32.mrb[2].mxu1  ;;  %v858_v29 = vadd.f32 %v857_v21, %v618_v14 }
 0x228   : > { %v869_v27 = vadd.f32 %v3345_v23, %v618_v14  ;;  %v860_v28 = vpop.f32.mrb[3].mxu1  ;;  %3358 = vmatprep.mubr.msk.bf16.mxu0 %vm912_vm0, %v4076_v20 }
 0x229   : > { %v861_v30 = vadd.f32 %v860_v28, %v618_v14  ;;  %v794_v31 = vpop.f32.mrb[4].mxu0  ;;  %3550 = vmatprep.subr.msk.bf16.mxu0 %vm912_vm0, %v4078_v22  ;;  %v926_v34 = vsel %vm912_vm0, %v4078_v22, 0 }
 0x22a   : > { %v4086_v35 = vpack.c.bf16 %v869_v27, %v866_v26  ;;  %v796_v36 = vpop.f32.mrb[5].mxu0  ;;  %3351 = vmatpush3.bf16.xpose.msra.mxu0 %v926_v34  ;;  %v795_v16 = vadd.f32 %v794_v31, %v4065_v5 }
 0x22b   : > { %v4088_v37 = vpack.c.bf16 %v861_v30, %v858_v29  ;;  %v798_v38 = vpop.f32.mrb[6].mxu0  ;;  %v797_v43 = vadd.f32 %v796_v36, %v4070_v8 }
 0x22c   : > { %v799_v39 = vadd.f32 %v798_v38, %v4065_v5  ;;  %v800_v42 = vpop.f32.mrb[7].mxu0 }
 0x22d   : > { %v801_v44 = vadd.f32 %v800_v42, %v4070_v8  ;;  %v3348_v45 = vpop.f32.mrb[4].mxu1  ;;  %3366 = vmatprep.subr.bf16.mxu1 %v4088_v37 }
 0x22e   : > { %v4095_v46 = vpack.c.bf16 %v799_v39, %v795_v16  ;;  %v873_v47 = vpop.f32.mrb[5].mxu1  ;;  %3367 = vmatpush3.bf16.msra.mxu1 %v4088_v37  ;;  %v882_v24 = vadd.f32 %v3348_v45, %v618_v14 }
 0x22f   : > { %v4098_v48 = vpack.c.bf16 %v801_v44, %v797_v43  ;;  %v3349_v49 = vpop.f32.mrb[6].mxu1  ;;  %3368 = vmatprep.subr.bf16.mxu1 %v4086_v35  ;;  %v874_v52 = vadd.f32 %v873_v47, %v618_v14 }
 0x230   : > { %v885_v50 = vadd.f32 %v3349_v49, %v618_v14  ;;  %v876_v51 = vpop.f32.mrb[7].mxu1 }
 0x231   : > { %v877_v53 = vadd.f32 %v876_v51, %v618_v14  ;;  %v804_v17 = vpop.f32.mrb[8].mxu0  ;;  %3551 = vmatprep.subr.msk.bf16.mxu0 %vm912_vm0, %v4098_v48  ;;  %v929_v54 = vsel %vm912_vm0, %v4098_v48, 0 }
 0x232   : > { %v4105_v55 = vpack.c.bf16 %v885_v50, %v882_v24  ;;  %v806_v56 = vpop.f32.mrb[9].mxu0  ;;  %3353 = vmatpush3.bf16.xpose.msra.mxu0 %v929_v54  ;;  %3369 = vmatpush3.bf16.msra.mxu1 %v4086_v35  ;;  %v805_v32 = vadd.f32 %v804_v17, %v4065_v5 }
 0x233   : > { %v4108_v57 = vpack.c.bf16 %v877_v53, %v874_v52  ;;  %v808_v25 = vpop.f32.mrb[10].mxu0  ;;  %v807_v60 = vadd.f32 %v806_v56, %v4070_v8 }
 0x234   : > { %v809_v58 = vadd.f32 %v808_v25, %v4065_v5  ;;  %v810_v59 = vpop.f32.mrb[11].mxu0 }
 0x235   : > { %v811_v61 = vadd.f32 %v810_v59, %v4070_v8  ;;  %3370 = vmatprep.subr.bf16.mxu1 %v4108_v57 }
 0x236   : > { %v4115_v62 = vpack.c.bf16 %v809_v58, %v805_v32  ;;  %3371 = vmatpush3.bf16.msra.mxu1 %v4108_v57 }
 0x237   : > { %v4118_v0 = vpack.c.bf16 %v811_v61, %v807_v60  ;;  %3372 = vmatprep.subr.bf16.mxu1 %v4105_v55 }
 0x239   : > { %v814_v33 = vpop.f32.mrb[12].mxu0  ;;  %3552 = vmatprep.subr.msk.bf16.mxu0 %vm912_vm0, %v4118_v0  ;;  %v932_v1 = vsel %vm912_vm0, %v4118_v0, 0 }
 0x23a   : > { %v816_v40 = vpop.f32.mrb[13].mxu0  ;;  %3355 = vmatpush3.bf16.xpose.msra.mxu0 %v932_v1  ;;  %3373 = vmatpush3.bf16.msra.mxu1 %v4105_v55  ;;  %v815_v6 = vadd.f32 %v814_v33, %v4065_v5 }
 0x23b   : > { %v818_v3 = vpop.f32.mrb[14].mxu0  ;;  %v817_v10 = vadd.f32 %v816_v40, %v4070_v8 }
 0x23c   : > { %v819_v7 = vadd.f32 %v818_v3, %v4065_v5  ;;  %v820_v9 = vpop.f32.mrb[15].mxu0 }
 0x23d   : > { %v821_v11 = vadd.f32 %v820_v9, %v4070_v8 }
 0x23e   : > { %v4130_v12 = vpack.c.bf16 %v819_v7, %v815_v6 }
 0x23f   : > { %v4132_v13 = vpack.c.bf16 %v821_v11, %v817_v10 }
 0x241   : > { %3553 = vmatprep.subr.msk.bf16.mxu0 %vm912_vm0, %v4132_v13  ;;  %v935_v14 = vsel %vm912_vm0, %v4132_v13, 0 }
 0x242   : > { %3357 = vmatpush3.bf16.xpose.msra.mxu0 %v935_v14 }
 0x249   : > { %3359 = vmatmul.mubr.msk.bf16.vlgmr.msra.gmra.mrb[16].mxu0 %vm912_vm0, %v4095_v46 }
 0x24a   : > { %3362 = vmatprep.mubr.msk.bf16.mxu0 %vm912_vm0, %v4115_v62 }
 0x251   : > { %3363 = vmatmul.mubr.msk.bf16.gmra.mrb[20].mxu0 %vm912_vm0, %v4130_v12 }
 0x31c   : > { %v3360_v5 = vpop.f32.mrb[16].mxu0 }
 0x31d   : > { %v971_v8 = vpop.f32.mrb[17].mxu0  ;;  %v1009_v23 = vsel %vm1002_vm1, %v3360_v5, -inf }
 0x31e   : > { %v3361_v15 = vpop.f32.mrb[18].mxu0  ;;  %v1003_v18 = vsel %vm1002_vm1, %v971_v8, -inf }
 0x31f   : > { %1004 = vmax.xlane.f32.xlu0 %v1003_v18  ;;  %v974_v19 = vpop.f32.mrb[19].mxu0  ;;  %v1012_v27 = vsel %vm1002_vm1, %v3361_v15, -inf }
 0x320   : > { %v1006_v21 = vsel %vm1002_vm1, %v974_v19, -inf }
 0x321   : > { %1007 = vmax.xlane.f32.xlu1 %v1006_v21 }
 0x323   : > { %1010 = vmax.xlane.f32.xlu0 %v1009_v23 }
 0x324   : > { %v3364_v26 = vpop.f32.mrb[20].mxu0 }
 0x325   : > { %1013 = vmax.xlane.f32.xlu1 %v1012_v27  ;;  %v987_v28 = vpop.f32.mrb[21].mxu0  ;;  %v1021_v36 = vsel %vm1002_vm1, %v3364_v26, -inf }
 0x326   : > { %v3365_v29 = vpop.f32.mrb[22].mxu0  ;;  %v1015_v30 = vsel %vm1002_vm1, %v987_v28, -inf }
 0x327   : > { %1016 = vmax.xlane.f32.xlu0 %v1015_v30  ;;  %v990_v31 = vpop.f32.mrb[23].mxu0  ;;  %v1024_v38 = vsel %vm1002_vm1, %v3365_v29, -inf }
 0x328   : > { %v1018_v34 = vsel %vm1002_vm1, %v990_v31, -inf }
 0x329   : > { %1019 = vmax.xlane.f32.xlu1 %v1018_v34 }
 0x32b   : > { %1022 = vmax.xlane.f32.xlu0 %v1021_v36 }
 0x32d   : > { %1025 = vmax.xlane.f32.xlu1 %v1024_v38 }
 0x3ac   : > { %v1005_v16 = vpop.xlane.xlu0 %1004 }
 0x3ad   : > { %v1027_v39 = vsub.f32 %v971_v8, %v1005_v16 }
 0x3ae   : > { %v1008_v42 = vpop.xlane.xlu1 %1007 }
 0x3af   : > { %v1028_v44 = vsub.f32 %v974_v19, %v1008_v42  ;;  %v1035_v47 = vmul.f32 1.442695, %v1027_v39 }
 0x3b0   : > { %v1011_v43 = vpop.xlane.xlu0 %1010 }
 0x3b1   : > { %v1029_v45 = vsub.f32 %v3360_v5, %v1011_v43  ;;  %v1037_v52 = vmul.f32 1.442695, %v1028_v44 }
 0x3b2   : > { %v1014_v49 = vpop.xlane.xlu1 %1013 }
 0x3b3   : > { %v1039_v24 = vmul.f32 1.442695, %v1029_v45  ;;  %v1030_v50 = vsub.f32 %v3361_v15, %v1014_v49 }
 0x3b4   : > { %v1017_v51 = vpop.xlane.xlu0 %1016 }
 0x3b5   : > { %3674 = vpow2.f32 %v1039_v24  ;;  %v1041_v53 = vmul.f32 1.442695, %v1030_v50  ;;  %v1031_v17 = vsub.f32 %v987_v28, %v1017_v51 }
 0x3b6   : > { %3676 = vpow2.f32 %v1035_v47  ;;  %v1020_v11 = vpop.xlane.xlu1 %1019 }
 0x3b7   : > { %3678 = vpow2.f32 %v1041_v53  ;;  %v1043_v25 = vmul.f32 1.442695, %v1031_v17  ;;  %v1032_v8 = vsub.f32 %v990_v31, %v1020_v11 }
 0x3b8   : > { %v1023_v54 = vpop.xlane.xlu0 %1022  ;;  %3680 = vpow2.f32 %v1037_v52 }
 0x3b9   : > { %v1033_v56 = vsub.f32 %v3364_v26, %v1023_v54  ;;  %v1045_v18 = vmul.f32 1.442695, %v1032_v8 }
 0x3ba   : > { %v1026_v14 = vpop.xlane.xlu1 %1025 }
 0x3bb   : > { %v1047_v32 = vmul.f32 1.442695, %v1033_v56  ;;  %v1034_v5 = vsub.f32 %v3365_v29, %v1026_v14 }
 0x3bd   : > { %3682 = vpow2.f32 %v1047_v32  ;;  %v1049_v15 = vmul.f32 1.442695, %v1034_v5 }
 0x3be   : > { %3684 = vpow2.f32 %v1043_v25 }
 0x3bf   : > { %v3675_v58 = vpop.eup %3674  ;;  %3686 = vpow2.f32 %v1049_v15 }
 0x3c0   : > { %v3677_v59 = vpop.eup %3676  ;;  %v1057_v60 = vsel %vm1002_vm1, %v3675_v58, 0.0  ;;  %3688 = vpow2.f32 %v1045_v18 }
 0x3c1   : > { %v3679_v61 = vpop.eup %3678  ;;  %1058 = vadd.xlane.f32.xlu0 %v1057_v60  ;;  %v1051_v40 = vsel %vm1002_vm1, %v3677_v59, 0.0 }
 0x3c2   : > { %v1060_v33 = vsel %vm1002_vm1, %v3679_v61, 0.0  ;;  %v3681_v1 = vpop.eup %3680 }
 0x3c3   : > { %1061 = vadd.xlane.f32.xlu1 %v1060_v33  ;;  %v1054_v3 = vsel %vm1002_vm1, %v3681_v1, 0.0 }
 0x3c5   : > { %1052 = vadd.xlane.f32.xlu0 %v1051_v40 }
 0x3c7   : > { %v4156_v6 = vpop.eup %3682  ;;  %1055 = vadd.xlane.f32.xlu1 %v1054_v3 }
 0x3c8   : > { %v1069_v7 = vsel %vm1002_vm1, %v4156_v6, 0.0  ;;  %v4160_v9 = vpop.eup %3684 }
 0x3c9   : > { %1070 = vadd.xlane.f32.xlu0 %v1069_v7  ;;  %v1063_v10 = vsel %vm1002_vm1, %v4160_v9, 0.0  ;;  %v3687_v19 = vpop.eup %3686 }
 0x3ca   : > { %v1072_v21 = vsel %vm1002_vm1, %v3687_v19, 0.0  ;;  %v3689_v23 = vpop.eup %3688 }
 0x3cb   : > { %v1066_v26 = vsel %vm1002_vm1, %v3689_v23, 0.0 }
 0x3cd   : > { %1064 = vadd.xlane.f32.xlu0 %v1063_v10 }
 0x3d8   : > { %1198 = vrot.lane.b32.xlu1 %v4098_v48, %s3835_s16 }
 0x3dc   : > { %1200 = vrot.lane.b32.xlu1 %v4118_v0, %s3835_s16 }
 0x3e3   : > { %1196 = vrot.lane.b32.xlu0 %v4078_v22, %s3835_s16 }
 0x3e7   : > { %1184 = vrot.lane.b32.xlu0 %v4076_v20, %s3835_s16 }
 0x3eb   : > { %1188 = vrot.lane.b32.xlu0 %v4115_v62, %s3835_s16 }
 0x400   : > { %1073 = vadd.xlane.f32.xlu1 %v1072_v21 }
 0x404   : > { %1067 = vadd.xlane.f32.xlu1 %v1066_v26 }
 0x415   : > { %1202 = vrot.lane.b32.xlu1 %v4132_v13, %s3835_s16 }
 0x419   : > { %1186 = vrot.lane.b32.xlu1 %v4095_v46, %s3835_s16 }
 0x41d   : > { %1190 = vrot.lane.b32.xlu1 %v4130_v12, %s3835_s16 }
 0x44e   : > { %v1059_v27 = vpop.xlane.xlu0 %1058 }
 0x450   : > { %v1062_v28 = vpop.xlane.xlu1 %1061 }
 0x451   : > { %3690 = vrcp.f32 %v1062_v28 }
 0x452   : > { %v1053_v29 = vpop.xlane.xlu0 %1052 }
 0x453   : > { %3692 = vrcp.f32 %v1053_v29 }
 0x454   : > { %3694 = vrcp.f32 %v1059_v27  ;;  %v1056_v30 = vpop.xlane.xlu1 %1055 }
 0x455   : > { %3696 = vrcp.f32 %v1056_v30 }
 0x456   : > { %v1071_v31 = vpop.xlane.xlu0 %1070 }
 0x458   : > { %v1199_v51 = vpop.permute.xlu1 %1198 }
 0x459   : > { %v1220_v52 = vsel %vm912_vm0, %v1199_v51, 0 }
 0x45a   : > { %v1065_v34 = vpop.xlane.xlu0 %1064 }
 0x45b   : > { %v3691_v36 = vpop.eup %3690 }
 0x45c   : > { %v1086_v43 = vmul.f32 %v3691_v36, %v3679_v61  ;;  %v1201_v53 = vpop.permute.xlu1 %1200 }
 0x45d   : > { %v3693_v38 = vpop.eup %3692  ;;  %v1223_v17 = vsel %vm912_vm0, %v1201_v53, 0 }
 0x45e   : > { %v3695_v16 = vpop.eup %3694  ;;  %v1197_v39 = vpop.permute.xlu0 %1196  ;;  %v1083_v44 = vmul.f32 %v3693_v38, %v3677_v59 }
 0x45f   : > { %v3697_v42 = vpop.eup %3696  ;;  %3554 = vmatprep.subr.msk.bf16.mxu1 %vm912_vm0, %v1197_v39  ;;  %v1085_v47 = vmul.f32 %v3695_v16, %v3675_v58  ;;  %v1217_v50 = vsel %vm912_vm0, %v1197_v39, 0 }
 0x460   : > { %v1084_v45 = vmul.f32 %v3697_v42, %v3681_v1 }
 0x461   : > { %v1092_v24 = vpack.c.bf16 %v1086_v43, %v1085_v47 }
 0x462   : > { %v1091_v49 = vpack.c.bf16 %v1084_v45, %v1083_v44  ;;  %v1185_v11 = vpop.permute.xlu0 %1184 }
 0x464   : > { %3374 = vmatprep.mubr.msk.bf16.mxu1 %vm1002_vm1, %v1091_v49 }
 0x465   : > { %3375 = vmatmul.mubr.msk.bf16.vlgmr.msra.gmra.mrb[8].mxu1 %vm1002_vm1, %v1092_v24 }
 0x466   : > { %3383 = vmatpush3.bf16.xpose.msra.mxu1 %v1217_v50  ;;  %v1189_v5 = vpop.permute.xlu0 %1188 }
 0x467   : > { %3555 = vmatprep.subr.msk.bf16.mxu1 %vm912_vm0, %v1199_v51 }
 0x46e   : > { %3385 = vmatpush3.bf16.xpose.msra.mxu1 %v1220_v52 }
 0x46f   : > { %3556 = vmatprep.subr.msk.bf16.mxu1 %vm912_vm0, %v1201_v53 }
 0x476   : > { %3387 = vmatpush3.bf16.xpose.msra.mxu1 %v1223_v17 }
 0x48d   : > { %v1074_v54 = vpop.xlane.xlu1 %1073 }
 0x48e   : > { %3698 = vrcp.f32 %v1074_v54 }
 0x48f   : > { %3700 = vrcp.f32 %v1065_v34 }
 0x490   : > { %3702 = vrcp.f32 %v1071_v31 }
 0x491   : > { %v1068_v56 = vpop.xlane.xlu1 %1067 }
 0x492   : > { %3704 = vrcp.f32 %v1068_v56 }
 0x495   : > { %v1203_v25 = vpop.permute.xlu1 %1202 }
 0x496   : > { %v1226_v32 = vsel %vm912_vm0, %v1203_v25, 0  ;;  %3557 = vmatprep.subr.msk.bf16.mxu1 %vm912_vm0, %v1203_v25 }
 0x497   : > { %3389 = vmatpush3.bf16.xpose.msra.mxu1 %v1226_v32 }
 0x498   : > { %v3699_v58 = vpop.eup %3698 }
 0x499   : > { %v3701_v59 = vpop.eup %3700  ;;  %v1090_v33 = vmul.f32 %v3699_v58, %v3687_v19  ;;  %v1187_v14 = vpop.permute.xlu1 %1186 }
 0x49a   : > { %v3703_v60 = vpop.eup %3702  ;;  %v1087_v1 = vmul.f32 %v3701_v59, %v4160_v9 }
 0x49b   : > { %v1089_v3 = vmul.f32 %v3703_v60, %v4156_v6 }
 0x49c   : > { %v3705_v61 = vpop.eup %3704 }
 0x49d   : > { %v1088_v40 = vmul.f32 %v3705_v61, %v3689_v23  ;;  %v1094_v10 = vpack.c.bf16 %v1090_v33, %v1089_v3  ;;  %v1191_v8 = vpop.permute.xlu1 %1190 }
 0x49f   : > { %v1093_v7 = vpack.c.bf16 %v1088_v40, %v1087_v1 }
 0x4a1   : > { %3378 = vmatprep.mubr.msk.bf16.mxu1 %vm1002_vm1, %v1093_v7 }
 0x4a2   : > { %3379 = vmatmul.mubr.msk.bf16.gmra.mrb[12].mxu1 %vm1002_vm1, %v1094_v10 }
 0x4a3   : > { %3390 = vmatprep.mubr.msk.bf16.mxu1 %vm912_vm0, %v1185_v11 }
 0x4aa   : > { %3391 = vmatmul.mubr.msk.bf16.vlgmr.msra.gmra.mrb[16].mxu1 %vm912_vm0, %v1187_v14 }
 0x4ab   : > { %3394 = vmatprep.mubr.msk.bf16.mxu1 %vm912_vm0, %v1189_v5 }
 0x4b2   : > { %3395 = vmatmul.mubr.msk.bf16.gmra.mrb[20].mxu1 %vm912_vm0, %v1191_v8 }
 0x538   : > { %v4200_v9 = vpop.f32.mrb[8].mxu1 }
 0x539   : > { %v4202_v6 = vpop.f32.mrb[9].mxu1 }
 0x53a   : > { %v4204_v15 = vpop.f32.mrb[10].mxu1 }
 0x53b   : > { %v1177_v18 = vpack.c.bf16 %v4204_v15, %v4200_v9  ;;  %v4208_v19 = vpop.f32.mrb[11].mxu1 }
 0x53c   : > { %v1176_v21 = vpack.c.bf16 %v4208_v19, %v4202_v6 }
 0x575   : > { %v4212_v23 = vpop.f32.mrb[12].mxu1 }
 0x576   : > { %v4214_v26 = vpop.f32.mrb[13].mxu1 }
 0x577   : > { %v4216_v27 = vpop.f32.mrb[14].mxu1 }
 0x578   : > { %v1179_v28 = vpack.c.bf16 %v4216_v27, %v4212_v23  ;;  %v4220_v29 = vpop.f32.mrb[15].mxu1 }
 0x579   : > { %v1178_v30 = vpack.c.bf16 %v4220_v29, %v4214_v26 }
 0x57d   : > { %v3392_v31 = vpop.f32.mrb[16].mxu1 }
 0x57e   : > { %v1262_v34 = vpop.f32.mrb[17].mxu1  ;;  %v1299_v36 = vsel %vm1002_vm1, %v3392_v31, -inf }
 0x57f   : > { %1300 = vmax.xlane.f32.xlu0 %v1299_v36  ;;  %v3393_v38 = vpop.f32.mrb[18].mxu1  ;;  %v1293_v42 = vsel %vm1002_vm1, %v1262_v34, -inf }
 0x580   : > { %v1265_v16 = vpop.f32.mrb[19].mxu1  ;;  %v1302_v45 = vsel %vm1002_vm1, %v3393_v38, -inf }
 0x581   : > { %v1296_v39 = vsel %vm1002_vm1, %v1265_v16, -inf }
 0x582   : > { %1297 = vmax.xlane.f32.xlu1 %v1296_v39 }
 0x583   : > { %1294 = vmax.xlane.f32.xlu0 %v1293_v42 }
 0x585   : > { %v3396_v43 = vpop.f32.mrb[20].mxu1 }
 0x586   : > { %v1278_v44 = vpop.f32.mrb[21].mxu1  ;;  %v1311_v24 = vsel %vm1002_vm1, %v3396_v43, -inf }
 0x587   : > { %1303 = vmax.xlane.f32.xlu0 %v1302_v45  ;;  %v4228_v47 = vpop.f32.mrb[22].mxu1  ;;  %v1305_v50 = vsel %vm1002_vm1, %v1278_v44, -inf }
 0x588   : > { %v4230_v49 = vpop.f32.mrb[23].mxu1  ;;  %v1314_v51 = vsel %vm1002_vm1, %v4228_v47, -inf }
 0x589   : > { %v1308_v52 = vsel %vm1002_vm1, %v4230_v49, -inf }
 0x58b   : > { %1312 = vmax.xlane.f32.xlu0 %v1311_v24 }
 0x58f   : > { %1306 = vmax.xlane.f32.xlu0 %v1305_v50 }
 0x593   : > { %1391 = vrot.lane.b32.xlu1 %v4086_v35, %s3835_s16 }
 0x597   : > { %1393 = vrot.lane.b32.xlu1 %v4108_v57, %s3835_s16 }
 0x5a5   : > { %1389 = vrot.lane.b32.xlu0 %v4088_v37, %s3835_s16 }
 0x5bb   : > { %1315 = vmax.xlane.f32.xlu1 %v1314_v51 }
 0x5bf   : > { %1309 = vmax.xlane.f32.xlu1 %v1308_v52 }
 0x5d0   : > { %1395 = vrot.lane.b32.xlu1 %v4105_v55, %s3835_s16 }
 0x60c   : > { %v1301_v53 = vpop.xlane.xlu0 %1300 }
 0x60d   : > { %v1319_v17 = vsub.f32 %v3392_v31, %v1301_v53 }
 0x60f   : > { %v1329_v54 = vmul.f32 1.442695, %v1319_v17  ;;  %v1298_v56 = vpop.xlane.xlu1 %1297 }
 0x610   : > { %v1295_v25 = vpop.xlane.xlu0 %1294  ;;  %v1318_v58 = vsub.f32 %v1265_v16, %v1298_v56 }
 0x611   : > { %3706 = vpow2.f32 %v1329_v54  ;;  %v1317_v32 = vsub.f32 %v1262_v34, %v1295_v25 }
 0x612   : > { %v1327_v33 = vmul.f32 1.442695, %v1318_v58 }
 0x613   : > { %v1325_v59 = vmul.f32 1.442695, %v1317_v32  ;;  %v1392_v34 = vpop.permute.xlu1 %1391 }
 0x614   : > { %v1304_v60 = vpop.xlane.xlu0 %1303 }
 0x615   : > { %3708 = vpow2.f32 %v1325_v59  ;;  %v1320_v61 = vsub.f32 %v3393_v38, %v1304_v60 }
 0x617   : > { %v1331_v1 = vmul.f32 1.442695, %v1320_v61 }
 0x618   : > { %v1313_v40 = vpop.xlane.xlu0 %1312 }
 0x619   : > { %3710 = vpow2.f32 %v1331_v1  ;;  %v1323_v3 = vsub.f32 %v3396_v43, %v1313_v40  ;;  %v1394_v43 = vpop.permute.xlu1 %1393 }
 0x61a   : > { %3712 = vpow2.f32 %v1327_v33 }
 0x61b   : > { %v4246_v7 = vpop.eup %3706  ;;  %v1337_v10 = vmul.f32 1.442695, %v1323_v3 }
 0x61c   : > { %v1307_v11 = vpop.xlane.xlu0 %1306  ;;  %v1347_v14 = vsel %vm1002_vm1, %v4246_v7, 0.0 }
 0x61d   : > { %3714 = vpow2.f32 %v1337_v10  ;;  %v1321_v5 = vsub.f32 %v1278_v44, %v1307_v11  ;;  %1348 = vadd.xlane.f32.xlu0 %v1347_v14 }
 0x61f   : > { %v4250_v8 = vpop.eup %3708  ;;  %v1333_v31 = vmul.f32 1.442695, %v1321_v5 }
 0x620   : > { %v1390_v36 = vpop.permute.xlu0 %1389  ;;  %v1341_v38 = vsel %vm1002_vm1, %v4250_v8, 0.0 }
 0x621   : > { %3716 = vpow2.f32 %v1333_v31  ;;  %1342 = vadd.xlane.f32.xlu0 %v1341_v38  ;;  %3398 = vmatprep.subr.bf16.mxu1 %v1390_v36 }
 0x622   : > { %3399 = vmatpush3.bf16.msra.mxu1 %v1390_v36 }
 0x623   : > { %v4254_v16 = vpop.eup %3710  ;;  %3400 = vmatprep.subr.bf16.mxu1 %v1392_v34 }
 0x624   : > { %v1350_v39 = vsel %vm1002_vm1, %v4254_v16, 0.0  ;;  %v4258_v42 = vpop.eup %3712 }
 0x625   : > { %1351 = vadd.xlane.f32.xlu1 %v1350_v39  ;;  %v1344_v24 = vsel %vm1002_vm1, %v4258_v42, 0.0 }
 0x626   : > { %3401 = vmatpush3.bf16.msra.mxu1 %v1392_v34 }
 0x627   : > { %v4260_v44 = vpop.eup %3714  ;;  %3402 = vmatprep.subr.bf16.mxu1 %v1394_v43 }
 0x628   : > { %v1359_v45 = vsel %vm1002_vm1, %v4260_v44, 0.0 }
 0x629   : > { %1360 = vadd.xlane.f32.xlu0 %v1359_v45  ;;  %1345 = vadd.xlane.f32.xlu1 %v1344_v24 }
 0x62a   : > { %3403 = vmatpush3.bf16.msra.mxu1 %v1394_v43 }
 0x62b   : > { %v4266_v50 = vpop.eup %3716 }
 0x62c   : > { %v1353_v51 = vsel %vm1002_vm1, %v4266_v50, 0.0 }
 0x62d   : > { %1354 = vadd.xlane.f32.xlu0 %v1353_v51 }
 0x63a   : > { %1670 = vrot.lane.b32.xlu1 %v4098_v48, %s3836_s17 }
 0x63e   : > { %1672 = vrot.lane.b32.xlu1 %v4118_v0, %s3836_s17 }
 0x648   : > { %v1316_v52 = vpop.xlane.xlu1 %1315 }
 0x649   : > { %v1324_v53 = vsub.f32 %v4228_v47, %v1316_v52 }
 0x64b   : > { %v1339_v17 = vmul.f32 1.442695, %v1324_v53 }
 0x64c   : > { %v1310_v54 = vpop.xlane.xlu1 %1309 }
 0x64d   : > { %3718 = vpow2.f32 %v1339_v17  ;;  %v1322_v56 = vsub.f32 %v4230_v49, %v1310_v54 }
 0x64f   : > { %v1335_v25 = vmul.f32 1.442695, %v1322_v56 }
 0x650   : > { %v1396_v32 = vpop.permute.xlu1 %1395 }
 0x651   : > { %3404 = vmatprep.subr.bf16.mxu1 %v1396_v32  ;;  %3720 = vpow2.f32 %v1335_v25 }
 0x652   : > { %3405 = vmatpush3.bf16.msra.mxu1 %v1396_v32 }
 0x657   : > { %v4276_v58 = vpop.eup %3718 }
 0x658   : > { %v1362_v59 = vsel %vm1002_vm1, %v4276_v58, 0.0 }
 0x659   : > { %1363 = vadd.xlane.f32.xlu0 %v1362_v59 }
 0x65b   : > { %v4280_v60 = vpop.eup %3720 }
 0x65c   : > { %v1356_v47 = vsel %vm1002_vm1, %v4280_v60, 0.0 }
 0x662   : > { %1357 = vadd.xlane.f32.xlu1 %v1356_v47 }
 0x66f   : > { %1668 = vrot.lane.b32.xlu0 %v4078_v22, %s3836_s17 }
 0x673   : > { %1660 = vrot.lane.b32.xlu0 %v4076_v20, %s3836_s17  ;;  %1674 = vrot.lane.b32.xlu1 %v4132_v13, %s3836_s17 }
 0x677   : > { %1664 = vrot.lane.b32.xlu0 %v4115_v62, %s3836_s17  ;;  %1662 = vrot.lane.b32.xlu1 %v4095_v46, %s3836_s17 }
 0x67b   : > { %2055 = vrot.lane.b32.xlu0 %v4078_v22, %s3837_s18  ;;  %1666 = vrot.lane.b32.xlu1 %v4130_v12, %s3836_s17 }
 0x67f   : > { %2059 = vrot.lane.b32.xlu0 %v4118_v0, %s3837_s18  ;;  %2057 = vrot.lane.b32.xlu1 %v4098_v48, %s3837_s18  ;;  %v3610_v48 = vld [vmem:[%s4780_s3 + $0x10] sm:$0xff]  }
 0x680   : > { %3414 = vmatprep.subr.bf16.mxu0 %v3610_v48 }
 0x681   : > { %3415 = vmatpush3.bf16.msra.mxu0 %v3610_v48 }
 0x683   : > { %2047 = vrot.lane.b32.xlu0 %v4076_v20, %s3837_s18  ;;  %2061 = vrot.lane.b32.xlu1 %v4132_v13, %s3837_s18 }
 0x687   : > { %2051 = vrot.lane.b32.xlu0 %v4115_v62, %s3837_s18  ;;  %2049 = vrot.lane.b32.xlu1 %v4095_v46, %s3837_s18 }
 0x68b   : > { %2053 = vrot.lane.b32.xlu1 %v4130_v12, %s3837_s18 }
 0x6aa   : > { %v1349_v22 = vpop.xlane.xlu0 %1348 }
 0x6ae   : > { %v1343_v49 = vpop.xlane.xlu0 %1342 }
 0x6b2   : > { %v1352_v0 = vpop.xlane.xlu1 %1351 }
 0x6b3   : > { %3722 = vrcp.f32 %v1352_v0 }
 0x6b4   : > { %3724 = vrcp.f32 %v1343_v49 }
 0x6b5   : > { %3726 = vrcp.f32 %v1349_v22 }
 0x6b6   : > { %v1346_v20 = vpop.xlane.xlu1 %1345  ;;  %v1361_v11 = vpop.xlane.xlu0 %1360 }
 0x6b7   : > { %3728 = vrcp.f32 %v1346_v20 }
 0x6ba   : > { %v1355_v14 = vpop.xlane.xlu0 %1354  ;;  %v1671_v5 = vpop.permute.xlu1 %1670 }
 0x6bd   : > { %v3723_v62 = vpop.eup %3722 }
 0x6be   : > { %v3725_v13 = vpop.eup %3724  ;;  %v1376_v12 = vmul.f32 %v3723_v62, %v4254_v16  ;;  %v1673_v36 = vpop.permute.xlu1 %1672  ;;  %v3611_v62 = vld [vmem:[%s4780_s3 + $0x18] sm:$0xff]  }
 0x6bf   : > { %v3727_v46 = vpop.eup %3726  ;;  %v1373_v33 = vmul.f32 %v3725_v13, %v4250_v8  ;;  %v1692_v8 = vsel %vm912_vm0, %v1671_v5, 0  ;;  %v1695_v52 = vsel %vm912_vm0, %v1673_v36, 0  ;;  %3416 = vmatprep.subr.bf16.mxu0 %v3611_v62 }
 0x6c0   : > { %v1375_v40 = vmul.f32 %v3727_v46, %v4246_v7  ;;  %3417 = vmatpush3.bf16.msra.mxu0 %v3611_v62 }
 0x6c1   : > { %v3729_v61 = vpop.eup %3728 }
 0x6c2   : > { %v1374_v1 = vmul.f32 %v3729_v61, %v4258_v42  ;;  %v1382_v10 = vpack.c.bf16 %v1376_v12, %v1375_v40 }
 0x6c4   : > { %v1381_v3 = vpack.c.bf16 %v1374_v1, %v1373_v33  ;;  %v3612_v33 = vld [vmem:[%s4780_s3] sm:$0xff]  }
 0x6c5   : > { %3426 = vmatprep.subr.bf16.mxu0 %v3612_v33 }
 0x6c6   : > { %3406 = vmatprep.mubr.msk.bf16.mxu1 %vm1002_vm1, %v1381_v3 }
 0x6c7   : > { %3407 = vmatmul.mubr.msk.bf16.vlgmr.msra.gmra.mrb[24].mxu1 %vm1002_vm1, %v1382_v10 }
 0x6e6   : > { %v1364_v31 = vpop.xlane.xlu0 %1363 }
 0x6e7   : > { %3730 = vrcp.f32 %v1364_v31 }
 0x6e8   : > { %3732 = vrcp.f32 %v1355_v14 }
 0x6e9   : > { %3734 = vrcp.f32 %v1361_v11 }
 0x6ea   : > { %v1669_v34 = vpop.permute.xlu0 %1668 }
 0x6eb   : > { %v1689_v38 = vsel %vm912_vm0, %v1669_v34, 0  ;;  %3558 = vmatprep.subr.msk.bf16.mxu1 %vm912_vm0, %v1669_v34 }
 0x6ec   : > { %3439 = vmatpush3.bf16.xpose.msra.mxu1 %v1689_v38 }
 0x6ed   : > { %3559 = vmatprep.subr.msk.bf16.mxu1 %vm912_vm0, %v1671_v5  ;;  %v3613_v5 = vld [vmem:[%s4780_s3 + $0x8] sm:$0xff]  }
 0x6ee   : > { %v1661_v42 = vpop.permute.xlu0 %1660 }
 0x6ef   : > { %v1358_v7 = vpop.xlane.xlu1 %1357 }
 0x6f0   : > { %3736 = vrcp.f32 %v1358_v7 }
 0x6f1   : > { %v3731_v16 = vpop.eup %3730 }
 0x6f2   : > { %v3733_v39 = vpop.eup %3732  ;;  %v1380_v51 = vmul.f32 %v3731_v16, %v4276_v58  ;;  %v1665_v25 = vpop.permute.xlu0 %1664 }
 0x6f3   : > { %v3735_v43 = vpop.eup %3734  ;;  %v1675_v24 = vpop.permute.xlu1 %1674  ;;  %v1377_v53 = vmul.f32 %v3733_v39, %v4266_v50 }
 0x6f4   : > { %3441 = vmatpush3.bf16.xpose.msra.mxu1 %v1692_v8  ;;  %v1379_v54 = vmul.f32 %v3735_v43, %v4260_v44  ;;  %v1698_v58 = vsel %vm912_vm0, %v1675_v24, 0 }
 0x6f5   : > { %3560 = vmatprep.subr.msk.bf16.mxu1 %vm912_vm0, %v1673_v36 }
 0x6f6   : > { %v1384_v32 = vpack.c.bf16 %v1380_v51, %v1379_v54  ;;  %v2056_v50 = vpop.permute.xlu0 %2055 }
 0x6f7   : > { %v1663_v59 = vpop.permute.xlu1 %1662  ;;  %v2076_v44 = vsel %vm912_vm0, %v2056_v50, 0 }
 0x6fa   : > { %v3737_v45 = vpop.eup %3736  ;;  %v2060_v22 = vpop.permute.xlu0 %2059 }
 0x6fb   : > { %v1378_v17 = vmul.f32 %v3737_v45, %v4280_v60  ;;  %v1667_v60 = vpop.permute.xlu1 %1666  ;;  %v2082_v48 = vsel %vm912_vm0, %v2060_v22, 0 }
 0x6fc   : > { %3443 = vmatpush3.bf16.xpose.msra.mxu1 %v1695_v52 }
 0x6fd   : > { %3561 = vmatprep.subr.msk.bf16.mxu1 %vm912_vm0, %v1675_v24  ;;  %v1383_v56 = vpack.c.bf16 %v1378_v17, %v1377_v53 }
 0x6fe   : > { %v2048_v0 = vpop.permute.xlu0 %2047 }
 0x6ff   : > { %3410 = vmatprep.mubr.msk.bf16.mxu1 %vm1002_vm1, %v1383_v56  ;;  %v2058_v47 = vpop.permute.xlu1 %2057 }
 0x700   : > { %3411 = vmatmul.mubr.msk.bf16.gmra.mrb[28].mxu1 %vm1002_vm1, %v1384_v32  ;;  %v2079_v49 = vsel %vm912_vm0, %v2058_v47, 0 }
 0x701   : > { %3446 = vmatprep.mubr.msk.bf16.mxu1 %vm912_vm0, %v1661_v42 }
 0x702   : > { %v2052_v61 = vpop.permute.xlu0 %2051 }
 0x703   : > { %v2062_v20 = vpop.permute.xlu1 %2061 }
 0x704   : > { %3445 = vmatpush3.bf16.xpose.msra.mxu1 %v1698_v58  ;;  %v2085_v13 = vsel %vm912_vm0, %v2062_v20, 0 }
 0x705   : > { %3562 = vmatprep.subr.msk.bf16.mxu1 %vm912_vm0, %v2056_v50 }
 0x707   : > { %v2050_v46 = vpop.permute.xlu1 %2049 }
 0x70b   : > { %3447 = vmatmul.mubr.msk.bf16.vlgmr.msra.gmra.mrb[32].mxu1 %vm912_vm0, %v1663_v59  ;;  %v2054_v12 = vpop.permute.xlu1 %2053 }
 0x70c   : > { %3450 = vmatprep.mubr.msk.bf16.mxu1 %vm912_vm0, %v1665_v25  ;;  %3483 = vmatpush3.bf16.xpose.msra.mxu1 %v2076_v44 }
 0x70d   : > { %3563 = vmatprep.subr.msk.bf16.mxu1 %vm912_vm0, %v2058_v47 }
 0x713   : > { %3451 = vmatmul.mubr.msk.bf16.gmra.mrb[36].mxu1 %vm912_vm0, %v1667_v60 }
 0x714   : > { %3485 = vmatpush3.bf16.xpose.msra.mxu1 %v2079_v49  ;;  %3490 = vmatprep.mubr.msk.bf16.mxu1 %vm912_vm0, %v2048_v0 }
 0x715   : > { %3564 = vmatprep.subr.msk.bf16.mxu1 %vm912_vm0, %v2060_v22 }
 0x71c   : > { %3487 = vmatpush3.bf16.xpose.msra.mxu1 %v2082_v48 }
 0x71d   : > { %3565 = vmatprep.subr.msk.bf16.mxu1 %vm912_vm0, %v2062_v20 }
 0x724   : > { %3489 = vmatpush3.bf16.xpose.msra.mxu1 %v2085_v13 }
 0x72b   : > { %3491 = vmatmul.mubr.msk.bf16.vlgmr.msra.gmra.mrb[40].mxu1 %vm912_vm0, %v2050_v46 }
 0x72c   : > { %3494 = vmatprep.mubr.msk.bf16.mxu1 %vm912_vm0, %v2052_v61 }
 0x733   : > { %3495 = vmatmul.mubr.msk.bf16.gmra.mrb[44].mxu1 %vm912_vm0, %v2054_v12 }
 0x734   : > { %2719 = vmatprep.mubr.bf16.mxu1 %v3834_v63 }
 0x79a   : > { %v3408_v1 = vpop.f32.mrb[24].mxu1 }
 0x79b   : > { %v1447_v40 = vpop.f32.mrb[25].mxu1 }
 0x79c   : > { %v3409_v3 = vpop.f32.mrb[26].mxu1 }
 0x79d   : > { %v1479_v10 = vpack.c.bf16 %v3409_v3, %v3408_v1  ;;  %v1450_v11 = vpop.f32.mrb[27].mxu1 }
 0x79e   : > { %v1478_v14 = vpack.c.bf16 %v1450_v11, %v1447_v40 }
 0x7a0   : > { %3418 = vmatprep.mubr.msk.bf16.mxu0 %vm912_vm0, %v1478_v14 }
 0x7a1   : > { %3419 = vmatmul.mubr.msk.bf16.vlgmr.msra.gmra.mrb[24].mxu0 %vm912_vm0, %v1479_v10 }
 0x7a2   : > { %3427 = vmatpush3.bf16.msra.mxu0 %v3612_v33 }
 0x7a3   : > { %3428 = vmatprep.subr.bf16.mxu0 %v3613_v5 }
 0x7a6   : > { %3429 = vmatpush3.bf16.msra.mxu0 %v3613_v5 }
 0x7d3   : > { %v3412_v31 = vpop.f32.mrb[28].mxu1 }
 0x7d4   : > { %v1463_v34 = vpop.f32.mrb[29].mxu1 }
 0x7d5   : > { %v3413_v36 = vpop.f32.mrb[30].mxu1 }
 0x7d6   : > { %v1481_v38 = vpack.c.bf16 %v3413_v36, %v3412_v31  ;;  %v1466_v7 = vpop.f32.mrb[31].mxu1 }
 0x7d7   : > { %v1480_v8 = vpack.c.bf16 %v1466_v7, %v1463_v34 }
 0x7d9   : > { %3422 = vmatprep.mubr.msk.bf16.mxu0 %vm912_vm0, %v1480_v8 }
 0x7da   : > { %3423 = vmatmul.mubr.msk.bf16.gmra.mrb[28].mxu0 %vm912_vm0, %v1481_v38 }
 0x7db   : > { %3430 = vmatprep.mubr.msk.bf16.mxu0 %vm912_vm0, %v1176_v21 }
 0x7de   : > { %v3448_v16 = vpop.f32.mrb[32].mxu1 }
 0x7df   : > { %v1734_v39 = vpop.f32.mrb[33].mxu1  ;;  %v1771_v6 = vsel %vm1002_vm1, %v3448_v16, -inf }
 0x7e0   : > { %v3449_v42 = vpop.f32.mrb[34].mxu1  ;;  %v1765_v43 = vsel %vm1002_vm1, %v1734_v39, -inf }
 0x7e1   : > { %1766 = vmax.xlane.f32.xlu0 %v1765_v43  ;;  %v1737_v45 = vpop.f32.mrb[35].mxu1  ;;  %v1774_v52 = vsel %vm1002_vm1, %v3449_v42, -inf }
 0x7e2   : > { %3431 = vmatmul.mubr.msk.bf16.vlgmr.msra.gmra.mrb[24].mxu0 %vm912_vm0, %v1177_v18  ;;  %v1768_v24 = vsel %vm1002_vm1, %v1737_v45, -inf }
 0x7e3   : > { %3434 = vmatprep.mubr.msk.bf16.mxu0 %vm912_vm0, %v1178_v30  ;;  %1769 = vmax.xlane.f32.xlu1 %v1768_v24 }
 0x7e5   : > { %1772 = vmax.xlane.f32.xlu0 %v1771_v6 }
 0x7e6   : > { %v3452_v19 = vpop.f32.mrb[36].mxu1 }
 0x7e7   : > { %v1750_v21 = vpop.f32.mrb[37].mxu1  ;;  %v1783_v29 = vsel %vm1002_vm1, %v3452_v19, -inf }
 0x7e8   : > { %v4380_v51 = vpop.f32.mrb[38].mxu1  ;;  %v1777_v18 = vsel %vm1002_vm1, %v1750_v21, -inf }
 0x7e9   : > { %1775 = vmax.xlane.f32.xlu0 %v1774_v52  ;;  %v4383_v9 = vpop.f32.mrb[39].mxu1  ;;  %v1786_v26 = vsel %vm1002_vm1, %v4380_v51, -inf }
 0x7ea   : > { %3435 = vmatmul.mubr.msk.bf16.gmra.mrb[28].mxu0 %vm912_vm0, %v1179_v28  ;;  %v1780_v15 = vsel %vm1002_vm1, %v4383_v9, -inf }
 0x7eb   : > { %1781 = vmax.xlane.f32.xlu1 %v1780_v15 }
 0x7ed   : > { %1778 = vmax.xlane.f32.xlu0 %v1777_v18 }
 0x7ef   : > { %1787 = vmax.xlane.f32.xlu1 %v1786_v26 }
 0x7f1   : > { %1784 = vmax.xlane.f32.xlu0 %v1783_v29 }
 0x7fe   : > { %v4395_v30 = vpop.f32.mrb[40].mxu1 }
 0x7ff   : > { %v4397_v53 = vpop.f32.mrb[41].mxu1 }
 0x800   : > { %v4399_v23 = vpop.f32.mrb[42].mxu1 }
 0x801   : > { %v4401_v27 = vpop.f32.mrb[43].mxu1  ;;  %v2161_v52 = vsel %vm1002_vm1, %v4399_v23, -inf }
 0x802   : > { %v2155_v18 = vsel %vm1002_vm1, %v4401_v27, -inf }
 0x806   : > { %v4403_v28 = vpop.f32.mrb[44].mxu1 }
 0x807   : > { %v4405_v17 = vpop.f32.mrb[45].mxu1  ;;  %v2170_v15 = vsel %vm1002_vm1, %v4403_v28, -inf }
 0x808   : > { %v4407_v54 = vpop.f32.mrb[46].mxu1 }
 0x809   : > { %v4409_v56 = vpop.f32.mrb[47].mxu1  ;;  %v2173_v29 = vsel %vm1002_vm1, %v4407_v54, -inf }
 0x80a   : > { %v2167_v26 = vsel %vm1002_vm1, %v4409_v56, -inf }
 0x86e   : > { %v1767_v25 = vpop.xlane.xlu0 %1766 }
 0x86f   : > { %v1789_v32 = vsub.f32 %v1734_v39, %v1767_v25 }
 0x870   : > { %v1770_v59 = vpop.xlane.xlu1 %1769 }
 0x871   : > { %v1797_v60 = vmul.f32 1.442695, %v1789_v32  ;;  %v1790_v44 = vsub.f32 %v1737_v45, %v1770_v59 }
 0x872   : > { %v1773_v58 = vpop.xlane.xlu0 %1772 }
 0x873   : > { %v1791_v50 = vsub.f32 %v3448_v16, %v1773_v58  ;;  %v1799_v49 = vmul.f32 1.442695, %v1790_v44 }
 0x875   : > { %v1801_v47 = vmul.f32 1.442695, %v1791_v50 }
 0x876   : > { %v1776_v22 = vpop.xlane.xlu0 %1775 }
 0x877   : > { %3738 = vpow2.f32 %v1801_v47  ;;  %v1792_v0 = vsub.f32 %v3449_v42, %v1776_v22 }
 0x878   : > { %3740 = vpow2.f32 %v1797_v60  ;;  %v1782_v7 = vpop.xlane.xlu1 %1781 }
 0x879   : > { %v1803_v48 = vmul.f32 1.442695, %v1792_v0  ;;  %v1794_v39 = vsub.f32 %v4383_v9, %v1782_v7  ;;  %v2164_v9 = vsel %vm1002_vm1, %v4405_v17, -inf }
 0x87a   : > { %v1779_v20 = vpop.xlane.xlu0 %1778 }
 0x87b   : > { %3742 = vpow2.f32 %v1803_v48  ;;  %v1793_v62 = vsub.f32 %v1750_v21, %v1779_v20  ;;  %v1807_v43 = vmul.f32 1.442695, %v1794_v39 }
 0x87c   : > { %3744 = vpow2.f32 %v1799_v49  ;;  %v1788_v8 = vpop.xlane.xlu1 %1787 }
 0x87d   : > { %v1805_v12 = vmul.f32 1.442695, %v1793_v62  ;;  %v1796_v16 = vsub.f32 %v4380_v51, %v1788_v8  ;;  %v2158_v51 = vsel %vm1002_vm1, %v4395_v30, -inf }
 0x87e   : > { %v1785_v13 = vpop.xlane.xlu0 %1784 }
 0x87f   : > { %v1795_v46 = vsub.f32 %v3452_v19, %v1785_v13  ;;  %v1811_v42 = vmul.f32 1.442695, %v1796_v16  ;;  %v2152_v19 = vsel %vm1002_vm1, %v4397_v53, -inf }
 0x881   : > { %v4411_v61 = vpop.eup %3738  ;;  %v1809_v33 = vmul.f32 1.442695, %v1795_v46 }
 0x882   : > { %v1819_v1 = vsel %vm1002_vm1, %v4411_v61, 0.0  ;;  %v4415_v40 = vpop.eup %3740 }
 0x883   : > { %3746 = vpow2.f32 %v1809_v33  ;;  %1820 = vadd.xlane.f32.xlu0 %v1819_v1  ;;  %v1813_v10 = vsel %vm1002_vm1, %v4415_v40, 0.0 }
 0x884   : > { %3748 = vpow2.f32 %v1805_v12 }
 0x885   : > { %v4417_v3 = vpop.eup %3742  ;;  %3750 = vpow2.f32 %v1811_v42 }
 0x886   : > { %v1822_v11 = vsel %vm1002_vm1, %v4417_v3, 0.0  ;;  %v3745_v14 = vpop.eup %3744  ;;  %3752 = vpow2.f32 %v1807_v43 }
 0x887   : > { %1814 = vadd.xlane.f32.xlu0 %v1813_v10  ;;  %1823 = vadd.xlane.f32.xlu1 %v1822_v11  ;;  %v1816_v5 = vsel %vm1002_vm1, %v3745_v14, 0.0  ;;  %v3614_v10 = vld [vmem:[%s4780_s3 + $0x20] sm:$0xff]  }
 0x88b   : > { %1817 = vadd.xlane.f32.xlu1 %v1816_v5 }
 0x88d   : > { %v4424_v31 = vpop.eup %3746 }
 0x88e   : > { %v1831_v34 = vsel %vm1002_vm1, %v4424_v31, 0.0  ;;  %v4428_v36 = vpop.eup %3748 }
 0x88f   : > { %1832 = vadd.xlane.f32.xlu0 %v1831_v34  ;;  %v1825_v38 = vsel %vm1002_vm1, %v4428_v36, 0.0  ;;  %v4440_v45 = vpop.eup %3750 }
 0x890   : > { %v1834_v24 = vsel %vm1002_vm1, %v4440_v45, 0.0  ;;  %v4444_v6 = vpop.eup %3752 }
 0x891   : > { %v1828_v21 = vsel %vm1002_vm1, %v4444_v6, 0.0 }
 0x893   : > { %1826 = vadd.xlane.f32.xlu0 %v1825_v38 }
 0x89c   : > { %1859 = vrot.lane.b32.xlu1 %v4086_v35, %s3836_s17 }
 0x8a0   : > { %1861 = vrot.lane.b32.xlu1 %v4108_v57, %s3836_s17 }
 0x8a9   : > { %1857 = vrot.lane.b32.xlu0 %v4088_v37, %s3836_s17 }
 0x8c4   : > { %1835 = vadd.xlane.f32.xlu1 %v1834_v24 }
 0x8c8   : > { %2153 = vmax.xlane.f32.xlu0 %v2152_v19  ;;  %1829 = vadd.xlane.f32.xlu1 %v1828_v21 }
 0x8cc   : > { %2159 = vmax.xlane.f32.xlu0 %v2158_v51 }
 0x8d0   : > { %2162 = vmax.xlane.f32.xlu0 %v2161_v52 }
 0x8d4   : > { %2165 = vmax.xlane.f32.xlu0 %v2164_v9 }
 0x8d8   : > { %2171 = vmax.xlane.f32.xlu0 %v2170_v15 }
 0x8d9   : > { %1863 = vrot.lane.b32.xlu1 %v4105_v55, %s3836_s17 }
 0x8ee   : > { %2244 = vrot.lane.b32.xlu0 %v4088_v37, %s3837_s18 }
 0x8fd   : > { %2156 = vmax.xlane.f32.xlu1 %v2155_v18 }
 0x901   : > { %2168 = vmax.xlane.f32.xlu1 %v2167_v26 }
 0x905   : > { %2174 = vmax.xlane.f32.xlu1 %v2173_v29 }
 0x910   : > { %v1821_v25 = vpop.xlane.xlu0 %1820 }
 0x914   : > { %v1815_v32 = vpop.xlane.xlu0 %1814  ;;  %v1824_v59 = vpop.xlane.xlu1 %1823 }
 0x915   : > { %3754 = vrcp.f32 %v1815_v32 }
 0x918   : > { %v1818_v58 = vpop.xlane.xlu1 %1817 }
 0x919   : > { %3756 = vrcp.f32 %v1818_v58 }
 0x91a   : > { %3758 = vrcp.f32 %v1824_v59 }
 0x91b   : > { %3760 = vrcp.f32 %v1821_v25 }
 0x91c   : > { %v1833_v50 = vpop.xlane.xlu0 %1832  ;;  %v1860_v47 = vpop.permute.xlu1 %1859 }
 0x91f   : > { %v3755_v60 = vpop.eup %3754 }
 0x920   : > { %v1827_v37 = vpop.xlane.xlu0 %1826  ;;  %v1845_v0 = vmul.f32 %v3755_v60, %v4415_v40  ;;  %v1862_v20 = vpop.permute.xlu1 %1861 }
 0x923   : > { %v3757_v44 = vpop.eup %3756 }
 0x924   : > { %v1858_v22 = vpop.permute.xlu0 %1857  ;;  %v1846_v49 = vmul.f32 %v3757_v44, %v3745_v14  ;;  %v3759_v13 = vpop.eup %3758 }
 0x925   : > { %3454 = vmatprep.subr.bf16.mxu0 %v1858_v22  ;;  %v3761_v33 = vpop.eup %3760  ;;  %v1848_v1 = vmul.f32 %v3759_v13, %v4417_v3 }
 0x926   : > { %3455 = vmatpush3.bf16.msra.mxu0 %v1858_v22  ;;  %v1853_v48 = vpack.c.bf16 %v1846_v49, %v1845_v0  ;;  %v1847_v5 = vmul.f32 %v3761_v33, %v4411_v61 }
 0x927   : > { %3456 = vmatprep.subr.bf16.mxu0 %v1860_v47 }
 0x928   : > { %3462 = vmatprep.mubr.msk.bf16.mxu0 %vm1002_vm1, %v1853_v48  ;;  %v1854_v38 = vpack.c.bf16 %v1848_v1, %v1847_v5 }
 0x92a   : > { %3457 = vmatpush3.bf16.msra.mxu0 %v1860_v47 }
 0x92b   : > { %3458 = vmatprep.subr.bf16.mxu0 %v1862_v20 }
 0x92e   : > { %3459 = vmatpush3.bf16.msra.mxu0 %v1862_v20 }
 0x951   : > { %v1836_v62 = vpop.xlane.xlu1 %1835 }
 0x952   : > { %3762 = vrcp.f32 %v1836_v62 }
 0x953   : > { %3764 = vrcp.f32 %v1827_v37 }
 0x954   : > { %3766 = vrcp.f32 %v1833_v50 }
 0x955   : > { %v2154_v46 = vpop.xlane.xlu0 %2153  ;;  %v1830_v12 = vpop.xlane.xlu1 %1829 }
 0x956   : > { %3768 = vrcp.f32 %v1830_v12  ;;  %v2176_v40 = vsub.f32 %v4397_v53, %v2154_v46  ;;  %v3615_v53 = vld [vmem:[%s4780_s3 + $0x28] sm:$0xff]  }
 0x958   : > { %v2184_v7 = vmul.f32 1.442695, %v2176_v40 }
 0x959   : > { %v2160_v11 = vpop.xlane.xlu0 %2159  ;;  %v1864_v14 = vpop.permute.xlu1 %1863 }
 0x95a   : > { %v2178_v34 = vsub.f32 %v4395_v30, %v2160_v11  ;;  %3460 = vmatprep.subr.bf16.mxu0 %v1864_v14 }
 0x95b   : > { %3461 = vmatpush3.bf16.msra.mxu0 %v1864_v14 }
 0x95c   : > { %v2188_v8 = vmul.f32 1.442695, %v2178_v34  ;;  %3470 = vmatprep.subr.bf16.mxu0 %v3614_v10  ;;  %v3763_v3 = vpop.eup %3762 }
 0x95d   : > { %v2163_v16 = vpop.xlane.xlu0 %2162  ;;  %v3765_v39 = vpop.eup %3764  ;;  %v1852_v24 = vmul.f32 %v3763_v3, %v4440_v45 }
 0x95e   : > { %3770 = vpow2.f32 %v2188_v8  ;;  %v2179_v42 = vsub.f32 %v4399_v23, %v2163_v16  ;;  %3463 = vmatmul.mubr.msk.bf16.vlgmr.msra.gmra.mrb[32].mxu0 %vm1002_vm1, %v1854_v38  ;;  %v3767_v61 = vpop.eup %3766  ;;  %v1849_v21 = vmul.f32 %v3765_v39, %v4428_v36 }
 0x95f   : > { %3471 = vmatpush3.bf16.msra.mxu0 %v3614_v10  ;;  %3772 = vpow2.f32 %v2184_v7  ;;  %v1851_v52 = vmul.f32 %v3767_v61, %v4424_v31 }
 0x960   : > { %v3769_v30 = vpop.eup %3768  ;;  %v2190_v43 = vmul.f32 1.442695, %v2179_v42  ;;  %3472 = vmatprep.subr.bf16.mxu0 %v3615_v53 }
 0x961   : > { %v2166_v19 = vpop.xlane.xlu0 %2165  ;;  %v1850_v51 = vmul.f32 %v3769_v30, %v4444_v6  ;;  %v1856_v23 = vpack.c.bf16 %v1852_v24, %v1851_v52 }
 0x962   : > { %3774 = vpow2.f32 %v2190_v43  ;;  %v2180_v58 = vsub.f32 %v4405_v17, %v2166_v19 }
 0x963   : > { %v1855_v9 = vpack.c.bf16 %v1850_v51, %v1849_v21  ;;  %3473 = vmatpush3.bf16.msra.mxu0 %v3615_v53 }
 0x964   : > { %v2192_v44 = vmul.f32 1.442695, %v2180_v58  ;;  %v3617_v58 = vld [vmem:[%s4780_s3 + $0x38] sm:$0xff]  }
 0x965   : > { %v2172_v15 = vpop.xlane.xlu0 %2171  ;;  %3466 = vmatprep.mubr.msk.bf16.mxu0 %vm1002_vm1, %v1855_v9 }
 0x966   : > { %3467 = vmatmul.mubr.msk.bf16.gmra.mrb[36].mxu0 %vm1002_vm1, %v1856_v23  ;;  %v2182_v25 = vsub.f32 %v4403_v28, %v2172_v15 }
 0x968   : > { %v4488_v18 = vpop.eup %3770  ;;  %v2196_v50 = vmul.f32 1.442695, %v2182_v25 }
 0x969   : > { %v4490_v45 = vpop.permute.xlu0 %2244  ;;  %v2206_v36 = vsel %vm1002_vm1, %v4488_v18, 0.0  ;;  %v4494_v26 = vpop.eup %3772 }
 0x96a   : > { %2207 = vadd.xlane.f32.xlu0 %v2206_v36  ;;  %3498 = vmatprep.subr.bf16.mxu0 %v4490_v45  ;;  %v2200_v6 = vsel %vm1002_vm1, %v4494_v26, 0.0 }
 0x96c   : > { %v4497_v31 = vpop.eup %3774 }
 0x96d   : > { %v2209_v29 = vsel %vm1002_vm1, %v4497_v31, 0.0 }
 0x96e   : > { %2201 = vadd.xlane.f32.xlu0 %v2200_v6  ;;  %2210 = vadd.xlane.f32.xlu1 %v2209_v29 }
 0x984   : > { %2248 = vrot.lane.b32.xlu0 %v4108_v57, %s3837_s18 }
 0x988   : > { %2250 = vrot.lane.b32.xlu0 %v4105_v55, %s3837_s18 }
 0x98a   : > { %v2157_v32 = vpop.xlane.xlu1 %2156 }
 0x98b   : > { %v2177_v59 = vsub.f32 %v4401_v27, %v2157_v32 }
 0x98d   : > { %v2186_v37 = vmul.f32 1.442695, %v2177_v59 }
 0x98e   : > { %v2169_v60 = vpop.xlane.xlu1 %2168 }
 0x98f   : > { %3776 = vpow2.f32 %v2186_v37  ;;  %v2181_v57 = vsub.f32 %v4409_v56, %v2169_v60 }
 0x990   : > { %3778 = vpow2.f32 %v2196_v50 }
 0x991   : > { %3780 = vpow2.f32 %v2192_v44  ;;  %v2194_v28 = vmul.f32 1.442695, %v2181_v57 }
 0x992   : > { %v2175_v47 = vpop.xlane.xlu1 %2174 }
 0x993   : > { %v2183_v22 = vsub.f32 %v4407_v54, %v2175_v47 }
 0x995   : > { %v2198_v55 = vmul.f32 1.442695, %v2183_v22 }
 0x997   : > { %3782 = vpow2.f32 %v2198_v55 }
 0x998   : > { %3784 = vpow2.f32 %v2194_v28 }
 0x999   : > { %v3777_v0 = vpop.eup %3776 }
 0x99a   : > { %v2203_v27 = vsel %vm1002_vm1, %v3777_v0, 0.0  ;;  %v4513_v49 = vpop.eup %3778 }
 0x99b   : > { %2204 = vadd.xlane.f32.xlu1 %v2203_v27  ;;  %v2218_v17 = vsel %vm1002_vm1, %v4513_v49, 0.0  ;;  %v4517_v48 = vpop.eup %3780 }
 0x99c   : > { %v2212_v54 = vsel %vm1002_vm1, %v4517_v48, 0.0 }
 0x99f   : > { %2219 = vadd.xlane.f32.xlu1 %v2218_v17 }
 0x9a1   : > { %v4521_v56 = vpop.eup %3782 }
 0x9a2   : > { %v2221_v20 = vsel %vm1002_vm1, %v4521_v56, 0.0  ;;  %v3785_v62 = vpop.eup %3784 }
 0x9a3   : > { %2213 = vadd.xlane.f32.xlu1 %v2212_v54  ;;  %v2215_v13 = vsel %vm1002_vm1, %v3785_v62, 0.0 }
 0x9a7   : > { %2222 = vadd.xlane.f32.xlu1 %v2221_v20  ;;  %v3146_v20 = vld [vmem:[%s4781_s4] ss:$0 sm:$0xff] }
 0x9ab   : > { %2216 = vadd.xlane.f32.xlu1 %v2215_v13 }
 0x9bc   : > { %2246 = vrot.lane.b32.xlu1 %v4086_v35, %s3837_s18 }
 0x9f7   : > { %v2208_v12 = vpop.xlane.xlu0 %2207 }
 0x9fb   : > { %v2211_v46 = vpop.xlane.xlu1 %2210  ;;  %v2202_v40 = vpop.xlane.xlu0 %2201 }
 0x9ff   : > { %v2249_v42 = vpop.permute.xlu0 %2248 }
 0xa28   : > { %v2205_v33 = vpop.xlane.xlu1 %2204 }
 0xa29   : > { %3786 = vrcp.f32 %v2205_v33 }
 0xa2a   : > { %3788 = vrcp.f32 %v2202_v40  ;;  %v3818_v40 = vld [vmem:[%s3924_s30] sm:$0xff] }
 0xa2b   : > { %3790 = vrcp.f32 %v2211_v46 }
 0xa2c   : > { %v2220_v1 = vpop.xlane.xlu1 %2219  ;;  %3792 = vrcp.f32 %v2208_v12 }
 0xa30   : > { %v2214_v10 = vpop.xlane.xlu1 %2213 }
 0xa31   : > { %v3464_v11 = vpop.f32.mrb[32].mxu0  ;;  %3794 = vrcp.f32 %v2214_v10 }
 0xa32   : > { %v1915_v14 = vpop.f32.mrb[33].mxu0 }
 0xa33   : > { %v3465_v5 = vpop.f32.mrb[34].mxu0  ;;  %v3787_v35 = vpop.eup %3786 }
 0xa34   : > { %v1947_v34 = vpack.c.bf16 %v3465_v5, %v3464_v11  ;;  %v1918_v38 = vpop.f32.mrb[35].mxu0  ;;  %v2223_v7 = vpop.xlane.xlu1 %2222  ;;  %v2233_v30 = vmul.f32 %v3787_v35, %v3777_v0 }
 0xa35   : > { %v1946_v8 = vpack.c.bf16 %v1918_v38, %v1915_v14  ;;  %v3789_v16 = vpop.eup %3788  ;;  %v3819_v14 = vld [vmem:[%s3924_s30 + $0x8] sm:$0xff] }
 0xa36   : > { %v2232_v51 = vmul.f32 %v3789_v16, %v4494_v26  ;;  %v3791_v9 = vpop.eup %3790  ;;  %v3616_v26 = vld [vmem:[%s4780_s3 + $0x30] sm:$0xff]   ;;  %v3821_v16 = vld [vmem:[%s3924_s30 + $0x18] sm:$0xff] }
 0xa37   : > { %3474 = vmatprep.mubr.msk.bf16.mxu0 %vm912_vm0, %v1946_v8  ;;  %v3793_v23 = vpop.eup %3792  ;;  %v2235_v6 = vmul.f32 %v3791_v9, %v4497_v31 }
 0xa38   : > { %3475 = vmatmul.mubr.msk.bf16.vlgmr.msra.gmra.mrb[24].mxu0 %vm912_vm0, %v1947_v34  ;;  %v2217_v53 = vpop.xlane.xlu1 %2216  ;;  %v2240_v52 = vpack.c.bf16 %v2233_v30, %v2232_v51  ;;  %v2234_v25 = vmul.f32 %v3793_v23, %v4488_v18  ;;  %v3820_v34 = vld [vmem:[%s3924_s30 + $0x10] sm:$0xff] }
 0xa39   : > { %3499 = vmatpush3.bf16.msra.mxu0 %v4490_v45  ;;  %3796 = vrcp.f32 %v2217_v53  ;;  %v3468_v3 = vpop.f32.mrb[36].mxu0  ;;  %v2251_v45 = vpop.permute.xlu0 %2250  ;;  %v3825_v23 = vld [vmem:[%s3924_s30 + $0x30] sm:$0xff] }
 0xa3a   : > { %v1931_v39 = vpop.f32.mrb[37].mxu0  ;;  %3798 = vrcp.f32 %v2223_v7  ;;  %v2241_v59 = vpack.c.bf16 %v2235_v6, %v2234_v25  ;;  %v3623_v6 = vld [vmem:[%s4786_s9 + $0x14] ss:$8 sps:$4 sm:$0xff]  }
 0xa3b   : > { %v3469_v61 = vpop.f32.mrb[38].mxu0  ;;  %3800 = vrcp.f32 %v2220_v1  ;;  %v3795_v15 = vpop.eup %3794 }
 0xa3c   : > { %v1949_v43 = vpack.c.bf16 %v3469_v61, %v3468_v3  ;;  %v1934_v24 = vpop.f32.mrb[39].mxu0  ;;  %v2247_v19 = vpop.permute.xlu1 %2246  ;;  %v2236_v32 = vmul.f32 %v3795_v15, %v4517_v48 }
 0xa3d   : > { %v1948_v21 = vpack.c.bf16 %v1934_v24, %v1931_v39  ;;  %3500 = vmatprep.subr.bf16.mxu0 %v2247_v19 }
 0xa3e   : > { %3501 = vmatpush3.bf16.msra.mxu0 %v2247_v19 }
 0xa3f   : > { %3478 = vmatprep.mubr.msk.bf16.mxu0 %vm912_vm0, %v1948_v21  ;;  %3502 = vmatprep.subr.bf16.mxu0 %v2249_v42  ;;  %v3823_v21 = vld [vmem:[%s3924_s30 + $0x20] sm:$0xff] }
 0xa40   : > { %3479 = vmatmul.mubr.msk.bf16.gmra.mrb[28].mxu0 %vm912_vm0, %v1949_v43  ;;  %v3822_v43 = vld [vmem:[%s3924_s30 + $0x28] sm:$0xff] }
 0xa41   : > { %3506 = vmatprep.mubr.msk.bf16.mxu0 %vm1002_vm1, %v2240_v52  ;;  %v3824_v52 = vld [vmem:[%s3924_s30 + $0x38] sm:$0xff] }
 0xa42   : > { %3503 = vmatpush3.bf16.msra.mxu0 %v2249_v42 }
 0xa43   : > { %v3797_v36 = vpop.eup %3796  ;;  %3504 = vmatprep.subr.bf16.mxu0 %v2251_v45 }
 0xa44   : > { %v2237_v29 = vmul.f32 %v3797_v36, %v3785_v62  ;;  %v3799_v50 = vpop.eup %3798  ;;  %v3620_v36 = vld [vmem:[%s4786_s9 + $0x4] ss:$8 sps:$4 sm:$0xff]  }
 0xa45   : > { %v3801_v31 = vpop.eup %3800  ;;  %v2239_v60 = vmul.f32 %v3799_v50, %v4521_v56  ;;  %2687 = vmatprep.subr.bf16.mxu1 %v3620_v36  ;;  %v3647_v36 = vld [vmem:[%s4788_s11 + $0x10] sm:$0xff]  }
 0xa46   : > { %3505 = vmatpush3.bf16.msra.mxu0 %v2251_v45  ;;  %v2242_v37 = vpack.c.bf16 %v2237_v29, %v2236_v32  ;;  %v2238_v18 = vmul.f32 %v3801_v31, %v4513_v49  ;;  %v3618_v45 = vld [vmem:[%s4786_s9] ss:$8 sps:$4 sm:$0xff]  }
 0xa47   : > { %3514 = vmatprep.subr.bf16.mxu0 %v3616_v26  ;;  %2688 = vmatpush1.bf16.msra.mxu1 %v3618_v45  ;;  %v3646_v45 = vld [vmem:[%s4788_s11 + $0x50] sm:$0xff]  }
 0xa48   : > { %v2243_v44 = vpack.c.bf16 %v2239_v60, %v2238_v18  ;;  %2689 = vmatprep.subr.bf16.mxu1 %v3623_v6  ;;  %v3648_v6 = vld [vmem:[%s4788_s11 + $0x58] sm:$0xff]  }
 0xa49   : > { %3507 = vmatmul.mubr.msk.bf16.vlgmr.msra.gmra.mrb[40].mxu0 %vm1002_vm1, %v2241_v59 }
 0xa4a   : > { %3510 = vmatprep.mubr.msk.bf16.mxu0 %vm1002_vm1, %v2242_v37  ;;  %3515 = vmatpush3.bf16.msra.mxu0 %v3616_v26  ;;  %v3621_v26 = vld [vmem:[%s4786_s9 + $0x10] ss:$8 sps:$4 sm:$0xff]  }
 0xa4b   : > { %3516 = vmatprep.subr.bf16.mxu0 %v3617_v58  ;;  %2690 = vmatpush1.bf16.msra.mxu1 %v3621_v26  ;;  %v3649_v26 = vld [vmem:[%s4788_s11 + $0x18] sm:$0xff]  }
 0xa4e   : > { %3517 = vmatpush3.bf16.msra.mxu0 %v3617_v58 }
 0xa51   : > { %3511 = vmatmul.mubr.msk.bf16.gmra.mrb[44].mxu0 %vm1002_vm1, %v2243_v44 }
 0xb1c   : > { %v3508_v47 = vpop.f32.mrb[40].mxu0 }
 0xb1d   : > { %v2302_v22 = vpop.f32.mrb[41].mxu0 }
 0xb1e   : > { %v3509_v57 = vpop.f32.mrb[42].mxu0 }
 0xb1f   : > { %v2334_v55 = vpack.c.bf16 %v3509_v57, %v3508_v47  ;;  %v2305_v0 = vpop.f32.mrb[43].mxu0 }
 0xb20   : > { %v2333_v28 = vpack.c.bf16 %v2305_v0, %v2302_v22 }
 0xb22   : > { %3518 = vmatprep.mubr.msk.bf16.mxu0 %vm912_vm0, %v2333_v28 }
 0xb23   : > { %3519 = vmatmul.mubr.msk.bf16.vlgmr.msra.gmra.mrb[24].mxu0 %vm912_vm0, %v2334_v55 }
 0xb24   : > { %v3512_v27 = vpop.f32.mrb[44].mxu0 }
 0xb25   : > { %v2318_v17 = vpop.f32.mrb[45].mxu0 }
 0xb26   : > { %v3513_v48 = vpop.f32.mrb[46].mxu0 }
 0xb27   : > { %v2336_v49 = vpack.c.bf16 %v3513_v48, %v3512_v27  ;;  %v2321_v54 = vpop.f32.mrb[47].mxu0 }
 0xb28   : > { %v2335_v56 = vpack.c.bf16 %v2321_v54, %v2318_v17 }
 0xb2a   : > { %3522 = vmatprep.mubr.msk.bf16.mxu0 %vm912_vm0, %v2335_v56 }
 0xb2b   : > { %3523 = vmatmul.mubr.msk.bf16.gmra.mrb[28].mxu0 %vm912_vm0, %v2336_v49 }
 0xbf6   : > { %v3520_v62 = vpop.f32.mrb[24].mxu0 }
 0xbf7   : > { %v2395_v13 = vpop.f32.mrb[25].mxu0  ;;  %v2443_v1 = vadd.f32 %v3520_v62, %v3146_v20 }
 0xbf8   : > { %v2441_v46 = vadd.f32 %v3146_v20, %v2395_v13  ;;  %v3521_v12 = vpop.f32.mrb[26].mxu0 }
 0xbf9   : > { %v2398_v33 = vpop.f32.mrb[27].mxu0  ;;  %v4564_v38 = vadd.f32 %v3820_v34, %v2443_v1  ;;  %v2444_v7 = vadd.f32 %v3521_v12, %v3146_v20  ;;  %v3624_v34 = vld [vmem:[%s4786_s9 + $0x20] ss:$8 sps:$4 sm:$0xff]  }
 0xbfa   : > { %v4557_v10 = vadd.f32 %v3818_v40, %v2441_v46  ;;  %v2442_v11 = vadd.f32 %v3146_v20, %v2398_v33 }
 0xbfb   : > { %v4569_v39 = vadd.f32 %v3821_v16, %v2444_v7  ;;  %v3629_v7 = vld [vmem:[%s4786_s9 + $0x34] ss:$8 sps:$4 sm:$0xff]   ;;  %v3633_v16 = vld [vmem:[%s4786_s9 + $0x50] ss:$8 sps:$4 sm:$0xff]  }
 0xbfc   : > { %v4560_v5 = vadd.f32 %v3819_v14, %v2442_v11  ;;  %2459 = vadd.xlane.f32.xlu0 %v4557_v10  ;;  %v3626_v14 = vld [vmem:[%s4786_s9 + $0x24] ss:$8 sps:$4 sm:$0xff]  }
 0xbfd   : > { %2691 = vmatprep.subr.bf16.mxu1 %v3626_v14 }
 0xbfe   : > { %2461 = vadd.xlane.f32.xlu1 %v4560_v5  ;;  %v3524_v8 = vpop.f32.mrb[28].mxu0  ;;  %2692 = vmatpush1.bf16.msra.mxu1 %v3624_v34 }
 0xbff   : > { %v2411_v35 = vpop.f32.mrb[29].mxu0  ;;  %v2447_v19 = vadd.f32 %v3524_v8, %v3146_v20  ;;  %v3627_v8 = vld [vmem:[%s4786_s9 + $0x30] ss:$8 sps:$4 sm:$0xff]   ;;  %2693 = vmatprep.subr.bf16.mxu1 %v3629_v7 }
 0xc00   : > { %2463 = vadd.xlane.f32.xlu0 %v4564_v38  ;;  %v3525_v53 = vpop.f32.mrb[30].mxu0  ;;  %v2445_v42 = vadd.f32 %v3146_v20, %v2411_v35  ;;  %v3632_v35 = vld [vmem:[%s4786_s9 + $0x44] ss:$8 sps:$4 sm:$0xff]  }
 0xc01   : > { %v2414_v3 = vpop.f32.mrb[31].mxu0  ;;  %v2448_v30 = vadd.f32 %v3525_v53, %v3146_v20  ;;  %v4584_v15 = vadd.f32 %v3825_v23, %v2447_v19  ;;  %v3630_v53 = vld [vmem:[%s4786_s9 + $0x40] ss:$8 sps:$4 sm:$0xff]  }
 0xc02   : > { %v2446_v61 = vadd.f32 %v3146_v20, %v2414_v3  ;;  %v4576_v51 = vadd.f32 %v3823_v21, %v2445_v42  ;;  %2694 = vmatpush1.bf16.msra.mxu1 %v3627_v8  ;;  %v3635_v3 = vld [vmem:[%s4786_s9 + $0x54] ss:$8 sps:$4 sm:$0xff]   ;;  %v3638_v42 = vld [vmem:[%s4786_s9 + $0x64] ss:$8 sps:$4 sm:$0xff]  }
 0xc03   : > { %v4580_v9 = vadd.f32 %v3824_v52, %v2448_v30  ;;  %2695 = vmatprep.subr.bf16.mxu1 %v3632_v35  ;;  %v3641_v30 = vld [vmem:[%s4786_s9 + $0x74] ss:$8 sps:$4 sm:$0xff]   ;;  %v3642_v19 = vld [vmem:[%s4788_s11 + $0x40] sm:$0xff]   ;;  %v3644_v52 = vld [vmem:[%s4788_s11 + $0x48] sm:$0xff]  }
 0xc04   : > { %v4572_v24 = vadd.f32 %v3822_v43, %v2446_v61  ;;  %2465 = vadd.xlane.f32.xlu0 %v4569_v39  ;;  %v3636_v61 = vld [vmem:[%s4786_s9 + $0x60] ss:$8 sps:$4 sm:$0xff]   ;;  %v3639_v43 = vld [vmem:[%s4786_s9 + $0x70] ss:$8 sps:$4 sm:$0xff]   ;;  %3286 = vmatprep.subr.bf16.mxu0 %v3642_v19 }
 0xc05   : > { %v3643_v21 = vld [vmem:[%s4788_s11] sm:$0xff]   ;;  %v3645_v23 = vld [vmem:[%s4788_s11 + $0x8] sm:$0xff]  }
 0xc06   : > { %2469 = vadd.xlane.f32.xlu1 %v4572_v24  ;;  %2696 = vmatpush1.bf16.msra.mxu1 %v3630_v53 }
 0xc07   : > { %2697 = vmatprep.subr.bf16.mxu1 %v3635_v3  ;;  %3287 = vmatpush3.bf16.msra.mxu0 %v3643_v21 }
 0xc08   : > { %2467 = vadd.xlane.f32.xlu0 %v4576_v51  ;;  %3288 = vmatprep.subr.bf16.mxu0 %v3644_v52 }
 0xc0a   : > { %2473 = vadd.xlane.f32.xlu1 %v4580_v9  ;;  %2698 = vmatpush1.bf16.msra.mxu1 %v3633_v16 }
 0xc0b   : > { %2699 = vmatprep.subr.bf16.mxu1 %v3638_v42  ;;  %3289 = vmatpush3.bf16.msra.mxu0 %v3645_v23 }
 0xc0c   : > { %2471 = vadd.xlane.f32.xlu0 %v4584_v15  ;;  %3290 = vmatprep.subr.bf16.mxu0 %v3646_v45 }
 0xc0e   : > { %2700 = vmatpush1.bf16.msra.mxu1 %v3636_v61 }
 0xc0f   : > { %2701 = vmatprep.subr.bf16.mxu1 %v3641_v30  ;;  %3291 = vmatpush3.bf16.msra.mxu0 %v3647_v36  ;;  %v3148_v30 = vld [vmem:[%s4785_s8] ss:$0 sm:$0xff] }
 0xc10   : > { %3292 = vmatprep.subr.bf16.mxu0 %v3648_v6 }
 0xc12   : > { %2702 = vmatpush1.bf16.msra.mxu1 %v3639_v43 }
 0xc13   : > { %3293 = vmatpush3.bf16.msra.mxu0 %v3649_v26 }
 0xc89   : > { %v2460_v29 = vpop.xlane.xlu0 %2459 }
 0xc8a   : > { %v2475_v25 = vmul.f32 0.0078125, %v2460_v29  ;;  %v3650_v29 = vld [vmem:[%s4788_s11 + $0x60] sm:$0xff]  }
 0xc8b   : > { %v2462_v32 = vpop.xlane.xlu1 %2461  ;;  %3294 = vmatprep.subr.bf16.mxu0 %v3650_v29 }
 0xc8c   : > { %v4601_v59 = vsub.f32 %v4557_v10, %v2475_v25  ;;  %v2476_v58 = vmul.f32 0.0078125, %v2462_v32  ;;  %v3651_v25 = vld [vmem:[%s4788_s11 + $0x20] sm:$0xff]   ;;  %v3652_v32 = vld [vmem:[%s4788_s11 + $0x68] sm:$0xff]  }
 0xc8d   : > { %v2464_v50 = vpop.xlane.xlu0 %2463  ;;  %3295 = vmatpush3.bf16.msra.mxu0 %v3651_v25 }
 0xc8e   : > { %v4604_v37 = vsub.f32 %v4560_v5, %v2476_v58  ;;  %v2477_v31 = vmul.f32 0.0078125, %v2464_v50  ;;  %v2491_v60 = vmul.f32 %v4601_v59, %v4601_v59  ;;  %3296 = vmatprep.subr.bf16.mxu0 %v3652_v32 }
 0xc90   : > { %v4609_v18 = vsub.f32 %v4564_v38, %v2477_v31  ;;  %2499 = vadd.xlane.f32.xlu0 %v2491_v60  ;;  %v2492_v44 = vmul.f32 %v4604_v37, %v4604_v37 }
 0xc91   : > { %v2466_v47 = vpop.xlane.xlu0 %2465 }
 0xc92   : > { %v2478_v22 = vmul.f32 0.0078125, %v2466_v47  ;;  %2501 = vadd.xlane.f32.xlu1 %v2492_v44  ;;  %v2493_v57 = vmul.f32 %v4609_v18, %v4609_v18 }
 0xc93   : > { %v2470_v55 = vpop.xlane.xlu1 %2469 }
 0xc94   : > { %v4616_v0 = vsub.f32 %v4569_v39, %v2478_v22  ;;  %v2480_v28 = vmul.f32 0.0078125, %v2470_v55  ;;  %2503 = vadd.xlane.f32.xlu0 %v2493_v57 }
 0xc95   : > { %v2468_v27 = vpop.xlane.xlu0 %2467 }
 0xc96   : > { %v4619_v17 = vsub.f32 %v4572_v24, %v2480_v28  ;;  %v2479_v48 = vmul.f32 0.0078125, %v2468_v27  ;;  %v2494_v49 = vmul.f32 %v4616_v0, %v4616_v0 }
 0xc97   : > { %v2474_v54 = vpop.xlane.xlu1 %2473 }
 0xc98   : > { %v4624_v56 = vsub.f32 %v4576_v51, %v2479_v48  ;;  %v2482_v20 = vmul.f32 0.0078125, %v2474_v54  ;;  %2505 = vadd.xlane.f32.xlu1 %v2494_v49  ;;  %v2496_v33 = vmul.f32 %v4619_v17, %v4619_v17 }
 0xc99   : > { %v2472_v62 = vpop.xlane.xlu0 %2471 }
 0xc9a   : > { %v4627_v13 = vsub.f32 %v4580_v9, %v2482_v20  ;;  %v2481_v46 = vmul.f32 0.0078125, %v2472_v62  ;;  %v2495_v12 = vmul.f32 %v4624_v56, %v4624_v56 }
 0xc9c   : > { %v4634_v1 = vsub.f32 %v4584_v15, %v2481_v46  ;;  %2507 = vadd.xlane.f32.xlu0 %v2495_v12  ;;  %2509 = vadd.xlane.f32.xlu1 %v2496_v33  ;;  %v2498_v11 = vmul.f32 %v4627_v13, %v4627_v13  ;;  %v3147_v12 = vld [vmem:[%s4784_s7] ss:$0 sm:$0xff] }
 0xc9e   : > { %v2497_v40 = vmul.f32 %v4634_v1, %v4634_v1 }
 0xca0   : > { %2511 = vadd.xlane.f32.xlu0 %v2497_v40  ;;  %2513 = vadd.xlane.f32.xlu1 %v2498_v11 }
 0xd1d   : > { %v2500_v58 = vpop.xlane.xlu0 %2499 }
 0xd1e   : > { %v2515_v50 = vmul.f32 0.0078125, %v2500_v58 }
 0xd1f   : > { %v2502_v31 = vpop.xlane.xlu1 %2501 }
 0xd20   : > { %v2523_v60 = vadd.f32 1e-05, %v2515_v50  ;;  %v2516_v44 = vmul.f32 0.0078125, %v2502_v31 }
 0xd21   : > { %v2504_v47 = vpop.xlane.xlu0 %2503 }
 0xd22   : > { %3802 = vrsqrt.f32 %v2523_v60  ;;  %v2524_v22 = vadd.f32 1e-05, %v2516_v44  ;;  %v2517_v57 = vmul.f32 0.0078125, %v2504_v47 }
 0xd24   : > { %3804 = vrsqrt.f32 %v2524_v22  ;;  %v2525_v55 = vadd.f32 1e-05, %v2517_v57 }
 0xd25   : > { %v2506_v28 = vpop.xlane.xlu1 %2505 }
 0xd26   : > { %3806 = vrsqrt.f32 %v2525_v55  ;;  %v2518_v27 = vmul.f32 0.0078125, %v2506_v28 }
 0xd28   : > { %v2526_v48 = vadd.f32 1e-05, %v2518_v27 }
 0xd29   : > { %v2508_v49 = vpop.xlane.xlu0 %2507  ;;  %v2510_v54 = vpop.xlane.xlu1 %2509 }
 0xd2a   : > { %3808 = vrsqrt.f32 %v2526_v48  ;;  %v2519_v20 = vmul.f32 0.0078125, %v2508_v49  ;;  %v2520_v62 = vmul.f32 0.0078125, %v2510_v54  ;;  %v3653_v49 = vld [vmem:[%s4788_s11 + $0x28] sm:$0xff]   ;;  %v3657_v54 = vld [vmem:[%s4788_s11 + $0x38] sm:$0xff]  }
 0xd2b   : > { %3297 = vmatpush3.bf16.msra.mxu0 %v3653_v49 }
 0xd2c   : > { %v3803_v46 = vpop.eup %3802  ;;  %v2527_v33 = vadd.f32 1e-05, %v2519_v20  ;;  %v2528_v40 = vadd.f32 1e-05, %v2520_v62  ;;  %v2595_v20 = vld [vmem:[%s4787_s10] sm:$0x3] }
 0xd2d   : > { %v2539_v11 = vmul.f32 %v3803_v46, %v4601_v59  ;;  %v2512_v14 = vpop.xlane.xlu0 %2511  ;;  %v2514_v34 = vpop.xlane.xlu1 %2513  ;;  %v2600_v62 = vrot.slane %v2595_v20, %v609_v41  ;;  %v2604_v46 = vrot.slane %v2595_v20, %v613_v4 }
 0xd2e   : > { %v3805_v7 = vpop.eup %3804  ;;  %3810 = vrsqrt.f32 %v2527_v33  ;;  %v2521_v8 = vmul.f32 0.0078125, %v2512_v14  ;;  %v2522_v35 = vmul.f32 0.0078125, %v2514_v34 }
 0xd2f   : > { %v2553_v53 = vmul.f32 %v3147_v12, %v2539_v11  ;;  %v2540_v3 = vmul.f32 %v3805_v7, %v4604_v37  ;;  %3812 = vrsqrt.f32 %v2528_v40 }
 0xd30   : > { %v3807_v16 = vpop.eup %3806  ;;  %v2529_v42 = vadd.f32 1e-05, %v2521_v8  ;;  %v2530_v61 = vadd.f32 1e-05, %v2522_v35 }
 0xd31   : > { %v2554_v43 = vmul.f32 %v3147_v12, %v2540_v3  ;;  %v2567_v59 = vadd.f32 %v3148_v30, %v2553_v53  ;;  %v2541_v21 = vmul.f32 %v3807_v16, %v4609_v18 }
 0xd32   : > { %3814 = vrsqrt.f32 %v2529_v42 }
 0xd33   : > { %v2568_v19 = vadd.f32 %v3148_v30, %v2554_v43  ;;  %3816 = vrsqrt.f32 %v2530_v61  ;;  %v2555_v37 = vmul.f32 %v3147_v12, %v2541_v21 }
 0xd34   : > { %v3809_v52 = vpop.eup %3808 }
 0xd35   : > { %v2575_v23 = vpack.c.bf16 %v2568_v19, %v2567_v59  ;;  %v2542_v45 = vmul.f32 %v3809_v52, %v4616_v0  ;;  %v2569_v58 = vadd.f32 %v3148_v30, %v2555_v37 }
 0xd37   : > { %2720 = vmatmul.mubr.bf16.vlgmr.msra.gmra.mrb[48].mxu1 %v2575_v23  ;;  %v2556_v36 = vmul.f32 %v3147_v12, %v2542_v45 }
 0xd38   : > { %v3811_v6 = vpop.eup %3810  ;;  %2729 = vmatprep.mubr.bf16.mxu1 %v3834_v63 }
 0xd39   : > { %v3813_v26 = vpop.eup %3812  ;;  %v2570_v29 = vadd.f32 %v3148_v30, %v2556_v36  ;;  %v2543_v25 = vmul.f32 %v3811_v6, %v4624_v56 }
 0xd3a   : > { %v2544_v32 = vmul.f32 %v3813_v26, %v4619_v17 }
 0xd3b   : > { %v2576_v18 = vpack.c.bf16 %v2570_v29, %v2569_v58  ;;  %v2557_v31 = vmul.f32 %v3147_v12, %v2543_v25 }
 0xd3c   : > { %v3815_v50 = vpop.eup %3814  ;;  %v2558_v60 = vmul.f32 %v3147_v12, %v2544_v32 }
 0xd3d   : > { %v3817_v44 = vpop.eup %3816  ;;  %v2571_v0 = vadd.f32 %v3148_v30, %v2557_v31  ;;  %v2545_v22 = vmul.f32 %v3815_v50, %v4634_v1  ;;  %v3654_v1 = vld [vmem:[%s4788_s11 + $0x70] sm:$0xff]  }
 0xd3e   : > { %v2572_v47 = vadd.f32 %v3148_v30, %v2558_v60  ;;  %v2546_v57 = vmul.f32 %v3817_v44, %v4627_v13  ;;  %v3655_v13 = vld [vmem:[%s4788_s11 + $0x30] sm:$0xff]   ;;  %3298 = vmatprep.subr.bf16.mxu0 %v3654_v1 }
 0xd3f   : > { %2730 = vmatmul.mubr.bf16.gmra.mrb[52].mxu1 %v2576_v18  ;;  %v2559_v28 = vmul.f32 %v3147_v12, %v2545_v22  ;;  %3299 = vmatpush3.bf16.msra.mxu0 %v3655_v13 }
 0xd40   : > { %2739 = vmatprep.mubr.bf16.mxu1 %v3834_v63  ;;  %v2577_v55 = vpack.c.bf16 %v2572_v47, %v2571_v0  ;;  %v2560_v56 = vmul.f32 %v3147_v12, %v2546_v57 }
 0xd41   : > { %v2573_v17 = vadd.f32 %v3148_v30, %v2559_v28 }
 0xd42   : > { %v2574_v27 = vadd.f32 %v3148_v30, %v2560_v56 }
 0xd44   : > { %v2578_v48 = vpack.c.bf16 %v2574_v27, %v2573_v17 }
 0xd47   : > { %2740 = vmatmul.mubr.bf16.gmra.mrb[56].mxu1 %v2577_v55 }
 0xd48   : > { %2749 = vmatprep.mubr.bf16.mxu1 %v3834_v63  ;;  %v3656_v63 = vld [vmem:[%s4788_s11 + $0x78] sm:$0xff]  }
 0xd49   : > { %3300 = vmatprep.subr.bf16.mxu0 %v3656_v63 }
 0xd4a   : > { %3301 = vmatpush3.bf16.msra.mxu0 %v3657_v54 }
 0xd4f   : > { %2750 = vmatmul.mubr.bf16.gmra.mrb[60].mxu1 %v2578_v48 }
 0xe0a   : > { %v2721_v12 = vpop.f32.mrb[48].mxu1 }
 0xe0b   : > { %v2722_v33 = vadd.f32 %v2721_v12, %v2600_v62  ;;  %v2723_v40 = vpop.f32.mrb[49].mxu1 }
 0xe0c   : > { %v2724_v11 = vadd.f32 %v2723_v40, %v2604_v46  ;;  %v2725_v14 = vpop.f32.mrb[50].mxu1 }
 0xe0d   : > { %v2726_v34 = vadd.f32 %v2725_v14, %v2600_v62  ;;  %v2727_v7 = vpop.f32.mrb[51].mxu1  ;;  %v2760_v35 = vmax.f32 %v2722_v33, 0.0 }
 0xe0e   : > { %v2728_v8 = vadd.f32 %v2727_v7, %v2604_v46  ;;  %v2761_v3 = vmax.f32 %v2724_v11, 0.0  ;;  %v3165_v11 = vld [vmem:[%s4789_s12] ss:$0 sm:$0xff] }
 0xe0f   : > { %v2762_v53 = vmax.f32 %v2726_v34, 0.0 }
 0xe10   : > { %v2763_v16 = vmax.f32 %v2728_v8, 0.0 }
 0xe11   : > { %v2776_v42 = vpack.c.bf16 %v2762_v53, %v2760_v35 }
 0xe12   : > { %v2777_v61 = vpack.c.bf16 %v2763_v16, %v2761_v3  ;;  %v2731_v30 = vpop.f32.mrb[52].mxu1 }
 0xe13   : > { %v2732_v43 = vadd.f32 %v2731_v30, %v2600_v62  ;;  %v2733_v41 = vpop.f32.mrb[53].mxu1 }
 0xe14   : > { %v2734_v59 = vadd.f32 %v2733_v41, %v2604_v46  ;;  %v2735_v2 = vpop.f32.mrb[54].mxu1  ;;  %2951 = vmatprep.mubr.bf16.mxu0 %v2777_v61 }
 0xe15   : > { %v2736_v4 = vadd.f32 %v2735_v2, %v2600_v62  ;;  %v2737_v19 = vpop.f32.mrb[55].mxu1  ;;  %2952 = vmatmul.mubr.bf16.vlgmr.msra.gmra.mrb[48].mxu0 %v2776_v42  ;;  %v2764_v52 = vmax.f32 %v2732_v43, 0.0 }
 0xe16   : > { %v2738_v21 = vadd.f32 %v2737_v19, %v2604_v46  ;;  %v2765_v45 = vmax.f32 %v2734_v59, 0.0 }
 0xe17   : > { %v2766_v23 = vmax.f32 %v2736_v4, 0.0 }
 0xe18   : > { %v2767_v37 = vmax.f32 %v2738_v21, 0.0 }
 0xe19   : > { %v2778_v36 = vpack.c.bf16 %v2766_v23, %v2764_v52 }
 0xe1a   : > { %v2779_v6 = vpack.c.bf16 %v2767_v37, %v2765_v45  ;;  %v2741_v26 = vpop.f32.mrb[56].mxu1 }
 0xe1b   : > { %v2742_v29 = vadd.f32 %v2741_v26, %v2600_v62  ;;  %v2743_v25 = vpop.f32.mrb[57].mxu1 }
 0xe1c   : > { %v2744_v32 = vadd.f32 %v2743_v25, %v2604_v46  ;;  %v2745_v58 = vpop.f32.mrb[58].mxu1  ;;  %2959 = vmatprep.mubr.bf16.mxu0 %v2779_v6 }
 0xe1d   : > { %v2746_v50 = vadd.f32 %v2745_v58, %v2600_v62  ;;  %v2747_v18 = vpop.f32.mrb[59].mxu1  ;;  %2960 = vmatmul.mubr.bf16.gmra.mrb[52].mxu0 %v2778_v36  ;;  %v2768_v60 = vmax.f32 %v2742_v29, 0.0 }
 0xe1e   : > { %v2748_v31 = vadd.f32 %v2747_v18, %v2604_v46  ;;  %v2769_v0 = vmax.f32 %v2744_v32, 0.0 }
 0xe1f   : > { %v2770_v44 = vmax.f32 %v2746_v50, 0.0 }
 0xe20   : > { %v2771_v47 = vmax.f32 %v2748_v31, 0.0 }
 0xe21   : > { %v2780_v22 = vpack.c.bf16 %v2770_v44, %v2768_v60 }
 0xe22   : > { %v2781_v57 = vpack.c.bf16 %v2771_v47, %v2769_v0  ;;  %v2751_v55 = vpop.f32.mrb[60].mxu1 }
 0xe23   : > { %v2752_v28 = vadd.f32 %v2751_v55, %v2600_v62  ;;  %v2753_v56 = vpop.f32.mrb[61].mxu1 }
 0xe24   : > { %v2754_v17 = vadd.f32 %v2753_v56, %v2604_v46  ;;  %v2755_v27 = vpop.f32.mrb[62].mxu1  ;;  %2967 = vmatprep.mubr.bf16.mxu0 %v2781_v57 }
 0xe25   : > { %v2756_v48 = vadd.f32 %v2755_v27, %v2600_v62  ;;  %v2757_v49 = vpop.f32.mrb[63].mxu1  ;;  %2968 = vmatmul.mubr.bf16.gmra.mrb[56].mxu0 %v2780_v22  ;;  %v2772_v13 = vmax.f32 %v2752_v28, 0.0 }
 0xe26   : > { %v2758_v1 = vadd.f32 %v2757_v49, %v2604_v46  ;;  %v2773_v54 = vmax.f32 %v2754_v17, 0.0 }
 0xe27   : > { %v2774_v63 = vmax.f32 %v2756_v48, 0.0 }
 0xe28   : > { %v2775_v20 = vmax.f32 %v2758_v1, 0.0 }
 0xe29   : > { %v2782_v12 = vpack.c.bf16 %v2774_v63, %v2772_v13 }
 0xe2a   : > { %v2783_v33 = vpack.c.bf16 %v2775_v20, %v2773_v54 }
 0xe2c   : > { %2975 = vmatprep.mubr.bf16.mxu0 %v2783_v33 }
 0xe2d   : > { %2976 = vmatmul.mubr.bf16.gmra.mrb[60].mxu0 %v2782_v12 }
 0xee8   : > { %v3302_v40 = vpop.f32.mrb[48].mxu0 }
 0xee9   : > { %v3303_v14 = vpop.f32.mrb[49].mxu0 }
 0xeea   : > { %v3304_v34 = vadd.f32 %v3303_v14, %v3302_v40  ;;  %v3305_v62 = vpop.f32.mrb[50].mxu0 }
 0xeeb   : > { %v3306_v7 = vpop.f32.mrb[51].mxu0 }
 0xeec   : > { %v2954_v8 = vadd.f32 %v3304_v34, %v3165_v11  ;;  %v3307_v46 = vadd.f32 %v3306_v7, %v3305_v62 }
 0xeee   : > { %v2984_v35 = vadd.f32 %v2954_v8, %v4557_v10  ;;  %v2957_v53 = vadd.f32 %v3307_v46, %v3165_v11 }
 0xef0   : > { %2992 = vst [vmem:[%s4756_s15] sm:$0xff] %v2984_v35  ;;  %v2985_v3 = vadd.f32 %v2957_v53, %v4560_v5  ;;  %v3308_v16 = vpop.f32.mrb[52].mxu0 }
 0xef1   : > { %v3309_v42 = vpop.f32.mrb[53].mxu0 }
 0xef2   : > { %2993 = vst [vmem:[%s4756_s15 + $0x8] sm:$0xff] %v2985_v3  ;;  %v3310_v61 = vadd.f32 %v3309_v42, %v3308_v16  ;;  %v3311_v30 = vpop.f32.mrb[54].mxu0 }
 0xef3   : > { %v3312_v43 = vpop.f32.mrb[55].mxu0 }
 0xef4   : > { %v2962_v41 = vadd.f32 %v3310_v61, %v3165_v11  ;;  %v3313_v59 = vadd.f32 %v3312_v43, %v3311_v30 }
 0xef6   : > { %v2986_v2 = vadd.f32 %v2962_v41, %v4564_v38  ;;  %v2965_v4 = vadd.f32 %v3313_v59, %v3165_v11 }
 0xef8   : > { %2994 = vst [vmem:[%s4756_s15 + $0x10] sm:$0xff] %v2986_v2  ;;  %v2987_v10 = vadd.f32 %v2965_v4, %v4569_v39  ;;  %v3314_v19 = vpop.f32.mrb[56].mxu0 }
 0xef9   : > { %v3315_v21 = vpop.f32.mrb[57].mxu0 }
 0xefa   : > { %2995 = vst [vmem:[%s4756_s15 + $0x18] sm:$0xff] %v2987_v10  ;;  %v3316_v5 = vadd.f32 %v3315_v21, %v3314_v19  ;;  %v3317_v52 = vpop.f32.mrb[58].mxu0 }
 0xefb   : > { %v3318_v23 = vpop.f32.mrb[59].mxu0 }
 0xefc   : > { %v2970_v45 = vadd.f32 %v3316_v5, %v3165_v11  ;;  %v3319_v37 = vadd.f32 %v3318_v23, %v3317_v52 }
 0xefe   : > { %v2988_v36 = vadd.f32 %v2970_v45, %v4576_v51  ;;  %v2973_v6 = vadd.f32 %v3319_v37, %v3165_v11 }
 0xf00   : > { %2996 = vst [vmem:[%s4756_s15 + $0x20] sm:$0xff] %v2988_v36  ;;  %v2989_v38 = vadd.f32 %v2973_v6, %v4572_v24  ;;  %v3320_v26 = vpop.f32.mrb[60].mxu0 }
 0xf01   : > { %v3321_v29 = vpop.f32.mrb[61].mxu0 }
 0xf02   : > { %2997 = vst [vmem:[%s4756_s15 + $0x28] sm:$0xff] %v2989_v38  ;;  %v3322_v39 = vadd.f32 %v3321_v29, %v3320_v26  ;;  %v3323_v25 = vpop.f32.mrb[62].mxu0 }
 0xf03   : > { %v3324_v32 = vpop.f32.mrb[63].mxu0 }
 0xf04   : > { %v2978_v58 = vadd.f32 %v3322_v39, %v3165_v11  ;;  %v3325_v50 = vadd.f32 %v3324_v32, %v3323_v25 }
 0xf06   : > { %v2990_v18 = vadd.f32 %v2978_v58, %v4584_v15  ;;  %v2981_v31 = vadd.f32 %v3325_v50, %v3165_v11 }
 0xf08   : > { %2998 = vst [vmem:[%s4756_s15 + $0x30] sm:$0xff] %v2990_v18  ;;  %v2991_v60 = vadd.f32 %v2981_v31, %v4580_v9 }
 0xf0a   : > { %2999 = vst [vmem:[%s4756_s15 + $0x38] sm:$0xff] %v2991_v60 }
 0xf0b PF: > { %s23_s25 = sadd.s32 1, %s3832_s25  }
 0xf0c   : > { %p20_p4 = scmp.ge.s32.totalorder %s23_s25, 4  }
 0xf0e   :  { %22 = sbr.rel (!%p20_p4) target bundleno = 1 (0x1), region = 102 }

</bundles_post_ra>
